<compile_context>
chip_gen: v7x
topology: tpu7x:2x2x1
jax: 0.10.0
libtpu: 0.0.40
codegen_flags: <defaults>
</compile_context>

<pallas_src>
import functools

import jax
import jax.numpy as jnp
import numpy as np
from jax.experimental import pallas as pl
from jax.experimental.pallas import tpu as pltpu


def autopad(k, p=None, d=1):
    """Pad to 'same' shape outputs (mirror of the PyTorch helper)."""
    if d > 1:
        k = d * (k - 1) + 1 if isinstance(k, int) else [d * (x - 1) + 1 for x in k]
    if p is None:
        p = k // 2 if isinstance(k, int) else [x // 2 for x in k]
    return p


def _cdiv(a, b):
    return -(-a // b)


def _round_up(a, b):
    return _cdiv(a, b) * b


# ----------------------------------------------------------------------------
# Pallas kernel: fused direct conv (k*k shifted taps) + folded-BN bias + SiLU
# ----------------------------------------------------------------------------
def _make_conv_bn_silu_kernel(k, th, Wo, C1, tn):
    def kernel(x_ref, w_ref, bias_ref, o_ref):
        # x_ref    : (1, th+k-1, Wo+k-1, C1)  bf16 halo tile of the padded input
        # w_ref    : (k*k, C1, tn)            bf16 weights with BN scale pre-folded
        # bias_ref : (1, tn)   f32 folded BN bias (0 in padded channels)
        # o_ref    : (1, th*Wo, tn)           bf16 flat, lane-dense output tile
        #
        # Local f32 accumulator: first tap initializes it, the rest add to it.
        # Single store to o_ref at the end — no per-tap VMEM read-modify-write.
        # TODO(synk): for small C1 a lane-packed (th*Wo, k*k*C1) LHS + single matmul
        #             (or a space-to-depth first-layer path) would feed the MXU a far
        #             larger contraction dim; kept per-tap here for lowering safety.
        acc = None
        for kh in range(k):
            for kw in range(k):
                patch = x_ref[0, kh:kh + th, kw:kw + Wo, :].reshape(th * Wo, C1)
                tap = jnp.dot(patch, w_ref[kh * k + kw],
                              preferred_element_type=jnp.float32)
                acc = tap if acc is None else acc + tap
        y = acc + bias_ref[...]                                  # (th*Wo, tn) f32
        # SiLU = y * sigmoid(y); exp and approximate reciprocal both run on the EUP.
        y = y * pl.reciprocal(1.0 + jnp.exp(-y), approx=True)
        o_ref[0, :, :] = y.astype(o_ref.dtype)

    return kernel


# ----------------------------------------------------------------------------
# Conv module equivalent (forward pass)
# ----------------------------------------------------------------------------
def conv_forward(x_nchw, weight, gamma, beta, running_mean, running_var,
                 *, k=3, s=1, p=None, d=1, eps=1e-5, target_tile_pixels=2048):
    """x_nchw: [N, C1, H, W]; weight: [C2, C1, k, k] (PyTorch layout). Returns NCHW bf16."""
    # TODO(synk): stride > 1, dilation > 1 and groups > 1 are not implemented in the
    #             fused Pallas path (module defaults and this test use s=1, d=1, g=1).
    assert s == 1 and d == 1, "fused Pallas conv supports s=1, d=1 only"
    p = autopad(k, p, d)

    N, C1, H, W = x_nchw.shape
    C2 = weight.shape[0]
    Ho = H + 2 * p - k + 1
    Wo = W + 2 * p - k + 1
    Wp = Wo + k - 1                          # == W + 2*p

    # ---- row tiling: ~target_tile_pixels output pixels per grid step ----
    th = max(1, min(Ho, _cdiv(target_tile_pixels, Wo)))
    n_tiles = _cdiv(Ho, th)
    # v7x has 2 TensorCores: keep the (batch * row_tiles) parallel axis even when we can.
    if (N * n_tiles) % 2 == 1 and Ho >= 2:
        n_tiles += 1
        th = _cdiv(Ho, n_tiles)
    Ho_pad = n_tiles * th
    Rh = th + k - 1                          # halo rows per input tile

    # ---- glue: NCHW -> NHWC (bf16), zero-pad spatially (+ row-tile remainder) ----
    # TODO(synk): these layout transposes/pads vanish if the surrounding model stays NHWC.
    x_nhwc = jnp.transpose(x_nchw, (0, 2, 3, 1)).astype(jnp.bfloat16)
    x_pad = jnp.pad(x_nhwc, ((0, 0), (p, p + (Ho_pad - Ho)), (p, p), (0, 0)))

    if n_tiles == 1:
        x_tiles = x_pad                                              # (N, Rh, Wp, C1)
    else:
        # TODO(synk): replace this halo-duplicating stack with overlapping element-
        #             indexed windows or a manual halo DMA so the padded input is not
        #             rewritten to HBM a second time. Only (k-1) rows/tile duplicated.
        x_tiles = jnp.stack(
            [x_pad[:, t * th:t * th + Rh] for t in range(n_tiles)], axis=1)
        x_tiles = x_tiles.reshape(N * n_tiles, Rh, Wp, C1)
    NT = N * n_tiles

    # ---- output-channel tile: lane-dense; 256 matches the v6e/v7x MXU N dim ----
    C2_128 = _round_up(C2, 128)
    tn = 256 if C2_128 % 256 == 0 else 128   # (on v5e's 128-wide MXU, 128 is also fine)
    C2p = _round_up(C2, tn)

    # ---- fold BN (inference) into the weights (scale) and a per-channel bias ----
    inv_std = 1.0 / jnp.sqrt(running_var.astype(jnp.float32) + eps)
    scale = gamma.astype(jnp.float32) * inv_std                           # (C2,)
    bias = beta.astype(jnp.float32) - running_mean.astype(jnp.float32) * scale

    # weight: [C2,C1,kh,kw] -> [k*k, C1, C2p]; scale folded in f32, then bf16 cast.
    w_r = jnp.transpose(weight, (2, 3, 1, 0)).reshape(k * k, C1, C2).astype(jnp.float32)
    w_r = w_r * scale.reshape(1, 1, C2)
    w_r = jnp.pad(w_r, ((0, 0), (0, 0), (0, C2p - C2))).astype(jnp.bfloat16)
    bias_p = jnp.pad(bias.reshape(1, C2), ((0, 0), (0, C2p - C2)))        # f32, 0-padded

    kernel = _make_conv_bn_silu_kernel(k, th, Wo, C1, tn)

    out = pl.pallas_call(
        kernel,
        out_shape=jax.ShapeDtypeStruct((NT, th * Wo, C2p), jnp.bfloat16),
        grid_spec=pltpu.PrefetchScalarGridSpec(
            num_scalar_prefetch=0,
            grid=(NT, C2p // tn),
            in_specs=[
                pl.BlockSpec((1, Rh, Wp, C1), lambda i, j: (i, 0, 0, 0)),   # halo tile
                pl.BlockSpec((k * k, C1, tn), lambda i, j: (0, 0, j)),      # weights*scale
                pl.BlockSpec((1, tn), lambda i, j: (0, j)),                 # BN bias
            ],
            out_specs=pl.BlockSpec((1, th * Wo, tn), lambda i, j: (i, 0, j)),
        ),
        # No explicit vmem_limit: real footprint is a few MiB, and the default scoped
        # limit is safe on every generation (requesting 64 MiB would be the whole of
        # v7x's per-core VMEM).
        compiler_params=pltpu.CompilerParams(
            dimension_semantics=("parallel", "parallel")),
    )(x_tiles, w_r, bias_p)

    out = out.reshape(N, Ho_pad, Wo, C2p)[:, :Ho, :, :C2]
    # TODO(synk): keep the surrounding graph NHWC/bf16 so this transpose + slice fuses
    #             away; kept to match the NCHW module interface.
    return jnp.transpose(out, (0, 3, 1, 2))                        # NCHW, bf16


# ----------------------------------------------------------------------------
# Reference (pure JAX / XLA, f32) for sanity checking
# ----------------------------------------------------------------------------
def conv_forward_ref(x_nchw, weight, gamma, beta, running_mean, running_var,
                     *, k=3, s=1, p=None, d=1, eps=1e-5):
    p = autopad(k, p, d)
    y = jax.lax.conv_general_dilated(
        x_nchw, weight, window_strides=(s, s),
        padding=[(p, p), (p, p)],
        dimension_numbers=("NCHW", "OIHW", "NCHW"))
    scale = (gamma / jnp.sqrt(running_var + eps)).reshape(1, -1, 1, 1)
    bias = (beta - running_mean * gamma / jnp.sqrt(running_var + eps)).reshape(1, -1, 1, 1)
    z = y * scale + bias
    return z * jax.nn.sigmoid(z)


if __name__ == "__main__":
    # Small shapes consistent with Conv(c1=4, c2=8, k=3, s=1)
    N, C1, H, W = 2, 4, 16, 16
    C2, k, s = 8, 3, 1

    key = jax.random.PRNGKey(0)
    kx, kw, kg, kb, km, kv = jax.random.split(key, 6)

    x = jax.random.normal(kx, (N, C1, H, W), dtype=jnp.float32)
    weight = 0.1 * jax.random.normal(kw, (C2, C1, k, k), dtype=jnp.float32)
    gamma = 1.0 + 0.1 * jax.random.normal(kg, (C2,), dtype=jnp.float32)
    beta = 0.1 * jax.random.normal(kb, (C2,), dtype=jnp.float32)
    running_mean = 0.1 * jax.random.normal(km, (C2,), dtype=jnp.float32)
    running_var = 0.5 + jax.random.uniform(kv, (C2,), dtype=jnp.float32)

    fwd = jax.jit(functools.partial(conv_forward, k=k, s=s))
    out = jax.block_until_ready(fwd(x, weight, gamma, beta, running_mean, running_var))

    ref = conv_forward_ref(x, weight, gamma, beta, running_mean, running_var, k=k, s=s)
    # Kernel matmul runs in bf16 (MXU-native) with f32 accumulate, bf16 output and an
    # approximate-reciprocal sigmoid, so the comparison against the pure-f32 reference
    # uses correspondingly loose tolerances.
    np.testing.assert_allclose(np.asarray(out, dtype=np.float32), np.asarray(ref),
                               rtol=3e-2, atol=3e-2)

    print("KERNEL_OK")
</pallas_src>

<mosaic_0001>
module attributes {stable_mosaic.version = 11 : i64} {
  func.func @kernel(%arg0: i32, %arg1: i32, %arg2: memref<1x18x18x4xbf16, #tpu.memory_space<vmem>>, %arg3: memref<9x4x128xbf16, #tpu.memory_space<vmem>>, %arg4: memref<1x128xf32, #tpu.memory_space<vmem>>, %arg5: memref<1x256x128xbf16, #tpu.memory_space<vmem>>) attributes {dimension_semantics = [#tpu.dimension_semantics<parallel>, #tpu.dimension_semantics<parallel>], iteration_bounds = array<i64: 2, 1>, scalar_prefetch = 0 : i64, scratch_operands = 0 : i64, tpu.core_type = #tpu.core_type<tc>, window_params = [{transform_indices = @transform_0, window_bounds = array<i64: 1, 18, 18, 4>}, {transform_indices = @transform_1, window_bounds = array<i64: 9, 4, 128>}, {transform_indices = @transform_2, window_bounds = array<i64: 1, 128>}, {transform_indices = @transform_3, window_bounds = array<i64: 1, 256, 128>}]} {
    %c0 = arith.constant 0 : index
    %c0_0 = arith.constant 0 : index
    %c0_1 = arith.constant 0 : index
    %c0_2 = arith.constant 0 : index
    %0 = vector.load %arg2[%c0, %c0_0, %c0_1, %c0_2] : memref<1x18x18x4xbf16, #tpu.memory_space<vmem>>, vector<1x16x16x4xbf16>
    %1 = vector.shape_cast %0 : vector<1x16x16x4xbf16> to vector<16x16x4xbf16>
    %2 = vector.shape_cast %1 : vector<16x16x4xbf16> to vector<256x4xbf16>
    %c0_3 = arith.constant 0 : index
    %c0_4 = arith.constant 0 : index
    %c0_5 = arith.constant 0 : index
    %3 = vector.load %arg3[%c0_3, %c0_4, %c0_5] : memref<9x4x128xbf16, #tpu.memory_space<vmem>>, vector<1x4x128xbf16>
    %4 = vector.shape_cast %3 : vector<1x4x128xbf16> to vector<4x128xbf16>
    %cst = arith.constant dense<0.000000e+00> : vector<256x128xf32>
    %5 = tpu.matmul %2, %4, %cst {dimension_numbers = #tpu.dot_dimension_numbers<[1], [0], [0], [1], [0, 0, 1, 1], [], []>} : vector<256x4xbf16>, vector<4x128xbf16>, vector<256x128xf32> -> vector<256x128xf32>
    %c0_6 = arith.constant 0 : index
    %c0_7 = arith.constant 0 : index
    %c1 = arith.constant 1 : index
    %c0_8 = arith.constant 0 : index
    %6 = vector.load %arg2[%c0_6, %c0_7, %c1, %c0_8] : memref<1x18x18x4xbf16, #tpu.memory_space<vmem>>, vector<1x16x16x4xbf16>
    %7 = vector.shape_cast %6 : vector<1x16x16x4xbf16> to vector<16x16x4xbf16>
    %8 = vector.shape_cast %7 : vector<16x16x4xbf16> to vector<256x4xbf16>
    %c1_9 = arith.constant 1 : index
    %c0_10 = arith.constant 0 : index
    %c0_11 = arith.constant 0 : index
    %9 = vector.load %arg3[%c1_9, %c0_10, %c0_11] : memref<9x4x128xbf16, #tpu.memory_space<vmem>>, vector<1x4x128xbf16>
    %10 = vector.shape_cast %9 : vector<1x4x128xbf16> to vector<4x128xbf16>
    %cst_12 = arith.constant dense<0.000000e+00> : vector<256x128xf32>
    %11 = tpu.matmul %8, %10, %cst_12 {dimension_numbers = #tpu.dot_dimension_numbers<[1], [0], [0], [1], [0, 0, 1, 1], [], []>} : vector<256x4xbf16>, vector<4x128xbf16>, vector<256x128xf32> -> vector<256x128xf32>
    %12 = arith.addf %5, %11 : vector<256x128xf32>
    %c0_13 = arith.constant 0 : index
    %c0_14 = arith.constant 0 : index
    %c2 = arith.constant 2 : index
    %c0_15 = arith.constant 0 : index
    %13 = vector.load %arg2[%c0_13, %c0_14, %c2, %c0_15] : memref<1x18x18x4xbf16, #tpu.memory_space<vmem>>, vector<1x16x16x4xbf16>
    %14 = vector.shape_cast %13 : vector<1x16x16x4xbf16> to vector<16x16x4xbf16>
    %15 = vector.shape_cast %14 : vector<16x16x4xbf16> to vector<256x4xbf16>
    %c2_16 = arith.constant 2 : index
    %c0_17 = arith.constant 0 : index
    %c0_18 = arith.constant 0 : index
    %16 = vector.load %arg3[%c2_16, %c0_17, %c0_18] : memref<9x4x128xbf16, #tpu.memory_space<vmem>>, vector<1x4x128xbf16>
    %17 = vector.shape_cast %16 : vector<1x4x128xbf16> to vector<4x128xbf16>
    %cst_19 = arith.constant dense<0.000000e+00> : vector<256x128xf32>
    %18 = tpu.matmul %15, %17, %cst_19 {dimension_numbers = #tpu.dot_dimension_numbers<[1], [0], [0], [1], [0, 0, 1, 1], [], []>} : vector<256x4xbf16>, vector<4x128xbf16>, vector<256x128xf32> -> vector<256x128xf32>
    %19 = arith.addf %12, %18 : vector<256x128xf32>
    %c0_20 = arith.constant 0 : index
    %c1_21 = arith.constant 1 : index
    %c0_22 = arith.constant 0 : index
    %c0_23 = arith.constant 0 : index
    %20 = vector.load %arg2[%c0_20, %c1_21, %c0_22, %c0_23] : memref<1x18x18x4xbf16, #tpu.memory_space<vmem>>, vector<1x16x16x4xbf16>
    %21 = vector.shape_cast %20 : vector<1x16x16x4xbf16> to vector<16x16x4xbf16>
    %22 = vector.shape_cast %21 : vector<16x16x4xbf16> to vector<256x4xbf16>
    %c3 = arith.constant 3 : index
    %c0_24 = arith.constant 0 : index
    %c0_25 = arith.constant 0 : index
    %23 = vector.load %arg3[%c3, %c0_24, %c0_25] : memref<9x4x128xbf16, #tpu.memory_space<vmem>>, vector<1x4x128xbf16>
    %24 = vector.shape_cast %23 : vector<1x4x128xbf16> to vector<4x128xbf16>
    %cst_26 = arith.constant dense<0.000000e+00> : vector<256x128xf32>
    %25 = tpu.matmul %22, %24, %cst_26 {dimension_numbers = #tpu.dot_dimension_numbers<[1], [0], [0], [1], [0, 0, 1, 1], [], []>} : vector<256x4xbf16>, vector<4x128xbf16>, vector<256x128xf32> -> vector<256x128xf32>
    %26 = arith.addf %19, %25 : vector<256x128xf32>
    %c0_27 = arith.constant 0 : index
    %c1_28 = arith.constant 1 : index
    %c1_29 = arith.constant 1 : index
    %c0_30 = arith.constant 0 : index
    %27 = vector.load %arg2[%c0_27, %c1_28, %c1_29, %c0_30] : memref<1x18x18x4xbf16, #tpu.memory_space<vmem>>, vector<1x16x16x4xbf16>
    %28 = vector.shape_cast %27 : vector<1x16x16x4xbf16> to vector<16x16x4xbf16>
    %29 = vector.shape_cast %28 : vector<16x16x4xbf16> to vector<256x4xbf16>
    %c4 = arith.constant 4 : index
    %c0_31 = arith.constant 0 : index
    %c0_32 = arith.constant 0 : index
    %30 = vector.load %arg3[%c4, %c0_31, %c0_32] : memref<9x4x128xbf16, #tpu.memory_space<vmem>>, vector<1x4x128xbf16>
    %31 = vector.shape_cast %30 : vector<1x4x128xbf16> to vector<4x128xbf16>
    %cst_33 = arith.constant dense<0.000000e+00> : vector<256x128xf32>
    %32 = tpu.matmul %29, %31, %cst_33 {dimension_numbers = #tpu.dot_dimension_numbers<[1], [0], [0], [1], [0, 0, 1, 1], [], []>} : vector<256x4xbf16>, vector<4x128xbf16>, vector<256x128xf32> -> vector<256x128xf32>
    %33 = arith.addf %26, %32 : vector<256x128xf32>
    %c0_34 = arith.constant 0 : index
    %c1_35 = arith.constant 1 : index
    %c2_36 = arith.constant 2 : index
    %c0_37 = arith.constant 0 : index
    %34 = vector.load %arg2[%c0_34, %c1_35, %c2_36, %c0_37] : memref<1x18x18x4xbf16, #tpu.memory_space<vmem>>, vector<1x16x16x4xbf16>
    %35 = vector.shape_cast %34 : vector<1x16x16x4xbf16> to vector<16x16x4xbf16>
    %36 = vector.shape_cast %35 : vector<16x16x4xbf16> to vector<256x4xbf16>
    %c5 = arith.constant 5 : index
    %c0_38 = arith.constant 0 : index
    %c0_39 = arith.constant 0 : index
    %37 = vector.load %arg3[%c5, %c0_38, %c0_39] : memref<9x4x128xbf16, #tpu.memory_space<vmem>>, vector<1x4x128xbf16>
    %38 = vector.shape_cast %37 : vector<1x4x128xbf16> to vector<4x128xbf16>
    %cst_40 = arith.constant dense<0.000000e+00> : vector<256x128xf32>
    %39 = tpu.matmul %36, %38, %cst_40 {dimension_numbers = #tpu.dot_dimension_numbers<[1], [0], [0], [1], [0, 0, 1, 1], [], []>} : vector<256x4xbf16>, vector<4x128xbf16>, vector<256x128xf32> -> vector<256x128xf32>
    %40 = arith.addf %33, %39 : vector<256x128xf32>
    %c0_41 = arith.constant 0 : index
    %c2_42 = arith.constant 2 : index
    %c0_43 = arith.constant 0 : index
    %c0_44 = arith.constant 0 : index
    %41 = vector.load %arg2[%c0_41, %c2_42, %c0_43, %c0_44] : memref<1x18x18x4xbf16, #tpu.memory_space<vmem>>, vector<1x16x16x4xbf16>
    %42 = vector.shape_cast %41 : vector<1x16x16x4xbf16> to vector<16x16x4xbf16>
    %43 = vector.shape_cast %42 : vector<16x16x4xbf16> to vector<256x4xbf16>
    %c6 = arith.constant 6 : index
    %c0_45 = arith.constant 0 : index
    %c0_46 = arith.constant 0 : index
    %44 = vector.load %arg3[%c6, %c0_45, %c0_46] : memref<9x4x128xbf16, #tpu.memory_space<vmem>>, vector<1x4x128xbf16>
    %45 = vector.shape_cast %44 : vector<1x4x128xbf16> to vector<4x128xbf16>
    %cst_47 = arith.constant dense<0.000000e+00> : vector<256x128xf32>
    %46 = tpu.matmul %43, %45, %cst_47 {dimension_numbers = #tpu.dot_dimension_numbers<[1], [0], [0], [1], [0, 0, 1, 1], [], []>} : vector<256x4xbf16>, vector<4x128xbf16>, vector<256x128xf32> -> vector<256x128xf32>
    %47 = arith.addf %40, %46 : vector<256x128xf32>
    %c0_48 = arith.constant 0 : index
    %c2_49 = arith.constant 2 : index
    %c1_50 = arith.constant 1 : index
    %c0_51 = arith.constant 0 : index
    %48 = vector.load %arg2[%c0_48, %c2_49, %c1_50, %c0_51] : memref<1x18x18x4xbf16, #tpu.memory_space<vmem>>, vector<1x16x16x4xbf16>
    %49 = vector.shape_cast %48 : vector<1x16x16x4xbf16> to vector<16x16x4xbf16>
    %50 = vector.shape_cast %49 : vector<16x16x4xbf16> to vector<256x4xbf16>
    %c7 = arith.constant 7 : index
    %c0_52 = arith.constant 0 : index
    %c0_53 = arith.constant 0 : index
    %51 = vector.load %arg3[%c7, %c0_52, %c0_53] : memref<9x4x128xbf16, #tpu.memory_space<vmem>>, vector<1x4x128xbf16>
    %52 = vector.shape_cast %51 : vector<1x4x128xbf16> to vector<4x128xbf16>
    %cst_54 = arith.constant dense<0.000000e+00> : vector<256x128xf32>
    %53 = tpu.matmul %50, %52, %cst_54 {dimension_numbers = #tpu.dot_dimension_numbers<[1], [0], [0], [1], [0, 0, 1, 1], [], []>} : vector<256x4xbf16>, vector<4x128xbf16>, vector<256x128xf32> -> vector<256x128xf32>
    %54 = arith.addf %47, %53 : vector<256x128xf32>
    %c0_55 = arith.constant 0 : index
    %c2_56 = arith.constant 2 : index
    %c2_57 = arith.constant 2 : index
    %c0_58 = arith.constant 0 : index
    %55 = vector.load %arg2[%c0_55, %c2_56, %c2_57, %c0_58] : memref<1x18x18x4xbf16, #tpu.memory_space<vmem>>, vector<1x16x16x4xbf16>
    %56 = vector.shape_cast %55 : vector<1x16x16x4xbf16> to vector<16x16x4xbf16>
    %57 = vector.shape_cast %56 : vector<16x16x4xbf16> to vector<256x4xbf16>
    %c8 = arith.constant 8 : index
    %c0_59 = arith.constant 0 : index
    %c0_60 = arith.constant 0 : index
    %58 = vector.load %arg3[%c8, %c0_59, %c0_60] : memref<9x4x128xbf16, #tpu.memory_space<vmem>>, vector<1x4x128xbf16>
    %59 = vector.shape_cast %58 : vector<1x4x128xbf16> to vector<4x128xbf16>
    %cst_61 = arith.constant dense<0.000000e+00> : vector<256x128xf32>
    %60 = tpu.matmul %57, %59, %cst_61 {dimension_numbers = #tpu.dot_dimension_numbers<[1], [0], [0], [1], [0, 0, 1, 1], [], []>} : vector<256x4xbf16>, vector<4x128xbf16>, vector<256x128xf32> -> vector<256x128xf32>
    %61 = arith.addf %54, %60 : vector<256x128xf32>
    %c0_62 = arith.constant 0 : index
    %c0_63 = arith.constant 0 : index
    %62 = vector.load %arg4[%c0_62, %c0_63] : memref<1x128xf32, #tpu.memory_space<vmem>>, vector<1x128xf32>
    %63 = vector.broadcast %62 : vector<1x128xf32> to vector<256x128xf32>
    %64 = arith.addf %61, %63 : vector<256x128xf32>
    %cst_64 = arith.constant 0.000000e+00 : f32
    %65 = vector.broadcast %cst_64 : f32 to vector<256x128xf32>
    %66 = arith.subf %65, %64 : vector<256x128xf32>
    %67 = math.exp %66 : vector<256x128xf32>
    %cst_65 = arith.constant 1.000000e+00 : f32
    %68 = vector.broadcast %cst_65 : f32 to vector<256x128xf32>
    %69 = arith.addf %68, %67 : vector<256x128xf32>
    %70 = tpu.reciprocal %69 {approx = true} : vector<256x128xf32> -> vector<256x128xf32>
    %71 = arith.mulf %64, %70 : vector<256x128xf32>
    %72 = arith.truncf %71 : vector<256x128xf32> to vector<256x128xbf16>
    %c0_66 = arith.constant 0 : index
    %c0_67 = arith.constant 0 : index
    %c0_68 = arith.constant 0 : index
    %73 = vector.load %arg5[%c0_66, %c0_67, %c0_68] : memref<1x256x128xbf16, #tpu.memory_space<vmem>>, vector<1x256x128xbf16>
    %74 = vector.shape_cast %73 : vector<1x256x128xbf16> to vector<256x128xbf16>
    %75 = vector.shape_cast %72 : vector<256x128xbf16> to vector<1x256x128xbf16>
    tpu.vector_store %arg5[%c0_66, %c0_67, %c0_68], %75 {strides = array<i32>} : memref<1x256x128xbf16, #tpu.memory_space<vmem>>, vector<1x256x128xbf16>,
    return
  }
  func.func @transform_0(%arg0: i32, %arg1: i32) -> (i32, i32, i32, i32) {
    %c0_i32 = arith.constant 0 : i32
    %c0_i32_0 = arith.constant 0 : i32
    %c0_i32_1 = arith.constant 0 : i32
    %c0_i32_2 = arith.constant 0 : i32
    return %arg0, %c0_i32, %c0_i32_0, %c0_i32_1 : i32, i32, i32, i32
  }
  func.func @transform_1(%arg0: i32, %arg1: i32) -> (i32, i32, i32) {
    %c0_i32 = arith.constant 0 : i32
    %c0_i32_0 = arith.constant 0 : i32
    %c0_i32_1 = arith.constant 0 : i32
    return %c0_i32, %c0_i32_0, %arg1 : i32, i32, i32
  }
  func.func @transform_2(%arg0: i32, %arg1: i32) -> (i32, i32) {
    %c0_i32 = arith.constant 0 : i32
    %c0_i32_0 = arith.constant 0 : i32
    return %c0_i32, %arg1 : i32, i32
  }
  func.func @transform_3(%arg0: i32, %arg1: i32) -> (i32, i32, i32) {
    %c0_i32 = arith.constant 0 : i32
    %c0_i32_0 = arith.constant 0 : i32
    return %arg0, %c0_i32, %arg1 : i32, i32, i32
  }
}

</mosaic_0001>

<bundles_post_ra>
// kernel: conv_forward.1
= control target key start
LH: loop header
LB: loop body
LE: loop exit
PB: predicated region body
PF: predicated region fallthrough
CT: control target
= control target key end

     0   :  { %s7016_s12 = smov 0   ;;  %s7018_s13 = smov 0   ;;  %s8948_s0 = inlined_call_operand.vmem [shape: bf16[2,18,18,4], index: 0, kind: input, shape index: {}]   ;;  %s8949_s1 = inlined_call_operand.vmem [shape: bf16[9,4,128], index: 1, kind: input, shape index: {}]   ;;  %s8950_s2 = inlined_call_operand.vmem [shape: f32[1,128], index: 2, kind: input, shape index: {}]   ;;  %s8951_s3 = inlined_call_operand.vmem [shape: bf16[2,256,128], index: 3, kind: output, shape index: {}]  }
   0x1   :  { %s7020_s14 = smov 0  }
   0x2 LB: > { %s25_s15 = sadd.s32 1, %s6990_s13  ;;  %p5284_p0 = scmp.ge.s32.totalorder %s6994_s14, 1  ;;  %s6994_s14 = sphi %s7020_s14, %s13_s14   ;;  %s6990_s13 = sphi %s7018_s13, %s9020_s13   ;;  %s6986_s12 = sphi %s7016_s12, %s9019_s12  }
   0x3   : > { %p27_p1 = scmp.ge.s32.totalorder %s25_s15, 2  ;;  %p168_p2 = scmp.lt.s32.totalorder %s6994_s14, 3 }
   0x5   : > { %s9022_s15 = smov (%p27_p1, %s25_s15), 0  ;;  %p169_p3 = pnand %p5284_p0, %p168_p2 }
   0x7   : > { %172 = sbr.rel (%p169_p3) target bundleno = 626 (0x272), region = 32 }
   0xe   : > { %v5288_v0 = vld [vmem:[%s8949_s1 + $0x2] sm:$0x3]  ;;  %vm758_vm0 = vcmask 1041408   ;;  %v5515_v1 = vld [vmem:[%s8949_s1 + $0x8] sm:$0x3]  ;;  %p202_p4 = scmp.lt.s32.totalorder %s6986_s12, 1 }
   0xf   : > { %6704 = vmatprep.subr.msk.bf16.mxu1 %vm758_vm0, %v5288_v0  ;;  %6708 = vmatprep.subr.msk.bf16.mxu0 %vm758_vm0, %v5515_v1  ;;  %v760_v2 = vsel %vm758_vm0, %v5288_v0, 0  ;;  %v7044_v3 = vsel %vm758_vm0, %v5515_v1, 0  ;;  %v255_v4 = vld [vmem:[%s8949_s1] sm:$0x3]  ;;  %v5580_v5 = vld [vmem:[%s8949_s1 + $0xa] sm:$0x3] }
  0x10   : > { %8965 = vst [vmem:[#allocation2_spill] sm:$0xff] %v7044_v3  ;;  %6141 = vmatpush3.bf16.msra.mxu1 %v760_v2  ;;  %6277 = vmatpush3.bf16.msra.mxu0 %v7044_v3  ;;  %s9024_s12 = smov (!%p202_p4, %s6986_s12), 1  ;;  %vm272_vm1 = vsmask.f32 3328  ;;  %vm273_vm2 = vsmask.f32 7440 }
  0x11   : > { %6705 = vmatprep.subr.msk.bf16.mxu1 %vm758_vm0, %v255_v4  ;;  %6710 = vmatprep.subr.msk.bf16.mxu0 %vm758_vm0, %v5580_v5  ;;  %s6714_s24 = smul.u32 216, %s9024_s12  ;;  %vm709_vm3 = vcmask 31744   ;;  %v7074_v17 = vsel %vm758_vm0, %v255_v4, 0  ;;  %v7080_v26 = vld [vmem:[%s8949_s1 + $0xc] sm:$0x3]  ;;  %vm7087_vm4 = vmor %vm272_vm1, %vm273_vm2  ;;  %v7093_v37 = vsel %vm758_vm0, %v5580_v5, 0 }
  0x12   : > { %v7097_v41 = vsel %vm758_vm0, %v7080_v26, 0  ;;  %vm1263_vm5 = vcmask 1042432   ;;  %vm1264_vm6 = vcmask 1046532   ;;  %s5859_s21 = sshll.u32 %s9024_s12, 7 }
  0x13   : > { %s7061_s27 = scalar_lea.vmem %s8948_s0, %s6714_s24  ;;  %vm7313_vm7 = vmor %vm1263_vm5, %vm1264_vm6  ;;  %s8828_s23 = scalar_lea.vmem %s8951_s3, %s5859_s21 }
  0x14   : > { %v223_v6 = vld [vmem:[%s7061_s27] sm:$0xf]  ;;  %v224_v7 = vld [vmem:[%s7061_s27 + $0x4] sm:$0xf]  ;;  %v256_v8 = vld [vmem:[%s7061_s27 + $0x8] sm:$0x1] }
  0x15   : > { %v276_v9 = vshrl.u32 %v223_v6, 16  ;;  %v279_v10 = vshll.u32 %v223_v6, 16  ;;  %v285_v11 = vshll.u32 %v224_v7, 16  ;;  %v289_v12 = vshrl.u32 %v224_v7, 16  ;;  %v5467_v13 = vld [vmem:[%s7061_s27 + $0xc] sm:$0xf] }
  0x16   : > { %v295_v14 = vshll.u32 %v256_v8, 16  ;;  %v7068_v15 = vld [vmem:[%s7061_s27 + $0x10] sm:$0xf]  ;;  %v7071_v16 = vld [vmem:[%s7061_s27 + $0x14] sm:$0x1]  ;;  %v2080_v23 = vshrl.u32 %v5467_v13, 16 }
  0x17   : > { %v278_v18 = vrot.slane %v276_v9, 4  ;;  %v281_v19 = vrot.slane %v279_v10, 5  ;;  %v287_v20 = vrot.slane %v285_v11, 5  ;;  %v291_v21 = vrot.slane %v289_v12, 4  ;;  %v225_v31 = vld [vmem:[%s7061_s27 + $0xc] sm:$0xf] }
  0x18   : > { %v297_v22 = vrot.slane %v295_v14, 5  ;;  %v2083_v24 = vshll.u32 %v5467_v13, 16  ;;  %v2089_v25 = vshll.u32 %v7068_v15, 16  ;;  %v2093_v29 = vshrl.u32 %v7068_v15, 16  ;;  %v226_v36 = vld [vmem:[%s7061_s27 + $0x10] sm:$0xf] }
  0x19   : > { %v282_v27 = vor.u32 %v281_v19, %v278_v18  ;;  %v292_v28 = vor.u32 %v291_v21, %v287_v20  ;;  %v2099_v30 = vshll.u32 %v7071_v16, 16  ;;  %v2082_v33 = vrot.slane %v2080_v23, 4  ;;  %v257_v44 = vld [vmem:[%s7061_s27 + $0x14] sm:$0x1]  ;;  %v5470_v55 = vld [vmem:[%s7061_s27 + $0x18] sm:$0xf] }
  0x1a   : > { %v2085_v34 = vrot.slane %v2083_v24, 5  ;;  %v2091_v35 = vrot.slane %v2089_v25, 5  ;;  %v2095_v40 = vrot.slane %v2093_v29, 4  ;;  %v300_v45 = vshrl.u32 %v225_v31, 16  ;;  %v7106_v60 = vld [vmem:[%s7061_s27 + $0x1c] sm:$0xf] }
  0x1b   : > { %v283_v38 = vrot.slane %v282_v27, 4  ;;  %v293_v39 = vrot.slane %v292_v28, 4  ;;  %v2101_v43 = vrot.slane %v2099_v30, 5  ;;  %v303_v46 = vshll.u32 %v225_v31, 16  ;;  %v7114_v1 = vld [vmem:[%s7061_s27 + $0x20] sm:$0x1] }
  0x1c   : > { %v2086_v42 = vor.u32 %v2085_v34, %v2082_v33  ;;  %v2096_v49 = vor.u32 %v2095_v40, %v2091_v35  ;;  %v309_v50 = vshll.u32 %v226_v36, 16  ;;  %v302_v53 = vrot.slane %v300_v45, 4  ;;  %v227_v18 = vld [vmem:[%s7061_s27 + $0x18] sm:$0xf]  ;;  %v228_v23 = vld [vmem:[%s7061_s27 + $0x1c] sm:$0xf] }
  0x1d   : > { %v288_v47 = vsel %vm7087_vm4, %v283_v38, %v287_v20  ;;  %v298_v48 = vsel %vm7087_vm4, %v293_v39, %v297_v22  ;;  %v305_v54 = vrot.slane %v303_v46, 5  ;;  %v313_v58 = vshrl.u32 %v226_v36, 16  ;;  %v258_v31 = vld [vmem:[%s7061_s27 + $0x20] sm:$0x1]  ;;  %v5473_v40 = vld [vmem:[%s7061_s27 + $0x24] sm:$0xf] }
  0x1e   : > { %v5289_v51 = vcombine.low %v288_v47, %v298_v48  ;;  %v2087_v52 = vrot.slane %v2086_v42, 4  ;;  %v2097_v56 = vrot.slane %v2096_v49, 4  ;;  %v311_v57 = vrot.slane %v309_v50, 5  ;;  %v7137_v46 = vld [vmem:[%s7061_s27 + $0x28] sm:$0xf] }
  0x1f   : > { %v319_v59 = vshll.u32 %v257_v44, 16  ;;  %v2823_v62 = vrot.slane %v7068_v15, 5  ;;  %v2826_v63 = vrot.slane %v7071_v16, 5  ;;  %v306_v0 = vor.u32 %v305_v54, %v302_v53  ;;  %v7146_v54 = vld [vmem:[%s7061_s27 + $0x2c] sm:$0x1] }
  0x20   : > { %6142 = vmatprep.mubr.msk.bf16.mxu1 %vm709_vm3, %v5289_v51  ;;  %v2092_v61 = vsel %vm7087_vm4, %v2087_v52, %v2091_v35  ;;  %v2102_v2 = vsel %vm7087_vm4, %v2097_v56, %v2101_v43  ;;  %v315_v4 = vrot.slane %v313_v58, 4  ;;  %v2104_v6 = vshrl.u32 %v5470_v55, 16  ;;  %v5369_v51 = vld [vmem:[%s8949_s1 + $0x4] sm:$0x3]  ;;  %v7346_v16 = vld [vmem:[%s7061_s27 + $0x7c] sm:$0xf] }
  0x21   : > { %v321_v5 = vrot.slane %v319_v59, 5  ;;  %v5516_v7 = vcombine.low %v2092_v61, %v2102_v2  ;;  %v307_v8 = vrot.slane %v306_v0, 4  ;;  %v2107_v9 = vshll.u32 %v5470_v55, 16  ;;  %v229_v0 = vld [vmem:[%s7061_s27 + $0x24] sm:$0xf] }
  0x22   : > { %v2113_v10 = vshll.u32 %v7106_v60, 16  ;;  %v316_v11 = vor.u32 %v315_v4, %v311_v57  ;;  %v2106_v12 = vrot.slane %v2104_v6, 4  ;;  %v2117_v13 = vshrl.u32 %v7106_v60, 16 }
  0x23   : > { %v2123_v14 = vshll.u32 %v7114_v1, 16  ;;  %6278 = vmatprep.mubr.msk.bf16.mxu0 %vm709_vm3, %v5516_v7  ;;  %v312_v19 = vsel %vm7087_vm4, %v307_v8, %v311_v57  ;;  %v2109_v20 = vrot.slane %v2107_v9, 5  ;;  %v2830_v22 = vrot.slane %v7106_v60, 5  ;;  %v230_v7 = vld [vmem:[%s7061_s27 + $0x28] sm:$0xf] }
  0x24   : > { %v2115_v21 = vrot.slane %v2113_v10, 5  ;;  %v317_v24 = vrot.slane %v316_v11, 4  ;;  %v2119_v25 = vrot.slane %v2117_v13, 4  ;;  %v2833_v28 = vrot.slane %v7114_v1, 5  ;;  %v259_v13 = vld [vmem:[%s7061_s27 + $0x2c] sm:$0x1] }
  0x25   : > { %v2125_v27 = vrot.slane %v2123_v14, 5  ;;  %v2110_v29 = vor.u32 %v2109_v20, %v2106_v12  ;;  %v7130_v30 = vrot.slane %v2830_v22, 4  ;;  %v324_v33 = vshrl.u32 %v227_v18, 16 }
  0x26   : > { %v327_v34 = vshll.u32 %v227_v18, 16  ;;  %v322_v35 = vsel %vm7087_vm4, %v317_v24, %v321_v5  ;;  %v2120_v36 = vor.u32 %v2119_v25, %v2115_v21  ;;  %v333_v38 = vshll.u32 %v228_v23, 16  ;;  %v5476_v24 = vld [vmem:[%s7061_s27 + $0x30] sm:$0xf] }
  0x27   : > { %v337_v39 = vshrl.u32 %v228_v23, 16  ;;  %v5290_v42 = vcombine.low %v312_v19, %v322_v35  ;;  %v2111_v43 = vrot.slane %v2110_v29, 4  ;;  %v326_v44 = vrot.slane %v324_v33, 4  ;;  %v7166_v33 = vld [vmem:[%s7061_s27 + $0x34] sm:$0xf] }
  0x28   : > { %v329_v45 = vrot.slane %v327_v34, 5  ;;  %v2121_v47 = vrot.slane %v2120_v36, 4  ;;  %v335_v48 = vrot.slane %v333_v38, 5  ;;  %v343_v50 = vshll.u32 %v258_v31, 16 }
  0x29   : > { %v339_v49 = vrot.slane %v337_v39, 4  ;;  %6143 = vmatmul.mubr.msk.bf16.vlgmr.msra.gmra.mrb[0].mxu1 %vm709_vm3, %v5290_v42  ;;  %v2116_v52 = vsel %vm7087_vm4, %v2111_v43, %v2115_v21  ;;  %v2128_v55 = vshrl.u32 %v5473_v40, 16  ;;  %v2131_v56 = vshll.u32 %v5473_v40, 16  ;;  %v7174_v40 = vld [vmem:[%s7061_s27 + $0x38] sm:$0x1] }
  0x2a   : > { %v330_v53 = vor.u32 %v329_v45, %v326_v44  ;;  %6175 = vmatpush3.bf16.msra.mxu1 %v7074_v17  ;;  %v2126_v57 = vsel %vm7087_vm4, %v2121_v47, %v2125_v27  ;;  %v345_v59 = vrot.slane %v343_v50, 5  ;;  %v2137_v61 = vshll.u32 %v7137_v46, 16 }
  0x2b   : > { %v340_v58 = vor.u32 %v339_v49, %v335_v48  ;;  %v5517_v2 = vcombine.low %v2116_v52, %v2126_v57  ;;  %v2130_v5 = vrot.slane %v2128_v55, 4  ;;  %v2133_v6 = vrot.slane %v2131_v56, 5  ;;  %6706 = vmatprep.subr.msk.bf16.mxu1 %vm758_vm0, %v5369_v51  ;;  %v231_v52 = vld [vmem:[%s7061_s27 + $0x30] sm:$0xf] }
  0x2c   : > { %v331_v4 = vrot.slane %v330_v53, 4  ;;  %v2139_v9 = vrot.slane %v2137_v61, 5  ;;  %v2141_v17 = vshrl.u32 %v7137_v46, 16  ;;  %v2147_v10 = vshll.u32 %v7146_v54, 16 }
  0x2d   : > { %v341_v8 = vrot.slane %v340_v58, 4  ;;  %6279 = vmatmul.mubr.msk.bf16.vlgmr.msra.gmra.mrb[0].mxu0 %vm709_vm3, %v5517_v2  ;;  %v2134_v12 = vor.u32 %v2133_v6, %v2130_v5  ;;  %v348_v14 = vshrl.u32 %v229_v0, 16  ;;  %v351_v18 = vshll.u32 %v229_v0, 16  ;;  %v232_v58 = vld [vmem:[%s7061_s27 + $0x34] sm:$0xf] }
  0x2e   : > { %v336_v11 = vsel %vm7087_vm4, %v331_v4, %v335_v48  ;;  %6311 = vmatpush3.bf16.msra.mxu0 %v7093_v37  ;;  %v2143_v20 = vrot.slane %v2141_v17, 4  ;;  %v2149_v21 = vrot.slane %v2147_v10, 5  ;;  %v357_v23 = vshll.u32 %v230_v7, 16  ;;  %v260_v4 = vld [vmem:[%s7061_s27 + $0x38] sm:$0x1] }
  0x2f   : > { %v346_v19 = vsel %vm7087_vm4, %v341_v8, %v345_v59  ;;  %v2135_v27 = vrot.slane %v2134_v12, 4  ;;  %v350_v29 = vrot.slane %v348_v14, 4  ;;  %v353_v31 = vrot.slane %v351_v18, 5  ;;  %6711 = vmatprep.subr.msk.bf16.mxu0 %vm758_vm0, %v7080_v26  ;;  %v5479_v12 = vld [vmem:[%s7061_s27 + $0x3c] sm:$0xf] }
  0x30   : > { %v5291_v25 = vcombine.low %v336_v11, %v346_v19  ;;  %v2144_v34 = vor.u32 %v2143_v20, %v2139_v9  ;;  %v359_v35 = vrot.slane %v357_v23, 5  ;;  %v361_v37 = vshrl.u32 %v230_v7, 16  ;;  %v7191_v20 = vld [vmem:[%s7061_s27 + $0x40] sm:$0xf] }
  0x31   : > { %v367_v36 = vshll.u32 %v259_v13, 16  ;;  %v2140_v38 = vsel %vm7087_vm4, %v2135_v27, %v2139_v9  ;;  %v354_v39 = vor.u32 %v353_v31, %v350_v29  ;;  %v2152_v42 = vshrl.u32 %v5476_v24, 16 }
  0x32   : > { %6146 = vmatprep.mubr.msk.bf16.mxu1 %vm709_vm3, %v5291_v25  ;;  %v2155_v43 = vshll.u32 %v5476_v24, 16  ;;  %v2145_v44 = vrot.slane %v2144_v34, 4  ;;  %v363_v45 = vrot.slane %v361_v37, 4  ;;  %v2161_v26 = vshll.u32 %v7166_v33, 16  ;;  %v7196_v34 = vld [vmem:[%s7061_s27 + $0x44] sm:$0x1] }
  0x33   : > { %v369_v47 = vrot.slane %v367_v36, 5  ;;  %v355_v48 = vrot.slane %v354_v39, 4  ;;  %v2154_v49 = vrot.slane %v2152_v42, 4  ;;  %v2165_v51 = vshrl.u32 %v7166_v33, 16  ;;  %v233_v42 = vld [vmem:[%s7061_s27 + $0x3c] sm:$0xf] }
  0x34   : > { %v2157_v50 = vrot.slane %v2155_v43, 5  ;;  %v2150_v53 = vsel %vm7087_vm4, %v2145_v44, %v2149_v21  ;;  %v364_v55 = vor.u32 %v363_v45, %v359_v35  ;;  %v2163_v56 = vrot.slane %v2161_v26, 5  ;;  %v234_v26 = vld [vmem:[%s7061_s27 + $0x40] sm:$0xf] }
  0x35   : > { %v2171_v57 = vshll.u32 %v7174_v40, 16  ;;  %v5518_v59 = vcombine.low %v2140_v38, %v2150_v53  ;;  %v360_v61 = vsel %vm7087_vm4, %v355_v48, %v359_v35  ;;  %v2167_v2 = vrot.slane %v2165_v51, 4 }
  0x36   : > { %v2158_v0 = vor.u32 %v2157_v50, %v2154_v49  ;;  %v365_v5 = vrot.slane %v364_v55, 4  ;;  %v372_v7 = vshrl.u32 %v231_v52, 16  ;;  %v375_v8 = vshll.u32 %v231_v52, 16 }
  0x37   : > { %v2173_v6 = vrot.slane %v2171_v57, 5  ;;  %6282 = vmatprep.mubr.msk.bf16.mxu0 %vm709_vm3, %v5518_v59  ;;  %v2168_v17 = vor.u32 %v2167_v2, %v2163_v56  ;;  %v381_v10 = vshll.u32 %v232_v58, 16  ;;  %v385_v11 = vshrl.u32 %v232_v58, 16  ;;  %v5482_v2 = vld [vmem:[%s7061_s27 + $0x48] sm:$0xf] }
  0x38   : > { %v2159_v9 = vrot.slane %v2158_v0, 4  ;;  %v370_v13 = vsel %vm7087_vm4, %v365_v5, %v369_v47  ;;  %v374_v14 = vrot.slane %v372_v7, 4  ;;  %v377_v18 = vrot.slane %v375_v8, 5  ;;  %v7214_v8 = vld [vmem:[%s7061_s27 + $0x4c] sm:$0xf] }
  0x39   : > { %v391_v19 = vshll.u32 %v260_v4, 16  ;;  %v5292_v21 = vcombine.low %v360_v61, %v370_v13  ;;  %v2169_v24 = vrot.slane %v2168_v17, 4  ;;  %v383_v25 = vrot.slane %v381_v10, 5  ;;  %v261_v61 = vld [vmem:[%s7061_s27 + $0x44] sm:$0x1] }
  0x3a   : > { %v2164_v23 = vsel %vm7087_vm4, %v2159_v9, %v2163_v56  ;;  %v378_v27 = vor.u32 %v377_v18, %v374_v14  ;;  %v387_v29 = vrot.slane %v385_v11, 4  ;;  %v2176_v35 = vshrl.u32 %v5479_v12, 16 }
  0x3b   : > { %v393_v31 = vrot.slane %v391_v19, 5  ;;  %6147 = vmatmul.mubr.msk.bf16.gmra.mrb[4].mxu1 %vm709_vm3, %v5292_v21  ;;  %v2174_v37 = vsel %vm7087_vm4, %v2169_v24, %v2173_v6  ;;  %v2179_v36 = vshll.u32 %v5479_v12, 16  ;;  %v2185_v38 = vshll.u32 %v7191_v20, 16 }
  0x3c   : > { %v2189_v39 = vshrl.u32 %v7191_v20, 16  ;;  %v5519_v43 = vcombine.low %v2164_v23, %v2174_v37  ;;  %v379_v44 = vrot.slane %v378_v27, 4  ;;  %v388_v45 = vor.u32 %v387_v29, %v383_v25  ;;  %v7222_v23 = vld [vmem:[%s7061_s27 + $0x50] sm:$0x1]  ;;  %v7226_v27 = vld [vmem:[%s7061_s27 + $0x48] sm:$0xf] }
  0x3d   : > { %v2178_v47 = vrot.slane %v2176_v35, 4  ;;  %v2181_v48 = vrot.slane %v2179_v36, 5  ;;  %v2187_v49 = vrot.slane %v2185_v38, 5  ;;  %v2195_v51 = vshll.u32 %v7196_v34, 16  ;;  %v7229_v36 = vld [vmem:[%s7061_s27 + $0x4c] sm:$0xf] }
  0x3e   : > { %v2191_v50 = vrot.slane %v2189_v39, 4  ;;  %6283 = vmatmul.mubr.msk.bf16.gmra.mrb[4].mxu0 %vm709_vm3, %v5519_v43  ;;  %v384_v52 = vsel %vm7087_vm4, %v379_v44, %v383_v25  ;;  %v389_v53 = vrot.slane %v388_v45, 4  ;;  %v396_v55 = vshrl.u32 %v233_v42, 16 }
  0x3f   : > { %v399_v56 = vshll.u32 %v233_v42, 16  ;;  %v2182_v57 = vor.u32 %v2181_v48, %v2178_v47  ;;  %v2197_v59 = vrot.slane %v2195_v51, 5  ;;  %v405_v0 = vshll.u32 %v234_v26, 16 }
  0x40   : > { %v2192_v58 = vor.u32 %v2191_v50, %v2187_v49  ;;  %v394_v4 = vsel %vm7087_vm4, %v389_v53, %v393_v31  ;;  %v398_v5 = vrot.slane %v396_v55, 4  ;;  %v409_v7 = vshrl.u32 %v234_v26, 16  ;;  %v262_v26 = vld [vmem:[%s7061_s27 + $0x50] sm:$0x1]  ;;  %v5485_v53 = vld [vmem:[%s7061_s27 + $0x54] sm:$0xf] }
  0x41   : > { %v401_v6 = vrot.slane %v399_v56, 5  ;;  %v5293_v9 = vcombine.low %v384_v52, %v394_v4  ;;  %v2183_v17 = vrot.slane %v2182_v57, 4  ;;  %v407_v11 = vrot.slane %v405_v0, 5  ;;  %v7245_v4 = vld [vmem:[%s7061_s27 + $0x58] sm:$0xf] }
  0x42   : > { %v2193_v10 = vrot.slane %v2192_v58, 4  ;;  %v411_v13 = vrot.slane %v409_v7, 4  ;;  %v415_v14 = vshll.u32 %v261_v61, 16  ;;  %v2200_v18 = vshrl.u32 %v5482_v2, 16 }
  0x43   : > { %v402_v12 = vor.u32 %v401_v6, %v398_v5  ;;  %6150 = vmatprep.mubr.msk.bf16.mxu1 %vm709_vm3, %v5293_v9  ;;  %v2188_v19 = vsel %vm7087_vm4, %v2183_v17, %v2187_v49  ;;  %v2203_v24 = vshll.u32 %v5482_v2, 16  ;;  %v2209_v25 = vshll.u32 %v7214_v8, 16 }
  0x44   : > { %v2198_v21 = vsel %vm7087_vm4, %v2193_v10, %v2197_v59  ;;  %v412_v35 = vor.u32 %v411_v13, %v407_v11  ;;  %v417_v37 = vrot.slane %v415_v14, 5  ;;  %v2202_v38 = vrot.slane %v2200_v18, 4 }
  0x45   : > { %v5520_v29 = vcombine.low %v2188_v19, %v2198_v21  ;;  %v403_v31 = vrot.slane %v402_v12, 4  ;;  %v2205_v39 = vrot.slane %v2203_v24, 5  ;;  %v2211_v42 = vrot.slane %v2209_v25, 5  ;;  %v7251_v12 = vld [vmem:[%s7061_s27 + $0x5c] sm:$0x1] }
  0x46   : > { %v2213_v43 = vshrl.u32 %v7214_v8, 16  ;;  %v413_v45 = vrot.slane %v412_v35, 4  ;;  %v2219_v47 = vshll.u32 %v7222_v23, 16  ;;  %v420_v48 = vshrl.u32 %v7226_v27, 16  ;;  %v7255_v24 = vld [vmem:[%s7061_s27 + $0x54] sm:$0xf] }
  0x47   : > { %6286 = vmatprep.mubr.msk.bf16.mxu0 %vm709_vm3, %v5520_v29  ;;  %v408_v44 = vsel %vm7087_vm4, %v403_v31, %v407_v11  ;;  %v2206_v49 = vor.u32 %v2205_v39, %v2202_v38  ;;  %v423_v51 = vshll.u32 %v7226_v27, 16  ;;  %v429_v52 = vshll.u32 %v7229_v36, 16 }
  0x48   : > { %v2215_v50 = vrot.slane %v2213_v43, 4  ;;  %v418_v55 = vsel %vm7087_vm4, %v413_v45, %v417_v37  ;;  %v2221_v56 = vrot.slane %v2219_v47, 5  ;;  %v422_v57 = vrot.slane %v420_v48, 4  ;;  %v7261_v37 = vld [vmem:[%s7061_s27 + $0x58] sm:$0xf] }
  0x49   : > { %v433_v58 = vshrl.u32 %v7229_v36, 16  ;;  %v5294_v59 = vcombine.low %v408_v44, %v418_v55  ;;  %v2207_v61 = vrot.slane %v2206_v49, 4  ;;  %v425_v2 = vrot.slane %v423_v51, 5 }
  0x4a   : > { %v2216_v0 = vor.u32 %v2215_v50, %v2211_v42  ;;  %v431_v5 = vrot.slane %v429_v52, 5  ;;  %v439_v7 = vshll.u32 %v262_v26, 16  ;;  %v2224_v9 = vshrl.u32 %v5485_v53, 16  ;;  %v263_v26 = vld [vmem:[%s7061_s27 + $0x5c] sm:$0x1] }
  0x4b   : > { %v435_v6 = vrot.slane %v433_v58, 4  ;;  %6151 = vmatmul.mubr.msk.bf16.gmra.mrb[8].mxu1 %vm709_vm3, %v5294_v59  ;;  %v2212_v17 = vsel %vm7087_vm4, %v2207_v61, %v2211_v42  ;;  %v426_v11 = vor.u32 %v425_v2, %v422_v57  ;;  %v2227_v13 = vshll.u32 %v5485_v53, 16  ;;  %v5488_v53 = vld [vmem:[%s7061_s27 + $0x60] sm:$0xf]  ;;  %v7275_v59 = vld [vmem:[%s7061_s27 + $0x64] sm:$0xf] }
  0x4c   : > { %v2217_v10 = vrot.slane %v2216_v0, 4  ;;  %v441_v18 = vrot.slane %v439_v7, 5  ;;  %v2226_v19 = vrot.slane %v2224_v9, 4  ;;  %v2233_v21 = vshll.u32 %v7245_v4, 16  ;;  %v7282_v9 = vld [vmem:[%s7061_s27 + $0x68] sm:$0x1] }
  0x4d   : > { %v436_v14 = vor.u32 %v435_v6, %v431_v5  ;;  %v427_v29 = vrot.slane %v426_v11, 4  ;;  %v2229_v31 = vrot.slane %v2227_v13, 5  ;;  %v2237_v35 = vshrl.u32 %v7245_v4, 16 }
  0x4e   : > { %v2222_v25 = vsel %vm7087_vm4, %v2217_v10, %v2221_v56  ;;  %v2235_v42 = vrot.slane %v2233_v21, 5  ;;  %v2243_v43 = vshll.u32 %v7251_v12, 16  ;;  %v444_v48 = vshrl.u32 %v7255_v24, 16 }
  0x4f   : > { %v5521_v38 = vcombine.low %v2212_v17, %v2222_v25  ;;  %v437_v39 = vrot.slane %v436_v14, 4  ;;  %v432_v44 = vsel %vm7087_vm4, %v427_v29, %v431_v5  ;;  %v2230_v45 = vor.u32 %v2229_v31, %v2226_v19  ;;  %v7286_v19 = vld [vmem:[%s7061_s27 + $0x60] sm:$0xf] }
  0x50   : > { %v2239_v47 = vrot.slane %v2237_v35, 4  ;;  %v2245_v50 = vrot.slane %v2243_v43, 5  ;;  %v447_v51 = vshll.u32 %v7255_v24, 16  ;;  %v453_v52 = vshll.u32 %v7261_v37, 16  ;;  %v7292_v35 = vld [vmem:[%s7061_s27 + $0x64] sm:$0xf] }
  0x51   : > { %6287 = vmatmul.mubr.msk.bf16.gmra.mrb[8].mxu0 %vm709_vm3, %v5521_v38  ;;  %v442_v49 = vsel %vm7087_vm4, %v437_v39, %v441_v18  ;;  %v2231_v56 = vrot.slane %v2230_v45, 4  ;;  %v446_v58 = vrot.slane %v444_v48, 4  ;;  %v457_v2 = vshrl.u32 %v7261_v37, 16 }
  0x52   : > { %v5295_v55 = vcombine.low %v432_v44, %v442_v49  ;;  %v2240_v57 = vor.u32 %v2239_v47, %v2235_v42  ;;  %v449_v61 = vrot.slane %v447_v51, 5  ;;  %v455_v0 = vrot.slane %v453_v52, 5 }
  0x53   : > { %v463_v5 = vshll.u32 %v263_v26, 16  ;;  %v2236_v6 = vsel %vm7087_vm4, %v2231_v56, %v2235_v42  ;;  %v2248_v17 = vshrl.u32 %v5488_v53, 16  ;;  %v2251_v10 = vshll.u32 %v5488_v53, 16 }
  0x54   : > { %6154 = vmatprep.mubr.msk.bf16.mxu1 %vm709_vm3, %v5295_v55  ;;  %v2241_v7 = vrot.slane %v2240_v57, 4  ;;  %v450_v11 = vor.u32 %v449_v61, %v446_v58  ;;  %v459_v13 = vrot.slane %v457_v2, 4  ;;  %v2257_v18 = vshll.u32 %v7275_v59, 16  ;;  %v5548_v58 = vld [vmem:[%s7061_s27 + $0xc] sm:$0xe] }
  0x55   : > { %v465_v14 = vrot.slane %v463_v5, 5  ;;  %v2250_v25 = vrot.slane %v2248_v17, 4  ;;  %v2253_v29 = vrot.slane %v2251_v10, 5  ;;  %v2261_v31 = vshrl.u32 %v7275_v59, 16 }
  0x56   : > { %v2246_v21 = vsel %vm7087_vm4, %v2241_v7, %v2245_v50  ;;  %v451_v39 = vrot.slane %v450_v11, 4  ;;  %v460_v42 = vor.u32 %v459_v13, %v455_v0  ;;  %v2259_v43 = vrot.slane %v2257_v18, 5  ;;  %v264_v50 = vld [vmem:[%s7061_s27 + $0x68] sm:$0x1] }
  0x57   : > { %v5522_v38 = vcombine.low %v2236_v6, %v2246_v21  ;;  %v2254_v44 = vor.u32 %v2253_v29, %v2250_v25  ;;  %v2263_v45 = vrot.slane %v2261_v31, 4  ;;  %v2267_v47 = vshll.u32 %v7282_v9, 16  ;;  %v7320_v29 = vld [vmem:[%s7061_s27 + $0x70] sm:$0xf] }
  0x58   : > { %v468_v26 = vshrl.u32 %v7286_v19, 16  ;;  %v456_v48 = vsel %vm7087_vm4, %v451_v39, %v455_v0  ;;  %v461_v49 = vrot.slane %v460_v42, 4  ;;  %v471_v51 = vshll.u32 %v7286_v19, 16  ;;  %v7307_v0 = vld [vmem:[%s7061_s27 + $0x6c] sm:$0xf] }
  0x59   : > { %6290 = vmatprep.mubr.msk.bf16.mxu0 %vm709_vm3, %v5522_v38  ;;  %v477_v52 = vshll.u32 %v7292_v35, 16  ;;  %v2255_v53 = vrot.slane %v2254_v44, 4  ;;  %v2264_v55 = vor.u32 %v2263_v45, %v2259_v43  ;;  %v2269_v56 = vrot.slane %v2267_v47, 5 }
  0x5a   : > { %v470_v57 = vrot.slane %v468_v26, 4  ;;  %v466_v61 = vsel %vm7087_vm4, %v461_v49, %v465_v14  ;;  %v473_v2 = vrot.slane %v471_v51, 5  ;;  %v481_v6 = vshrl.u32 %v7292_v35, 16  ;;  %v265_v26 = vld [vmem:[%s7061_s27 + $0x74] sm:$0x1] }
  0x5b   : > { %v479_v5 = vrot.slane %v477_v52, 5  ;;  %v5296_v7 = vcombine.low %v456_v48, %v466_v61  ;;  %v2260_v17 = vsel %vm7087_vm4, %v2255_v53, %v2259_v43  ;;  %v2265_v10 = vrot.slane %v2264_v55, 4  ;;  %v5549_v48 = vld [vmem:[%s7061_s27 + $0x18] sm:$0xe] }
  0x5c   : > { %v487_v11 = vshll.u32 %v264_v50, 16  ;;  %v474_v14 = vor.u32 %v473_v2, %v470_v57  ;;  %v483_v18 = vrot.slane %v481_v6, 4  ;;  %v5564_v21 = vrot.slane %v5548_v58, 9  ;;  %v7339_v53 = vld [vmem:[%s7061_s27 + $0x78] sm:$0xf] }
  0x5d   : > { %v2825_v25 = vrot.slane %v2823_v62, 4  ;;  %6155 = vmatmul.mubr.msk.bf16.gmra.mrb[12].mxu1 %vm709_vm3, %v5296_v7  ;;  %v2270_v31 = vsel %vm7087_vm4, %v2265_v10, %v2269_v56  ;;  %v492_v39 = vshrl.u32 %v7307_v0, 16  ;;  %v495_v42 = vshll.u32 %v7307_v0, 16  ;;  %v266_v57 = vld [vmem:[%s7061_s27 + $0x80] sm:$0x1] }
  0x5e   : > { %v489_v38 = vrot.slane %v487_v11, 5  ;;  %v5523_v43 = vcombine.low %v2260_v17, %v2270_v31  ;;  %v475_v44 = vrot.slane %v474_v14, 4  ;;  %v484_v45 = vor.u32 %v483_v18, %v479_v5  ;;  %v5550_v10 = vld [vmem:[%s7061_s27 + $0x24] sm:$0xe] }
  0x5f   : > { %v2824_v47 = vsel %vm7313_vm7, %v5564_v21, %v2823_v62  ;;  %v2827_v49 = vsel %vm7313_vm7, %v2825_v25, %v2826_v63  ;;  %v494_v50 = vrot.slane %v492_v39, 4  ;;  %v497_v51 = vrot.slane %v495_v42, 5  ;;  %v7365_v39 = vld [vmem:[%s7061_s27 + $0x84] sm:$0xf] }
  0x60   : > { %v501_v52 = vshll.u32 %v7320_v29, 16  ;;  %6291 = vmatmul.mubr.msk.bf16.gmra.mrb[12].mxu0 %vm709_vm3, %v5523_v43  ;;  %v480_v15 = vsel %vm7087_vm4, %v475_v44, %v479_v5  ;;  %v485_v62 = vrot.slane %v484_v45, 4  ;;  %v5581_v55 = vcombine.low %v2824_v47, %v2827_v49  ;;  %v7373_v43 = vld [vmem:[%s7061_s27 + $0x88] sm:$0xf] }
  0x61   : > { %v505_v56 = vshrl.u32 %v7320_v29, 16  ;;  %v498_v63 = vor.u32 %v497_v51, %v494_v50  ;;  %v511_v61 = vshll.u32 %v265_v26, 16  ;;  %v5565_v2 = vrot.slane %v5549_v48, 9 }
  0x62   : > { %v503_v58 = vrot.slane %v501_v52, 5  ;;  %v490_v6 = vsel %vm7087_vm4, %v485_v62, %v489_v38  ;;  %6312 = vmatprep.mubr.msk.bf16.mxu0 %vm709_vm3, %v5581_v55  ;;  %v2834_v5 = vsel %vm7313_vm7, %v7130_v30, %v2833_v28  ;;  %v516_v17 = vshrl.u32 %v7339_v53, 16  ;;  %v267_v52 = vld [vmem:[%s7061_s27 + $0x8c] sm:$0x1] }
  0x63   : > { %v507_v7 = vrot.slane %v505_v56, 4  ;;  %v5297_v11 = vcombine.low %v480_v15, %v490_v6  ;;  %v499_v14 = vrot.slane %v498_v63, 4  ;;  %v513_v18 = vrot.slane %v511_v61, 5 }
  0x64   : > { %v2831_v21 = vsel %vm7313_vm7, %v5565_v2, %v2830_v22  ;;  %v518_v38 = vrot.slane %v516_v17, 4  ;;  %v519_v1 = vshll.u32 %v7339_v53, 16  ;;  %v525_v30 = vshll.u32 %v7346_v16, 16  ;;  %v7378_v22 = vld [vmem:[%s8949_s1 + $0xe] sm:$0x3] }
  0x65   : > { %v508_v25 = vor.u32 %v507_v7, %v503_v58  ;;  %v5582_v31 = vcombine.low %v2831_v21, %v2834_v5  ;;  %6158 = vmatprep.mubr.msk.bf16.mxu1 %vm709_vm3, %v5297_v11  ;;  %v504_v28 = vsel %vm7087_vm4, %v499_v14, %v503_v58  ;;  %v529_v60 = vshrl.u32 %v7346_v16, 16  ;;  %v7397_v5 = vld [vmem:[%s7061_s27 + $0x90] sm:$0xf] }
  0x66   : > { %v535_v42 = vshll.u32 %v266_v57, 16  ;;  %v521_v45 = vrot.slane %v519_v1, 5  ;;  %v5566_v47 = vrot.slane %v5550_v10, 9  ;;  %v2837_v26 = vrot.slane %v7137_v46, 5  ;;  %v5551_v57 = vld [vmem:[%s7061_s27 + $0x30] sm:$0xe] }
  0x67   : > { %v509_v44 = vrot.slane %v508_v25, 4  ;;  %v527_v48 = vrot.slane %v525_v30, 5  ;;  %v531_v49 = vrot.slane %v529_v60, 4  ;;  %v2840_v51 = vrot.slane %v7146_v54, 5  ;;  %v7409_v30 = vld [vmem:[%s7061_s27 + $0x94] sm:$0xf] }
  0x68   : > { %v537_v50 = vrot.slane %v535_v42, 5  ;;  %6313 = vmatmul.mubr.msk.bf16.vlgmr.msra.gmra.mrb[0].mxu0 %vm709_vm3, %v5582_v31  ;;  %v522_v62 = vor.u32 %v521_v45, %v518_v38  ;;  %v2838_v55 = vsel %vm7313_vm7, %v5566_v47, %v2837_v26  ;;  %v2839_v56 = vrot.slane %v2837_v26, 4  ;;  %v268_v60 = vld [vmem:[%s7061_s27 + $0x98] sm:$0x1]  ;;  %v5552_v26 = vld [vmem:[%s7061_s27 + $0x3c] sm:$0xe] }
  0x69   : > { %v514_v15 = vsel %vm7087_vm4, %v509_v44, %v513_v18  ;;  %6345 = vmatpush3.bf16.msra.mxu0 %v7097_v41  ;;  %v532_v46 = vor.u32 %v531_v49, %v527_v48  ;;  %v540_v58 = vshrl.u32 %v7365_v39, 16  ;;  %v543_v54 = vshll.u32 %v7365_v39, 16 }
  0x6a   : > { %v5298_v63 = vcombine.low %v504_v28, %v514_v15  ;;  %v523_v61 = vrot.slane %v522_v62, 4  ;;  %v2841_v2 = vsel %vm7313_vm7, %v2839_v56, %v2840_v51  ;;  %v549_v6 = vshll.u32 %v7373_v43, 16  ;;  %6712 = vmatprep.subr.msk.bf16.mxu0 %vm758_vm0, %v7378_v22 }
  0x6b   : > { %v553_v7 = vshrl.u32 %v7373_v43, 16  ;;  %v533_v41 = vrot.slane %v532_v46, 4  ;;  %v5583_v17 = vcombine.low %v2838_v55, %v2841_v2  ;;  %v542_v10 = vrot.slane %v540_v58, 4  ;;  %v7429_v46 = vld [vmem:[%s7061_s27 + $0xa0] sm:$0xf] }
  0x6c   : > { %6159 = vmatmul.mubr.msk.bf16.gmra.mrb[16].mxu1 %vm709_vm3, %v5298_v63  ;;  %v545_v11 = vrot.slane %v543_v54, 5  ;;  %v528_v14 = vsel %vm7087_vm4, %v523_v61, %v527_v48  ;;  %v551_v18 = vrot.slane %v549_v6, 5  ;;  %v559_v25 = vshll.u32 %v267_v52, 16  ;;  %v7418_v52 = vld [vmem:[%s7061_s27 + $0x9c] sm:$0xf] }
  0x6d   : > { %v555_v21 = vrot.slane %v553_v7, 4  ;;  %v538_v31 = vsel %vm7087_vm4, %v533_v41, %v537_v50  ;;  %6316 = vmatprep.mubr.msk.bf16.mxu0 %vm709_vm3, %v5583_v17  ;;  %v5567_v1 = vrot.slane %v5551_v57, 9  ;;  %v2844_v28 = vrot.slane %v7166_v33, 5 }
  0x6e   : > { %v546_v38 = vor.u32 %v545_v11, %v542_v10  ;;  %v5299_v42 = vcombine.low %v528_v14, %v538_v31  ;;  %v561_v45 = vrot.slane %v559_v25, 5  ;;  %v2847_v47 = vrot.slane %v7174_v40, 5  ;;  %v269_v10 = vld [vmem:[%s7061_s27 + $0xa4] sm:$0x1]  ;;  %v5553_v11 = vld [vmem:[%s7061_s27 + $0x48] sm:$0xe] }
  0x6f   : > { %v556_v44 = vor.u32 %v555_v21, %v551_v18  ;;  %v2845_v49 = vsel %vm7313_vm7, %v5567_v1, %v2844_v28  ;;  %v2846_v50 = vrot.slane %v2844_v28, 4  ;;  %v564_v51 = vshrl.u32 %v7397_v5, 16 }
  0x70   : > { %v547_v48 = vrot.slane %v546_v38, 4  ;;  %6162 = vmatprep.mubr.msk.bf16.mxu1 %vm709_vm3, %v5299_v42  ;;  %v567_v15 = vshll.u32 %v7397_v5, 16  ;;  %v573_v62 = vshll.u32 %v7409_v30, 16  ;;  %v577_v40 = vshrl.u32 %v7409_v30, 16 }
  0x71   : > { %v557_v33 = vrot.slane %v556_v44, 4  ;;  %v2848_v56 = vsel %vm7313_vm7, %v2846_v50, %v2847_v47  ;;  %v566_v57 = vrot.slane %v564_v51, 4  ;;  %v583_v63 = vshll.u32 %v268_v60, 16 }
  0x72   : > { %v552_v55 = vsel %vm7087_vm4, %v547_v48, %v551_v18  ;;  %v5584_v54 = vcombine.low %v2845_v49, %v2848_v56  ;;  %v569_v61 = vrot.slane %v567_v15, 5  ;;  %v575_v2 = vrot.slane %v573_v62, 5  ;;  %v7455_v56 = vld [vmem:[%s7061_s27 + $0xac] sm:$0xf] }
  0x73   : > { %v562_v58 = vsel %vm7087_vm4, %v557_v33, %v561_v45  ;;  %v579_v7 = vrot.slane %v577_v40, 4  ;;  %v585_v41 = vrot.slane %v583_v63, 5  ;;  %v5568_v17 = vrot.slane %v5552_v26, 9  ;;  %v7450_v33 = vld [vmem:[%s7061_s27 + $0xa8] sm:$0xf] }
  0x74   : > { %v5300_v6 = vcombine.low %v552_v55, %v562_v58  ;;  %6317 = vmatmul.mubr.msk.bf16.gmra.mrb[4].mxu0 %vm709_vm3, %v5584_v54  ;;  %v570_v14 = vor.u32 %v569_v61, %v566_v57  ;;  %v2851_v18 = vrot.slane %v7191_v20, 5  ;;  %v2854_v21 = vrot.slane %v7196_v34, 5  ;;  %v270_v61 = vld [vmem:[%s7061_s27 + $0xb0] sm:$0x1] }
  0x75   : > { %v588_v25 = vshrl.u32 %v7418_v52, 16  ;;  %v580_v31 = vor.u32 %v579_v7, %v575_v2  ;;  %v591_v38 = vshll.u32 %v7418_v52, 16  ;;  %v597_v1 = vshll.u32 %v7429_v46, 16 }
  0x76   : > { %6163 = vmatmul.mubr.msk.bf16.gmra.mrb[20].mxu1 %vm709_vm3, %v5300_v6  ;;  %v601_v28 = vshrl.u32 %v7429_v46, 16  ;;  %v571_v60 = vrot.slane %v570_v14, 4  ;;  %v2852_v42 = vsel %vm7313_vm7, %v5568_v17, %v2851_v18  ;;  %v2853_v20 = vrot.slane %v2851_v18, 4  ;;  %v7470_v14 = vld [vmem:[%s7061_s27 + $0xb4] sm:$0xf] }
  0x77   : > { %v590_v44 = vrot.slane %v588_v25, 4  ;;  %v581_v34 = vrot.slane %v580_v31, 4  ;;  %v593_v45 = vrot.slane %v591_v38, 5  ;;  %v599_v47 = vrot.slane %v597_v1, 5 }
  0x78   : > { %v603_v26 = vrot.slane %v601_v28, 4  ;;  %v576_v48 = vsel %vm7087_vm4, %v571_v60, %v575_v2  ;;  %v2855_v49 = vsel %vm7313_vm7, %v2853_v20, %v2854_v21  ;;  %v607_v50 = vshll.u32 %v269_v10, 16  ;;  %v5554_v2 = vld [vmem:[%s7061_s27 + $0x54] sm:$0xe] }
  0x79   : > { %v5569_v51 = vrot.slane %v5553_v11, 9  ;;  %v586_v15 = vsel %vm7087_vm4, %v581_v34, %v585_v41  ;;  %v5585_v62 = vcombine.low %v2852_v42, %v2855_v49  ;;  %v594_v40 = vor.u32 %v593_v45, %v590_v44  ;;  %v7479_v42 = vld [vmem:[%s7061_s27 + $0xb8] sm:$0xf]  ;;  %v271_v49 = vld [vmem:[%s7061_s27 + $0xbc] sm:$0x1] }
  0x7a   : > { %v604_v55 = vor.u32 %v603_v26, %v599_v47  ;;  %v5301_v57 = vcombine.low %v576_v48, %v586_v15  ;;  %v609_v63 = vrot.slane %v607_v50, 5  ;;  %v2858_v58 = vrot.slane %v7214_v8, 5 }
  0x7b   : > { %v2861_v54 = vrot.slane %v7222_v23, 5  ;;  %6320 = vmatprep.mubr.msk.bf16.mxu0 %vm709_vm3, %v5585_v62  ;;  %v595_v6 = vrot.slane %v594_v40, 4  ;;  %v612_v41 = vshrl.u32 %v7450_v33, 16  ;;  %v615_v17 = vshll.u32 %v7450_v33, 16 }
  0x7c   : > { %v605_v7 = vrot.slane %v604_v55, 4  ;;  %6166 = vmatprep.mubr.msk.bf16.mxu1 %vm709_vm3, %v5301_v57  ;;  %v2859_v10 = vsel %vm7313_vm7, %v5569_v51, %v2858_v58  ;;  %v2860_v11 = vrot.slane %v2858_v58, 4  ;;  %v621_v8 = vshll.u32 %v7455_v56, 16  ;;  %v5555_v55 = vld [vmem:[%s7061_s27 + $0x60] sm:$0xe] }
  0x7d   : > { %v625_v23 = vshrl.u32 %v7455_v56, 16  ;;  %v600_v18 = vsel %vm7087_vm4, %v595_v6, %v599_v47  ;;  %v614_v25 = vrot.slane %v612_v41, 4  ;;  %v617_v31 = vrot.slane %v615_v17, 5  ;;  %v5556_v6 = vld [vmem:[%s7061_s27 + $0x6c] sm:$0xe] }
  0x7e   : > { %v610_v21 = vsel %vm7087_vm4, %v605_v7, %v609_v63  ;;  %v2862_v1 = vsel %vm7313_vm7, %v2860_v11, %v2861_v54  ;;  %v623_v28 = vrot.slane %v621_v8, 5  ;;  %v631_v34 = vshll.u32 %v270_v61, 16  ;;  %v5492_v11 = vld [vmem:[%s7061_s27 + $0x70] sm:$0xf]  ;;  %v5493_v8 = vld [vmem:[%s7061_s27 + $0x74] sm:$0x1] }
  0x7f   : > { %v5302_v38 = vcombine.low %v600_v18, %v610_v21  ;;  %v627_v60 = vrot.slane %v625_v23, 4  ;;  %v5586_v20 = vcombine.low %v2859_v10, %v2862_v1  ;;  %v618_v44 = vor.u32 %v617_v31, %v614_v25 }
  0x80   : > { %v5570_v45 = vrot.slane %v5554_v2, 9  ;;  %v2865_v26 = vrot.slane %v7245_v4, 5  ;;  %v2868_v48 = vrot.slane %v7251_v12, 5  ;;  %v636_v50 = vshrl.u32 %v7470_v14, 16 }
  0x81   : > { %6167 = vmatmul.mubr.msk.bf16.gmra.mrb[24].mxu1 %vm709_vm3, %v5302_v38  ;;  %v628_v47 = vor.u32 %v627_v60, %v623_v28  ;;  %6321 = vmatmul.mubr.msk.bf16.gmra.mrb[8].mxu0 %vm709_vm3, %v5586_v20  ;;  %v619_v51 = vrot.slane %v618_v44, 4  ;;  %v633_v15 = vrot.slane %v631_v34, 5  ;;  %v639_v62 = vshll.u32 %v7470_v14, 16 }
  0x82   : > { %v645_v40 = vshll.u32 %v7479_v42, 16  ;;  %v2866_v4 = vsel %vm7313_vm7, %v5570_v45, %v2865_v26  ;;  %v2867_v12 = vrot.slane %v2865_v26, 4  ;;  %v638_v63 = vrot.slane %v636_v50, 4 }
  0x83   : > { %v629_v57 = vrot.slane %v628_v47, 4  ;;  %v624_v58 = vsel %vm7087_vm4, %v619_v51, %v623_v28  ;;  %v641_v54 = vrot.slane %v639_v62, 5  ;;  %v649_v2 = vshrl.u32 %v7479_v42, 16  ;;  %v5557_v47 = vld [vmem:[%s7061_s27 + $0x78] sm:$0xe] }
  0x84   : > { %v647_v61 = vrot.slane %v645_v40, 5  ;;  %v2869_v41 = vsel %vm7313_vm7, %v2867_v12, %v2868_v48  ;;  %v655_v17 = vshll.u32 %v271_v49, 16  ;;  %v5571_v10 = vrot.slane %v5555_v55, 9  ;;  %v6915_v51 = vld [vmem:[%s7061_s27] sm:$0xf] }
  0x85   : > { %v634_v7 = vsel %vm7087_vm4, %v629_v57, %v633_v15  ;;  %v5587_v18 = vcombine.low %v2866_v4, %v2869_v41  ;;  %v642_v21 = vor.u32 %v641_v54, %v638_v63  ;;  %v651_v25 = vrot.slane %v649_v2, 4  ;;  %v7517_v15 = vld [vmem:[%s7061_s27 + $0x4] sm:$0xf]  ;;  %v7521_v40 = vld [vmem:[%s7061_s27 + $0x7c] sm:$0xf] }
  0x86   : > { %v5303_v23 = vcombine.low %v624_v58, %v634_v7  ;;  %v657_v31 = vrot.slane %v655_v17, 5  ;;  %v2872_v38 = vrot.slane %v7275_v59, 5  ;;  %v2875_v1 = vrot.slane %v7282_v9, 5  ;;  %v7524_v55 = vld [vmem:[%s7061_s27 + $0x80] sm:$0x1] }
  0x87   : > { %v5572_v28 = vrot.slane %v5556_v6, 9  ;;  %6324 = vmatprep.mubr.msk.bf16.mxu0 %vm709_vm3, %v5587_v18  ;;  %v643_v60 = vrot.slane %v642_v21, 4  ;;  %v652_v20 = vor.u32 %v651_v25, %v647_v61  ;;  %v2879_v44 = vrot.slane %v5492_v11, 5  ;;  %v5498_v57 = vld [vmem:[%s7061_s27 + $0x88] sm:$0xf] }
  0x88   : > { %6170 = vmatprep.mubr.msk.bf16.mxu1 %vm709_vm3, %v5303_v23  ;;  %v2882_v34 = vrot.slane %v5493_v8, 5  ;;  %v2873_v45 = vsel %vm7313_vm7, %v5571_v10, %v2872_v38  ;;  %v2874_v59 = vrot.slane %v2872_v38, 4  ;;  %v5321_v62 = vcombine.low %v6915_v51, %v7517_v15  ;;  %v5499_v54 = vld [vmem:[%s7061_s27 + $0x8c] sm:$0x1]  ;;  %v5501_v17 = vld [vmem:[%s7061_s27 + $0x94] sm:$0xf] }
  0x89   : > { %v648_v9 = vsel %vm7087_vm4, %v643_v60, %v647_v61  ;;  %v653_v26 = vrot.slane %v652_v20, 4  ;;  %v2880_v48 = vsel %vm7313_vm7, %v5572_v28, %v2879_v44  ;;  %v2881_v49 = vrot.slane %v2879_v44, 4  ;;  %v5558_v61 = vld [vmem:[%s7061_s27 + $0x84] sm:$0xe]  ;;  %v5559_v23 = vld [vmem:[%s7061_s27 + $0x90] sm:$0xe] }
  0x8a   : > { %v2876_v50 = vsel %vm7313_vm7, %v2874_v59, %v2875_v1  ;;  %v5573_v58 = vrot.slane %v5557_v47, 9  ;;  %v2886_v7 = vrot.slane %v7521_v40, 5  ;;  %v2889_v41 = vrot.slane %v7524_v55, 5  ;;  %v5502_v25 = vld [vmem:[%s7061_s27 + $0x98] sm:$0x1] }
  0x8b   : > { %v658_v4 = vsel %vm7087_vm4, %v653_v26, %v657_v31  ;;  %v5588_v12 = vcombine.low %v2873_v45, %v2876_v50  ;;  %v2883_v63 = vsel %vm7313_vm7, %v2881_v49, %v2882_v34  ;;  %v5574_v10 = vrot.slane %v5558_v61, 9  ;;  %v5504_v31 = vld [vmem:[%s7061_s27 + $0xa0] sm:$0xf]  ;;  %v5505_v60 = vld [vmem:[%s7061_s27 + $0xa4] sm:$0x1] }
  0x8c   : > { %v5304_v2 = vcombine.low %v648_v9, %v658_v4  ;;  %v5589_v6 = vcombine.low %v2880_v48, %v2883_v63  ;;  %v2893_v11 = vrot.slane %v5498_v57, 5  ;;  %v2896_v8 = vrot.slane %v5499_v54, 5  ;;  %v5560_v20 = vld [vmem:[%s7061_s27 + $0x9c] sm:$0xe]  ;;  %v6917_v44 = vld [vmem:[%s7061_s27 + $0xc] sm:$0xf] }
  0x8d   : > { %6325 = vmatmul.mubr.msk.bf16.gmra.mrb[12].mxu0 %vm709_vm3, %v5588_v12  ;;  %v2887_v18 = vsel %vm7313_vm7, %v5573_v58, %v2886_v7  ;;  %v2888_v21 = vrot.slane %v2886_v7, 4  ;;  %v2900_v28 = vrot.slane %v5501_v17, 5  ;;  %v7551_v34 = vld [vmem:[%s7061_s27 + $0x10] sm:$0xf]  ;;  %v6919_v47 = vld [vmem:[%s7061_s27 + $0x18] sm:$0xf] }
  0x8e   : > { %6171 = vmatmul.mubr.msk.bf16.gmra.mrb[28].mxu1 %vm709_vm3, %v5304_v2  ;;  %6328 = vmatprep.mubr.msk.bf16.mxu0 %vm709_vm3, %v5589_v6  ;;  %v2894_v38 = vsel %vm7313_vm7, %v5574_v10, %v2893_v11  ;;  %v2895_v1 = vrot.slane %v2893_v11, 4  ;;  %v5322_v45 = vcombine.low %v6917_v44, %v7551_v34  ;;  %v7558_v9 = vld [vmem:[%s7061_s27 + $0x1c] sm:$0xf]  ;;  %v5575_v48 = vrot.slane %v5559_v23, 9  ;;  %v5507_v57 = vld [vmem:[%s7061_s27 + $0xac] sm:$0xf] }
  0x8f   : > { %6176 = vmatprep.mubr.msk.bf16.mxu1 %vm709_vm3, %v5321_v62  ;;  %v2890_v59 = vsel %vm7313_vm7, %v2888_v21, %v2889_v41  ;;  %v5323_v26 = vcombine.low %v6919_v47, %v7558_v9  ;;  %v2902_v51 = vrot.slane %v2900_v28, 4  ;;  %v2903_v62 = vrot.slane %v5502_v25, 5  ;;  %v6921_v54 = vld [vmem:[%s8949_s1 + $0x4] sm:$0x3]  ;;  %v5510_v2 = vld [vmem:[%s7061_s27 + $0xb8] sm:$0xf] }
  0x90   : > { %v5590_v49 = vcombine.low %v2887_v18, %v2890_v59  ;;  %v2897_v50 = vsel %vm7313_vm7, %v2895_v1, %v2896_v8  ;;  %v5576_v12 = vrot.slane %v5560_v20, 9  ;;  %v2907_v63 = vrot.slane %v5504_v31, 5  ;;  %v7573_v7 = vld [vmem:[%s8949_s1 + $0x6] sm:$0x3]  ;;  %v5508_v10 = vld [vmem:[%s7061_s27 + $0xb0] sm:$0x1] }
  0x91   : > { %v5591_v4 = vcombine.low %v2894_v38, %v2897_v50  ;;  %v2910_v58 = vrot.slane %v5505_v60, 5  ;;  %v1477_v61 = vsel %vm758_vm0, %v6921_v54, 0  ;;  %v2901_v41 = vsel %vm7313_vm7, %v5575_v48, %v2900_v28  ;;  %v5561_v11 = vld [vmem:[%s7061_s27 + $0xa8] sm:$0xe]  ;;  %v5511_v25 = vld [vmem:[%s7061_s27 + $0xbc] sm:$0x1] }
  0x92   : > { %v2909_v6 = vrot.slane %v2907_v63, 4  ;;  %v2904_v17 = vsel %vm7313_vm7, %v2902_v51, %v2903_v62  ;;  %v2914_v8 = vrot.slane %v5507_v57, 5  ;;  %v2908_v23 = vsel %vm7313_vm7, %v5576_v12, %v2907_v63  ;;  %v5562_v31 = vld [vmem:[%s7061_s27 + $0xb4] sm:$0xe]  ;;  %v6922_v38 = vld [vmem:[%s7061_s27 + $0x24] sm:$0xf] }
  0x93   : > { %v2921_v21 = vrot.slane %v5510_v2, 5  ;;  %v7594_v1 = vld [vmem:[%s7061_s27 + $0x28] sm:$0xf]  ;;  %v5592_v60 = vcombine.low %v2901_v41, %v2904_v17  ;;  %v5577_v44 = vrot.slane %v5561_v11, 9  ;;  %v2917_v59 = vrot.slane %v5508_v10, 5 }
  0x94   : > { %v2911_v18 = vsel %vm7313_vm7, %v2909_v6, %v2910_v58  ;;  %v5324_v28 = vcombine.low %v6922_v38, %v7594_v1  ;;  %v6924_v47 = vld [vmem:[%s7061_s27 + $0x30] sm:$0xf]  ;;  %v2924_v51 = vrot.slane %v5511_v25, 5  ;;  %v5513_v62 = vld [vmem:[%s7061_s27 + $0xc4] sm:$0xf]  ;;  %v2309_v25 = vshrl.u32 %v7521_v40, 16 }
  0x95   : > { %6329 = vmatmul.mubr.msk.bf16.gmra.mrb[16].mxu0 %vm709_vm3, %v5590_v49  ;;  %v5593_v20 = vcombine.low %v2908_v23, %v2911_v18  ;;  %v5578_v49 = vrot.slane %v5562_v31, 9  ;;  %v2923_v50 = vrot.slane %v2921_v21, 4  ;;  %v2915_v57 = vsel %vm7313_vm7, %v5577_v44, %v2914_v8  ;;  %v5563_v12 = vld [vmem:[%s7061_s27 + $0xc0] sm:$0xe]  ;;  %v6926_v41 = vld [vmem:[%s7061_s27 + $0x3c] sm:$0xf] }
  0x96   : > { %6177 = vmatmul.mubr.msk.bf16.vlgmr.msra.gmra.mrb[0].mxu1 %vm709_vm3, %v5322_v45  ;;  %6332 = vmatprep.mubr.msk.bf16.mxu0 %vm709_vm3, %v5591_v4  ;;  %v2916_v45 = vrot.slane %v2914_v8, 4  ;;  %v2928_v63 = vrot.slane %v5513_v62, 5  ;;  %v5579_v6 = vrot.slane %v5563_v12, 9  ;;  %v7619_v17 = vld [vmem:[%s7061_s27 + $0x40] sm:$0xf]  ;;  %v5327_v18 = vcombine.low %v7226_v27, %v7229_v36  ;;  %v6750_v62 = vld [vmem:[%s7061_s27 + $0x24] sm:$0xff]  }
  0x97   : > { %6209 = vmatpush3.bf16.msra.mxu1 %v1477_v61  ;;  %6180 = vmatprep.mubr.msk.bf16.mxu1 %vm709_vm3, %v5323_v26  ;;  %v7599_v26 = vld [vmem:[%s7061_s27 + $0x34] sm:$0xf]  ;;  %v2922_v58 = vsel %vm7313_vm7, %v5578_v49, %v2921_v21  ;;  %v2925_v54 = vsel %vm7313_vm7, %v2923_v50, %v2924_v51  ;;  %v5514_v61 = vld [vmem:[%s7061_s27 + $0xc8] sm:$0x1]  ;;  %v5326_v10 = vcombine.low %v6926_v41, %v7619_v17  ;;  %v2305_v21 = vshll.u32 %v7521_v40, 16 }
  0x98   : > { %6707 = vmatprep.subr.msk.bf16.mxu1 %vm758_vm0, %v7573_v7  ;;  %v5325_v48 = vcombine.low %v6924_v47, %v7599_v26  ;;  %v2918_v4 = vsel %vm7313_vm7, %v2916_v45, %v2917_v59  ;;  %v5595_v11 = vcombine.low %v2922_v58, %v2925_v54  ;;  %v2930_v8 = vrot.slane %v2928_v63, 4  ;;  %v1215_v45 = vld [vmem:[%s7061_s27] sm:$0xe]  ;;  %v1216_v59 = vld [vmem:[%s7061_s27 + $0xc] sm:$0xe] }
  0x99   : > { %v5594_v2 = vcombine.low %v2915_v57, %v2918_v4  ;;  %v2931_v23 = vrot.slane %v5514_v61, 5  ;;  %v2929_v31 = vsel %vm7313_vm7, %v5579_v6, %v2928_v63  ;;  %v7634_v27 = vrot.slane %v2305_v21, 5  ;;  %v1219_v41 = vld [vmem:[%s7061_s27 + $0x30] sm:$0xe] }
  0x9a   : > { %v2311_v36 = vrot.slane %v2309_v25, 4  ;;  %v5329_v44 = vcombine.low %v7286_v19, %v7292_v35  ;;  %v2315_v47 = vshll.u32 %v7524_v55, 16  ;;  %v5353_v19 = vrot.slane %v1215_v45, 9 }
  0x9b   : > { %v2932_v38 = vsel %vm7313_vm7, %v2930_v8, %v2931_v23  ;;  %8970 = vst [vmem:[#allocation3_spill] sm:$0xff] %v7634_v27  ;;  %v5354_v35 = vrot.slane %v1216_v59, 9  ;;  %v1282_v4 = vrot.slane %v7558_v9, 5  ;;  %v1289_v12 = vrot.slane %v7594_v1, 5  ;;  %v1220_v8 = vld [vmem:[%s7061_s27 + $0x3c] sm:$0xe] }
  0x9c   : > { %v5596_v40 = vcombine.low %v2929_v31, %v2932_v38  ;;  %v2312_v49 = vor.u32 %v2311_v36, %v7634_v27  ;;  %v7654_v51 = vrot.slane %v2315_v47, 5  ;;  %v5330_v58 = vcombine.low %v7307_v0, %v7320_v29  ;;  %v1221_v31 = vld [vmem:[%s7061_s27 + $0x48] sm:$0xe]  ;;  %v6932_v59 = vld [vmem:[%s7061_s27 + $0x38] sm:$0x1] }
  0x9d   : > { %6333 = vmatmul.mubr.msk.bf16.gmra.mrb[20].mxu0 %vm709_vm3, %v5592_v60  ;;  %v5328_v60 = vcombine.low %v7255_v24, %v7261_v37  ;;  %v6929_v24 = vld [vmem:[%s7061_s27 + $0x14] sm:$0x1]  ;;  %v4117_v54 = vsel %vm758_vm0, %v7378_v22, 0  ;;  %v5331_v61 = vcombine.low %v7339_v53, %v7346_v16  ;;  %v5332_v6 = vcombine.low %v7365_v39, %v7373_v43  ;;  %v6930_v16 = vld [vmem:[%s7061_s27 + $0x20] sm:$0x1] }
  0x9e   : > { %6181 = vmatmul.mubr.msk.bf16.gmra.mrb[4].mxu1 %vm709_vm3, %v5324_v28  ;;  %6336 = vmatprep.mubr.msk.bf16.mxu0 %vm709_vm3, %v5593_v20  ;;  %v1275_v28 = vrot.slane %v7551_v34, 5  ;;  %v6748_v20 = vld [vmem:[%s7061_s27 + $0x18] sm:$0xff]   ;;  %v6928_v34 = vld [vmem:[%s7061_s27 + $0x8] sm:$0x1]  ;;  %v1278_v37 = vrot.slane %v6929_v24, 5  ;;  %8971 = vst [vmem:[#allocation4_spill] sm:$0xff] %v7654_v51  ;;  %v5333_v9 = vcombine.low %v7397_v5, %v7409_v30 }
  0x9f   : > { %6184 = vmatprep.mubr.msk.bf16.mxu1 %vm709_vm3, %v5325_v48  ;;  %v1268_v48 = vrot.slane %v7517_v15, 5  ;;  %v1271_v50 = vrot.slane %v6928_v34, 5  ;;  %v1217_v15 = vld [vmem:[%s7061_s27 + $0x18] sm:$0xe]  ;;  %v7659_v63 = vrot.slane %v2312_v49, 4  ;;  %v1285_v22 = vrot.slane %v6930_v16, 5 }
  0xa0   : > { %v1277_v55 = vrot.slane %v1275_v28, 4  ;;  %v5355_v1 = vrot.slane %v1217_v15, 9  ;;  %v7681_v29 = vsel %vm7313_vm7, %v5354_v35, %v1275_v28  ;;  %v1291_v25 = vrot.slane %v1289_v12, 4  ;;  %v5678_v24 = vld [vmem:[%s7061_s27 + $0x18] sm:$0xf] }
  0xa1   : > { %v1270_v57 = vrot.slane %v1268_v48, 4  ;;  %8972 = vst [vmem:[#allocation5_spill] sm:$0xff] %v7659_v63  ;;  %v7677_v0 = vsel %vm7313_vm7, %v5353_v19, %v1268_v48  ;;  %v1299_v47 = vrot.slane %v6932_v59, 5  ;;  %v7718_v49 = vsel %vm758_vm0, %v7573_v7, 0  ;;  %v5679_v7 = vld [vmem:[%s7061_s27 + $0x1c] sm:$0xf] }
  0xa2   : > { %v7685_v53 = vsel %vm7313_vm7, %v1277_v55, %v1278_v37  ;;  %v7722_v34 = vsel %vm7313_vm7, %v5355_v1, %v1282_v4  ;;  %v6754_v37 = vld [vmem:[%s7061_s27 + $0x3c] sm:$0xff]   ;;  %v5358_v35 = vrot.slane %v1220_v8, 9  ;;  %v6933_v55 = vld [vmem:[%s7061_s27 + $0x44] sm:$0x1]  ;;  %v3638_v8 = vshll.u32 %v5678_v24, 16 }
  0xa3   : > { %v7696_v23 = vsel %vm7313_vm7, %v1270_v57, %v1271_v50  ;;  %v1222_v50 = vld [vmem:[%s7061_s27 + $0x54] sm:$0xe]  ;;  %v1306_v15 = vrot.slane %v6933_v55, 5  ;;  %v5682_v39 = vld [vmem:[%s7061_s27 + $0x28] sm:$0xf] }
  0xa4   : > { %v6940_v5 = vld [vmem:[%s7061_s27 + $0x70] sm:$0xf] }
  0xa5   : > { %6337 = vmatmul.mubr.msk.bf16.gmra.mrb[24].mxu0 %vm709_vm3, %v5594_v2  ;;  %v1218_v2 = vld [vmem:[%s7061_s27 + $0x24] sm:$0xe]  ;;  %v1331_v30 = vrot.slane %v6940_v5, 5 }
  0xa6   : > { %6185 = vmatmul.mubr.msk.bf16.gmra.mrb[8].mxu1 %vm709_vm3, %v5326_v10  ;;  %6340 = vmatprep.mubr.msk.bf16.mxu0 %vm709_vm3, %v5595_v11  ;;  %v1296_v10 = vrot.slane %v7599_v26, 5  ;;  %v6752_v11 = vld [vmem:[%s7061_s27 + $0x30] sm:$0xff]   ;;  %v5356_v21 = vrot.slane %v1218_v2, 9 }
  0xa7   : > { %6188 = vmatprep.mubr.msk.bf16.mxu1 %vm709_vm3, %v5327_v18  ;;  %v7692_v26 = vld [vmem:[%s8949_s1 + $0x10] sm:$0x3]  ;;  %v1284_v18 = vrot.slane %v1282_v4, 4  ;;  %v1333_v48 = vrot.slane %v1331_v30, 4 }
  0xa8   : > { %v1298_v45 = vrot.slane %v1296_v10, 4  ;;  %v7729_v19 = vsel %vm7313_vm7, %v5356_v21, %v1289_v12  ;;  %v3648_v21 = vshrl.u32 %v5679_v7, 16 }
  0xa9   : > { %v7738_v4 = vsel %vm7313_vm7, %v1284_v18, %v1285_v22  ;;  %v3635_v22 = vshrl.u32 %v5678_v24, 16  ;;  %v3644_v18 = vshll.u32 %v5679_v7, 16  ;;  %v5681_v24 = vld [vmem:[%s7061_s27 + $0x24] sm:$0xf] }
  0xaa   : > { %v7751_v1 = vsel %vm7313_vm7, %v1298_v45, %v1299_v47 }
  0xab   : > { %v3637_v43 = vrot.slane %v3635_v22, 4  ;;  %v7793_v7 = vrot.slane %v3644_v18, 5  ;;  %v3662_v22 = vshll.u32 %v5681_v24, 16  ;;  %v3672_v18 = vshrl.u32 %v5682_v39, 16 }
  0xad   : > { %6341 = vmatmul.mubr.msk.bf16.gmra.mrb[28].mxu0 %vm709_vm3, %v5596_v40  ;;  %v6931_v40 = vld [vmem:[%s7061_s27 + $0x2c] sm:$0x1]  ;;  %v3664_v27 = vrot.slane %v3662_v22, 5 }
  0xae   : > { %6189 = vmatmul.mubr.msk.bf16.gmra.mrb[12].mxu1 %vm709_vm3, %v5328_v60  ;;  %6346 = vmatprep.mubr.msk.bf16.mxu0 %vm709_vm3, %v6748_v20  ;;  %v1292_v28 = vrot.slane %v6931_v40, 5  ;;  %v1303_v60 = vrot.slane %v7619_v17, 5  ;;  %v6936_v40 = vld [vmem:[%s7061_s27 + $0x50] sm:$0x1]  ;;  %v6941_v17 = vld [vmem:[%s7061_s27 + $0x74] sm:$0x1] }
  0xaf   : > { %6192 = vmatprep.mubr.msk.bf16.mxu1 %vm709_vm3, %v5329_v44  ;;  %v5357_v44 = vrot.slane %v1219_v41, 9  ;;  %v5360_v41 = vrot.slane %v1222_v50, 9  ;;  %v1223_v50 = vld [vmem:[%s7061_s27 + $0x60] sm:$0xe]  ;;  %v5683_v20 = vld [vmem:[%s7061_s27 + $0x2c] sm:$0x1] }
  0xb0   : > { %v1305_v12 = vrot.slane %v1303_v60, 4  ;;  %v7764_v45 = vsel %vm7313_vm7, %v5358_v35, %v1303_v60  ;;  %v6937_v35 = vld [vmem:[%s7061_s27 + $0x5c] sm:$0x1] }
  0xb1   : > { %v7747_v2 = vsel %vm7313_vm7, %v5357_v44, %v1296_v10  ;;  %v1320_v55 = vrot.slane %v6937_v35, 5  ;;  %v1224_v35 = vld [vmem:[%s7061_s27 + $0x6c] sm:$0xe] }
  0xb2   : > { %v7768_v59 = vsel %vm7313_vm7, %v1305_v12, %v1306_v15  ;;  %v6938_v15 = vld [vmem:[%s7061_s27 + $0x64] sm:$0xf]  ;;  %v3650_v12 = vrot.slane %v3648_v21, 4  ;;  %v5362_v5 = vrot.slane %v1224_v35, 9 }
  0xb3   : > { %v6760_v21 = vld [vmem:[%s7061_s27 + $0x60] sm:$0xff]  }
  0xb5   : > { %6347 = vmatmul.mubr.msk.bf16.vlgmr.msra.gmra.mrb[0].mxu0 %vm709_vm3, %v6750_v62  ;;  %v6934_v62 = vld [vmem:[%s7061_s27 + $0x4c] sm:$0xf] }
  0xb6   : > { %6193 = vmatmul.mubr.msk.bf16.gmra.mrb[16].mxu1 %vm709_vm3, %v5330_v58  ;;  %6379 = vmatpush3.bf16.msra.mxu0 %v4117_v54  ;;  %v1310_v57 = vrot.slane %v6934_v62, 5  ;;  %v7742_v58 = vsel %vm7313_vm7, %v1291_v25, %v1292_v28  ;;  %v5359_v54 = vrot.slane %v1221_v31, 9  ;;  %v1313_v28 = vrot.slane %v6936_v40, 5 }
  0xb7   : > { %6196 = vmatprep.mubr.msk.bf16.mxu1 %vm709_vm3, %v5331_v61  ;;  %6350 = vmatprep.mubr.msk.bf16.mxu0 %vm709_vm3, %v6752_v11  ;;  %v6756_v61 = vld [vmem:[%s7061_s27 + $0x48] sm:$0xff]   ;;  %v6935_v11 = vld [vmem:[%s7061_s27 + $0x58] sm:$0xf]  ;;  %v1324_v62 = vrot.slane %v6938_v15, 5  ;;  %v5685_v15 = vld [vmem:[%s7061_s27 + $0x34] sm:$0xf] }
  0xb8   : > { %6713 = vmatprep.subr.msk.bf16.mxu0 %vm758_vm0, %v7692_v26  ;;  %v1317_v16 = vrot.slane %v6935_v11, 5  ;;  %v1312_v31 = vrot.slane %v1310_v57, 4  ;;  %v7772_v47 = vsel %vm7313_vm7, %v5359_v54, %v1310_v57  ;;  %v5680_v57 = vld [vmem:[%s7061_s27 + $0x20] sm:$0x1]  ;;  %v5684_v54 = vld [vmem:[%s7061_s27 + $0x30] sm:$0xf] }
  0xb9   : > { %v5361_v11 = vrot.slane %v1223_v50, 9  ;;  %v3686_v50 = vshll.u32 %v5684_v54, 16  ;;  %v3654_v25 = vshll.u32 %v5680_v57, 16  ;;  %v3692_v36 = vshll.u32 %v5685_v15, 16 }
  0xba   : > { %v7783_v60 = vsel %vm7313_vm7, %v5360_v41, %v1317_v16  ;;  %v7799_v41 = vsel %vm7313_vm7, %v1312_v31, %v1313_v28  ;;  %v1326_v31 = vrot.slane %v1324_v62, 4  ;;  %v3683_v28 = vshrl.u32 %v5684_v54, 16 }
  0xbb   : > { %v7841_v35 = vrot.slane %v3692_v36, 5 }
  0xbd   : > { %6351 = vmatmul.mubr.msk.bf16.gmra.mrb[4].mxu0 %vm709_vm3, %v6754_v37  ;;  %v1319_v37 = vrot.slane %v1317_v16, 4  ;;  %v6939_v16 = vld [vmem:[%s7061_s27 + $0x68] sm:$0x1] }
  0xbe   : > { %6197 = vmatmul.mubr.msk.bf16.gmra.mrb[20].mxu1 %vm709_vm3, %v5332_v6  ;;  %6354 = vmatprep.mubr.msk.bf16.mxu0 %vm709_vm3, %v6756_v61  ;;  %v3640_v6 = vrot.slane %v3638_v8, 5  ;;  %v6758_v61 = vld [vmem:[%s7061_s27 + $0x54] sm:$0xff]   ;;  %v1327_v40 = vrot.slane %v6939_v16, 5  ;;  %v3668_v8 = vshll.u32 %v5682_v39, 16  ;;  %v3651_v16 = vor.u32 %v3650_v12, %v7793_v7 }
  0xbf   : > { %6200 = vmatprep.mubr.msk.bf16.mxu1 %vm709_vm3, %v5333_v9  ;;  %v3659_v9 = vshrl.u32 %v5681_v24, 16  ;;  %v7808_v44 = vsel %vm7313_vm7, %v1319_v37, %v1320_v55  ;;  %v1334_v24 = vrot.slane %v6941_v17, 5  ;;  %v3696_v39 = vshrl.u32 %v5685_v15, 16 }
  0xc0   : > { %v3641_v10 = vor.u32 %v3640_v6, %v3637_v43  ;;  %v7814_v37 = vrot.slane %v3668_v8, 5  ;;  %v3674_v55 = vrot.slane %v3672_v18, 4  ;;  %v8973_v43 = vcombine.low %v7418_v52, %v7429_v46  ;;  %v6942_v8 = vld [vmem:[%s7061_s27 + $0x7c] sm:$0xf]  ;;  %v7850_v18 = vld [vmem:[%s7061_s27 + $0x38] sm:$0x1] }
  0xc1   : > { %v3661_v38 = vrot.slane %v3659_v9, 4  ;;  %v7823_v17 = vsel %vm7313_vm7, %v5361_v11, %v1324_v62  ;;  %v7827_v57 = vsel %vm7313_vm7, %v1326_v31, %v1327_v40  ;;  %v3685_v6 = vrot.slane %v3683_v28, 4  ;;  %8975 = vst [vmem:[#allocation6_spill] sm:$0xff] %v7850_v18 }
  0xc2   : > { %v3688_v12 = vrot.slane %v3686_v50, 5  ;;  %v8974_v52 = vcombine.low %v7450_v33, %v7455_v56  ;;  %v3642_v46 = vrot.slane %v3641_v10, 4  ;;  %v3652_v54 = vrot.slane %v3651_v16, 4  ;;  %v6762_v33 = vld [vmem:[%s7061_s27 + $0x6c] sm:$0xff]   ;;  %v1226_v16 = vld [vmem:[%s7061_s27 + $0x84] sm:$0xe] }
  0xc3   : > { %v3678_v62 = vshll.u32 %v5683_v20, 16  ;;  %v7835_v11 = vsel %vm7313_vm7, %v5362_v5, %v1331_v30  ;;  %v7839_v40 = vsel %vm7313_vm7, %v1333_v48, %v1334_v24  ;;  %v3698_v9 = vrot.slane %v3696_v39, 4  ;;  %v6763_v48 = vld [vmem:[%s7061_s27 + $0x78] sm:$0xff]  }
  0xc4   : > { %v3665_v10 = vor.u32 %v3664_v27, %v3661_v38  ;;  %v3675_v20 = vor.u32 %v3674_v55, %v7814_v37  ;;  %v1338_v30 = vrot.slane %v6942_v8, 5  ;;  %v3689_v38 = vor.u32 %v3688_v12, %v3685_v6  ;;  %v5687_v5 = vld [vmem:[%s7061_s27 + $0x3c] sm:$0xf] }
  0xc5   : > { %6355 = vmatmul.mubr.msk.bf16.gmra.mrb[8].mxu0 %vm709_vm3, %v6758_v61  ;;  %v3656_v61 = vrot.slane %v3654_v25, 5  ;;  %v1225_v25 = vld [vmem:[%s7061_s27 + $0x78] sm:$0xe]  ;;  %v7866_v50 = vrot.slane %v3678_v62, 5  ;;  %v3699_v39 = vor.u32 %v3698_v9, %v7841_v35  ;;  %v3702_v55 = vshll.u32 %v7850_v18, 16 }
  0xc6   : > { %6201 = vmatmul.mubr.msk.bf16.gmra.mrb[24].mxu1 %vm709_vm3, %v8973_v43  ;;  %6358 = vmatprep.mubr.msk.bf16.mxu0 %vm709_vm3, %v6760_v21  ;;  %v3647_v21 = vsel %vm7087_vm4, %v3642_v46, %v7793_v7  ;;  %v5363_v24 = vrot.slane %v1225_v25, 9  ;;  %v6943_v43 = vld [vmem:[%s7061_s27 + $0x88] sm:$0xf]  ;;  %v7874_v7 = vld [vmem:[%s7061_s27 + $0x40] sm:$0xf]  ;;  %v3666_v12 = vrot.slane %v3665_v10, 4  ;;  %v8977_v62 = vcombine.low %v7470_v14, %v7479_v42 }
  0xc7   : > { %6204 = vmatprep.mubr.msk.bf16.mxu1 %vm709_vm3, %v8974_v52  ;;  %v3657_v31 = vsel %vm7087_vm4, %v3652_v54, %v3656_v61  ;;  %v1345_v6 = vrot.slane %v6943_v43, 5  ;;  %8976 = vst [vmem:[#allocation7_spill] sm:$0xff] %v7874_v7  ;;  %v3676_v52 = vrot.slane %v3675_v20, 4  ;;  %v1340_v46 = vrot.slane %v1338_v30, 4  ;;  %v6944_v54 = vld [vmem:[%s7061_s27 + $0x80] sm:$0x1] }
  0xc8   : > { %v1341_v61 = vrot.slane %v6944_v54, 5  ;;  %v3690_v9 = vrot.slane %v3689_v38, 4  ;;  %v5364_v25 = vrot.slane %v1226_v16, 9  ;;  %v3707_v8 = vshrl.u32 %v5687_v5, 16  ;;  %v6764_v10 = vld [vmem:[%s7061_s27 + $0x84] sm:$0xff]  }
  0xc9   : > { %v3710_v43 = vshll.u32 %v5687_v5, 16  ;;  %v7888_v20 = vcombine.low %v3647_v21, %v3657_v31  ;;  %v7892_v14 = vsel %vm758_vm0, %v7692_v26, 0  ;;  %v3720_v38 = vshrl.u32 %v7874_v7, 16  ;;  %v6765_v21 = vld [vmem:[%s7061_s27 + $0x90] sm:$0xff]   ;;  %v6949_v18 = vld [vmem:[%s7061_s27 + $0xa0] sm:$0xf] }
  0xca   : > { %v3700_v16 = vrot.slane %v3699_v39, 4  ;;  %v3704_v5 = vrot.slane %v3702_v55, 5  ;;  %v1347_v54 = vrot.slane %v1345_v6, 4  ;;  %v3671_v31 = vsel %vm7087_vm4, %v3666_v12, %v7814_v37 }
  0xcb   : > { %v3681_v26 = vsel %vm7087_vm4, %v3676_v52, %v7866_v50  ;;  %v7907_v39 = vsel %vm7313_vm7, %v5363_v24, %v1338_v30  ;;  %v7911_v55 = vsel %vm7313_vm7, %v1340_v46, %v1341_v61  ;;  %v3695_v37 = vsel %vm7087_vm4, %v3690_v9, %v7841_v35  ;;  %v5693_v30 = vld [vmem:[%s7061_s27 + $0x54] sm:$0xf]  ;;  %v7928_v24 = vld [vmem:[%s7061_s27 + $0x58] sm:$0xf]  ;;  %v7933_v61 = vld [vmem:[%s7061_s27 + $0x90] sm:$0xe] }
  0xcc   : > { %v7924_v12 = vsel %vm7313_vm7, %v5364_v25, %v1345_v6  ;;  %v3709_v50 = vrot.slane %v3707_v8, 4  ;;  %v3712_v52 = vrot.slane %v3710_v43, 5  ;;  %v3722_v46 = vrot.slane %v3720_v38, 4 }
  0xcd   : > { %6359 = vmatmul.mubr.msk.bf16.gmra.mrb[12].mxu0 %vm709_vm3, %v6762_v33  ;;  %v8978_v33 = vcombine.low %v7677_v0, %v7696_v23  ;;  %v6945_v0 = vld [vmem:[%s7061_s27 + $0x8c] sm:$0x1]  ;;  %v3705_v36 = vsel %vm7087_vm4, %v3700_v16, %v3704_v5  ;;  %v3755_v25 = vshrl.u32 %v5693_v30, 16  ;;  %v3758_v8 = vshll.u32 %v5693_v30, 16 }
  0xce   : > { %6205 = vmatmul.mubr.msk.bf16.gmra.mrb[28].mxu1 %vm709_vm3, %v8977_v62  ;;  %6362 = vmatprep.mubr.msk.bf16.mxu0 %vm709_vm3, %v6763_v48  ;;  %v3716_v48 = vshll.u32 %v7874_v7, 16  ;;  %v1348_v23 = vrot.slane %v6945_v0, 5  ;;  %v5690_v62 = vld [vmem:[%s7061_s27 + $0x48] sm:$0xf]  ;;  %v7917_v0 = vld [vmem:[%s7061_s27 + $0x4c] sm:$0xf]  ;;  %v8980_v38 = vcombine.low %v7681_v29, %v7685_v53  ;;  %v7951_v16 = vcombine.low %v3671_v31, %v3681_v26 }
  0xcf   : > { %6210 = vmatprep.mubr.msk.bf16.mxu1 %vm709_vm3, %v8978_v33  ;;  %v7914_v33 = vld [vmem:[%s7061_s27 + $0x44] sm:$0x1]  ;;  %v3731_v27 = vshrl.u32 %v5690_v62, 16  ;;  %v3734_v15 = vshll.u32 %v5690_v62, 16  ;;  %v3740_v6 = vshll.u32 %v7917_v0, 16  ;;  %v3744_v9 = vshrl.u32 %v7917_v0, 16 }
  0xd0   : > { %8979 = vst [vmem:[#allocation8_spill] sm:$0xff] %v7914_v33  ;;  %v7930_v28 = vrot.slane %v3716_v48, 5  ;;  %v7939_v35 = vsel %vm7313_vm7, %v1347_v54, %v1348_v23  ;;  %v3764_v43 = vshll.u32 %v7928_v24, 16  ;;  %v3768_v48 = vshrl.u32 %v7928_v24, 16  ;;  %v5696_v31 = vld [vmem:[%s7061_s27 + $0x60] sm:$0xf] }
  0xd1   : > { %v3726_v5 = vshll.u32 %v7914_v33, 16  ;;  %v5365_v54 = vrot.slane %v7933_v61, 9  ;;  %v8981_v23 = vcombine.low %v7722_v34, %v7738_v4  ;;  %v7962_v29 = vcombine.low %v3695_v37, %v3705_v36  ;;  %v6766_v26 = vld [vmem:[%s7061_s27 + $0x9c] sm:$0xff]   ;;  %v6767_v30 = vld [vmem:[%s7061_s27 + $0xa8] sm:$0xff]  }
  0xd2   : > { %v3713_v53 = vor.u32 %v3712_v52, %v3709_v50  ;;  %v3733_v62 = vrot.slane %v3731_v27, 4  ;;  %v7973_v34 = vrot.slane %v3740_v6, 5  ;;  %v3746_v4 = vrot.slane %v3744_v9, 4  ;;  %v6946_v36 = vld [vmem:[%s8949_s1 + $0x8] sm:$0x3] }
  0xd3   : > { %v3757_v27 = vrot.slane %v3755_v25, 4  ;;  %v3760_v37 = vrot.slane %v3758_v8, 5  ;;  %v7982_v50 = vrot.slane %v3764_v43, 5  ;;  %v3770_v52 = vrot.slane %v3768_v48, 4  ;;  %v6947_v6 = vld [vmem:[%s7061_s27 + $0x94] sm:$0xf] }
  0xd4   : > { %v7988_v9 = vld [vmem:[%s7061_s27 + $0x64] sm:$0xf]  ;;  %v3779_v61 = vshrl.u32 %v5696_v31, 16  ;;  %v7990_v22 = vrot.slane %v3713_v53, 4  ;;  %v1359_v25 = vrot.slane %v6949_v18, 5  ;;  %v3747_v43 = vor.u32 %v3746_v4, %v7973_v34 }
  0xd5   : > { %6363 = vmatmul.mubr.msk.bf16.gmra.mrb[16].mxu0 %vm709_vm3, %v6764_v10  ;;  %8982 = vst [vmem:[#allocation9_spill] sm:$0xff] %v7988_v9  ;;  %v3782_v10 = vshll.u32 %v5696_v31, 16  ;;  %v3761_v31 = vor.u32 %v3760_v37, %v3757_v27  ;;  %v3771_v53 = vor.u32 %v3770_v52, %v7982_v50  ;;  %v8983_v18 = vcombine.low %v7729_v19, %v7742_v58  ;;  %v6768_v37 = vld [vmem:[%s7061_s27 + $0xb4] sm:$0xff]  }
  0xd6   : > { %6211 = vmatmul.mubr.msk.bf16.vlgmr.msra.gmra.mrb[0].mxu1 %vm709_vm3, %v8980_v38  ;;  %6366 = vmatprep.mubr.msk.bf16.mxu0 %vm709_vm3, %v6765_v21  ;;  %v3736_v21 = vrot.slane %v3734_v15, 5  ;;  %v7971_v38 = vld [vmem:[%s7061_s27 + $0x50] sm:$0x1]  ;;  %v7980_v15 = vld [vmem:[%s7061_s27 + $0x5c] sm:$0x1]  ;;  %v8984_v27 = vcombine.low %v7747_v2, %v7751_v1  ;;  %v1361_v52 = vrot.slane %v1359_v25, 4 }
  0xd7   : > { %6243 = vmatpush3.bf16.msra.mxu1 %v7718_v49  ;;  %6214 = vmatprep.mubr.msk.bf16.mxu1 %vm709_vm3, %v8981_v23  ;;  %v3723_v49 = vor.u32 %v3722_v46, %v7930_v28  ;;  %v7984_v46 = vrot.slane %v3726_v5, 5  ;;  %v1352_v23 = vrot.slane %v6947_v6, 5  ;;  %v3750_v48 = vshll.u32 %v7971_v38, 16  ;;  %v1228_v5 = vld [vmem:[%s7061_s27 + $0x9c] sm:$0xe] }
  0xd8   : > { %6709 = vmatprep.subr.msk.bf16.mxu1 %vm758_vm0, %v6946_v36  ;;  %v6948_v36 = vld [vmem:[%s7061_s27 + $0x98] sm:$0x1]  ;;  %v3737_v7 = vor.u32 %v3736_v21, %v3733_v62  ;;  %v3774_v6 = vshll.u32 %v7980_v15, 16  ;;  %v3792_v62 = vshrl.u32 %v7988_v9, 16  ;;  %v3784_v4 = vrot.slane %v3782_v10, 5 }
  0xd9   : > { %v1355_v33 = vrot.slane %v6948_v36, 5  ;;  %v3724_v8 = vrot.slane %v3723_v49, 4  ;;  %v3788_v36 = vshll.u32 %v7988_v9, 16  ;;  %v8009_v21 = vsel %vm7313_vm7, %v5365_v54, %v1352_v23  ;;  %v8020_v2 = vld [vmem:[%s7061_s27 + $0x68] sm:$0x1] }
  0xda   : > { %v3781_v49 = vrot.slane %v3779_v61, 4  ;;  %v3738_v19 = vrot.slane %v3737_v7, 4  ;;  %v5366_v58 = vrot.slane %v1228_v5, 9  ;;  %v3748_v3 = vrot.slane %v3747_v43, 4  ;;  %8985 = vst [vmem:[#allocation10_spill] sm:$0xff] %v8020_v2  ;;  %v6769_v5 = vld [vmem:[%s7061_s27 + $0xc0] sm:$0xff]  }
  0xdb   : > { %v3752_v54 = vrot.slane %v3750_v48, 5  ;;  %v3776_v63 = vrot.slane %v3774_v6, 5  ;;  %v1366_v61 = vrot.slane %v7455_v56, 5  ;;  %v3762_v10 = vrot.slane %v3761_v31, 4  ;;  %v1230_v31 = vld [vmem:[%s7061_s27 + $0xb4] sm:$0xe] }
  0xdc   : > { %v3772_v51 = vrot.slane %v3771_v53, 4  ;;  %v8022_v1 = vrot.slane %v3788_v36, 5  ;;  %v3794_v7 = vrot.slane %v3792_v62, 4  ;;  %v3719_v43 = vsel %vm7087_vm4, %v7990_v22, %v7930_v28  ;;  %v6951_v62 = vld [vmem:[%s7061_s27 + $0xb0] sm:$0x1] }
  0xdd   : > { %6367 = vmatmul.mubr.msk.bf16.gmra.mrb[20].mxu0 %vm709_vm3, %v6766_v26  ;;  %v1354_v26 = vrot.slane %v1352_v23, 4  ;;  %v1229_v23 = vld [vmem:[%s7061_s27 + $0xa8] sm:$0xe]  ;;  %v3729_v48 = vsel %vm7087_vm4, %v3724_v8, %v7984_v46  ;;  %v3785_v6 = vor.u32 %v3784_v4, %v3781_v49  ;;  %v3743_v53 = vsel %vm7087_vm4, %v3738_v19, %v7973_v34  ;;  %v5699_v46 = vld [vmem:[%s7061_s27 + $0x6c] sm:$0xf] }
  0xde   : > { %6215 = vmatmul.mubr.msk.bf16.gmra.mrb[4].mxu1 %vm709_vm3, %v8983_v18  ;;  %6370 = vmatprep.mubr.msk.bf16.mxu0 %vm709_vm3, %v6767_v30  ;;  %v6950_v18 = vld [vmem:[%s7061_s27 + $0xa4] sm:$0x1]  ;;  %v8042_v36 = vsel %vm7313_vm7, %v5366_v58, %v1359_v25  ;;  %v5367_v28 = vrot.slane %v1229_v23, 9  ;;  %v1368_v8 = vrot.slane %v1366_v61, 4  ;;  %v3798_v49 = vshll.u32 %v8020_v2, 16 }
  0xdf   : > { %6218 = vmatprep.mubr.msk.bf16.mxu1 %vm709_vm3, %v8984_v27  ;;  %v1362_v30 = vrot.slane %v6950_v18, 5  ;;  %v8034_v56 = vsel %vm7313_vm7, %v1354_v26, %v1355_v33  ;;  %v3753_v33 = vsel %vm7087_vm4, %v3748_v3, %v3752_v54  ;;  %v1369_v26 = vrot.slane %v6951_v62, 5  ;;  %v5702_v18 = vld [vmem:[%s7061_s27 + $0x78] sm:$0xf]  ;;  %v8097_v54 = vld [vmem:[%s7061_s27 + $0xbc] sm:$0x1] }
  0xe0   : > { %v3767_v34 = vsel %vm7087_vm4, %v3762_v10, %v7982_v50  ;;  %v3777_v25 = vsel %vm7087_vm4, %v3772_v51, %v3776_v63  ;;  %v3795_v4 = vor.u32 %v3794_v7, %v8022_v1  ;;  %v5368_v27 = vrot.slane %v1230_v31, 9  ;;  %v8071_v51 = vld [vmem:[%s7061_s27 + $0x70] sm:$0xf]  ;;  %v8101_v10 = vld [vmem:[%s7061_s27 + $0x7c] sm:$0xf] }
  0xe1   : > { %v8046_v22 = vsel %vm7313_vm7, %v1361_v52, %v1362_v30  ;;  %v8987_v3 = vcombine.low %v7764_v45, %v7768_v59  ;;  %v8067_v19 = vrot.slane %v3785_v6, 4  ;;  %v1373_v50 = vrot.slane %v7479_v42, 5  ;;  %8988 = vst [vmem:[#allocation12_spill] sm:$0xff] %v8071_v51  ;;  %8990 = vst [vmem:[#allocation13_spill] sm:$0xff] %v8101_v10  ;;  %v5705_v7 = vld [vmem:[%s7061_s27 + $0x84] sm:$0xf] }
  0xe2   : > { %8986 = vst [vmem:[#allocation11_spill] sm:$0xff] %v8046_v22  ;;  %v3803_v63 = vshrl.u32 %v5699_v46, 16  ;;  %v8989_v45 = vcombine.low %v7772_v47, %v7799_v41  ;;  %v8079_v58 = vcombine.low %v3743_v53, %v3753_v33  ;;  %v8085_v42 = vsel %vm7313_vm7, %v5367_v28, %v1366_v61  ;;  %v6770_v61 = vld [vmem:[%s7061_s27 + $0xcc] sm:$0xff]   ;;  %v8113_v31 = vld [vmem:[%s7061_s27 + $0x88] sm:$0xf] }
  0xe3   : > { %v8088_v30 = vcombine.low %v3767_v34, %v3777_v25  ;;  %v8092_v47 = vsel %vm7313_vm7, %v1368_v8, %v1369_v26  ;;  %v8094_v41 = vrot.slane %v3798_v49, 5  ;;  %v3812_v6 = vshll.u32 %v8071_v51, 16  ;;  %8991 = vst [vmem:[#allocation14_spill] sm:$0xff] %v8113_v31  ;;  %v5708_v62 = vld [vmem:[%s7061_s27 + $0x90] sm:$0xf] }
  0xe4   : > { %v8119_v28 = vrot.slane %v1373_v50, 4  ;;  %v8121_v33 = vrot.slane %v3803_v63, 4  ;;  %v3816_v8 = vshrl.u32 %v8071_v51, 16  ;;  %v3827_v26 = vshrl.u32 %v5702_v18, 16  ;;  %v8128_v25 = vld [vmem:[%s7061_s27 + $0x94] sm:$0xf] }
  0xe5   : > { %6371 = vmatmul.mubr.msk.bf16.gmra.mrb[24].mxu0 %vm709_vm3, %v6768_v37  ;;  %v8065_v37 = vcombine.low %v3719_v43, %v3729_v48  ;;  %v8109_v43 = vsel %vm7313_vm7, %v5368_v27, %v1373_v50  ;;  %v3806_v48 = vshll.u32 %v5699_v46, 16  ;;  %v3830_v49 = vshll.u32 %v5702_v18, 16  ;;  %8992 = vst [vmem:[#allocation15_spill] sm:$0xff] %v8128_v25  ;;  %v8166_v2 = vld [vmem:[%s7061_s27 + $0x8c] sm:$0x1] }
  0xe6   : > { %6219 = vmatmul.mubr.msk.bf16.gmra.mrb[8].mxu1 %vm709_vm3, %v8987_v3  ;;  %6374 = vmatprep.mubr.msk.bf16.mxu0 %vm709_vm3, %v6769_v5  ;;  %v8105_v5 = vrot.slane %v3795_v4, 4  ;;  %v3836_v46 = vshll.u32 %v8101_v10, 16  ;;  %v3840_v34 = vshrl.u32 %v8101_v10, 16  ;;  %v3851_v4 = vshrl.u32 %v5705_v7, 16 }
  0xe7   : > { %6222 = vmatprep.mubr.msk.bf16.mxu1 %vm709_vm3, %v8989_v45  ;;  %v3854_v27 = vshll.u32 %v5705_v7, 16  ;;  %v3860_v3 = vshll.u32 %v8113_v31, 16  ;;  %v3864_v50 = vshrl.u32 %v8113_v31, 16  ;;  %v8138_v45 = vld [vmem:[%s7061_s27 + $0x74] sm:$0x1]  ;;  %v3808_v18 = vrot.slane %v3806_v48, 5 }
  0xe8   : > { %v3875_v52 = vshrl.u32 %v5708_v62, 16  ;;  %v3878_v53 = vshll.u32 %v5708_v62, 16  ;;  %v8993_v7 = vcombine.low %v7783_v60, %v7808_v44  ;;  %v3818_v59 = vrot.slane %v3816_v8, 4  ;;  %v5711_v48 = vld [vmem:[%s7061_s27 + $0x9c] sm:$0xf] }
  0xe9   : > { %v3884_v63 = vshll.u32 %v8128_v25, 16  ;;  %v3888_v23 = vshrl.u32 %v8128_v25, 16  ;;  %v8994_v62 = vcombine.low %v7823_v17, %v7827_v57  ;;  %v8156_v44 = vld [vmem:[%s7061_s27 + $0x80] sm:$0x1]  ;;  %v3829_v60 = vrot.slane %v3827_v26, 4 }
  0xea   : > { %8995 = vst [vmem:[#allocation16_spill] sm:$0xff] %v8156_v44  ;;  %v3853_v31 = vrot.slane %v3851_v4, 4  ;;  %v3856_v8 = vrot.slane %v3854_v27, 5  ;;  %v8160_v10 = vrot.slane %v3860_v3, 5  ;;  %v3866_v51 = vrot.slane %v3864_v50, 4 }
  0xeb   : > { %v8163_v25 = vld [vmem:[%s7061_s27 + $0xa0] sm:$0xf]  ;;  %v3877_v17 = vrot.slane %v3875_v52, 4  ;;  %v3880_v57 = vrot.slane %v3878_v53, 5  ;;  %v3902_v9 = vshll.u32 %v5711_v48, 16  ;;  %v3809_v26 = vor.u32 %v3808_v18, %v8121_v33 }
  0xec   : > { %v3846_v27 = vshll.u32 %v8156_v44, 16  ;;  %v8175_v3 = vld [vmem:[%s7061_s27 + $0x98] sm:$0x1]  ;;  %v3908_v50 = vshll.u32 %v8163_v25, 16  ;;  %v3912_v52 = vshrl.u32 %v8163_v25, 16  ;;  %v3857_v22 = vor.u32 %v3856_v8, %v3853_v31 }
  0xed   : > { %6375 = vmatmul.mubr.msk.bf16.gmra.mrb[28].mxu0 %vm709_vm3, %v6770_v61  ;;  %v8146_v61 = vrot.slane %v3812_v6, 5  ;;  %v3842_v6 = vrot.slane %v3840_v34, 4  ;;  %v3890_v34 = vrot.slane %v3888_v23, 4  ;;  %v3870_v33 = vshll.u32 %v8166_v2, 16 }
  0xee   : > { %6223 = vmatmul.mubr.msk.bf16.gmra.mrb[12].mxu1 %vm709_vm3, %v8993_v7  ;;  %6380 = vmatprep.mubr.msk.bf16.mxu0 %vm709_vm3, %v7888_v20  ;;  %v3832_v7 = vrot.slane %v3830_v49, 5  ;;  %v8158_v20 = vrot.slane %v3836_v46, 5  ;;  %v3822_v49 = vshll.u32 %v8138_v45, 16  ;;  %v8170_v46 = vrot.slane %v3884_v63, 5 }
  0xef   : > { %6226 = vmatprep.mubr.msk.bf16.mxu1 %vm709_vm3, %v8994_v62  ;;  %v3899_v62 = vshrl.u32 %v5711_v48, 16  ;;  %v3819_v4 = vor.u32 %v3818_v59, %v8146_v61  ;;  %v3867_v23 = vor.u32 %v3866_v51, %v8160_v10  ;;  %v3881_v59 = vor.u32 %v3880_v57, %v3877_v17  ;;  %v8208_v57 = vld [vmem:[%s7061_s27 + $0xa4] sm:$0x1] }
  0xf0   : > { %v3833_v53 = vor.u32 %v3832_v7, %v3829_v60  ;;  %v3843_v48 = vor.u32 %v3842_v6, %v8158_v20  ;;  %v3904_v18 = vrot.slane %v3902_v9, 5  ;;  %v8996_v44 = vcombine.low %v7835_v11, %v7839_v40 }
  0xf1   : > { %v3901_v63 = vrot.slane %v3899_v62, 4  ;;  %v8997_v31 = vrot.slane %v8097_v54, 5  ;;  %v3824_v51 = vrot.slane %v3822_v49, 5  ;;  %v3891_v60 = vor.u32 %v3890_v34, %v8170_v46  ;;  %v8211_v34 = vld [vmem:[%s7061_s27 + $0xac] sm:$0xf] }
  0xf2   : > { %v3894_v9 = vshll.u32 %v8175_v3, 16  ;;  %v8998_v11 = vcombine.low %v7907_v39, %v7911_v55  ;;  %v3810_v40 = vrot.slane %v3809_v26, 4  ;;  %v8204_v54 = vrot.slane %v3908_v50, 5 }
  0xf3   : > { %v3834_v7 = vrot.slane %v3833_v53, 4  ;;  %v3844_v6 = vrot.slane %v3843_v48, 4  ;;  %v3848_v8 = vrot.slane %v3846_v27, 5  ;;  %v3872_v17 = vrot.slane %v3870_v33, 5  ;;  %v8221_v48 = vld [vmem:[%s7061_s27 + $0xb0] sm:$0x1] }
  0xf4   : > { %v3858_v39 = vrot.slane %v3857_v22, 4  ;;  %v3868_v55 = vrot.slane %v3867_v23, 4  ;;  %v3882_v62 = vrot.slane %v3881_v59, 4  ;;  %v3905_v49 = vor.u32 %v3904_v18, %v3901_v63 }
  0xf5   : > { %6381 = vmatmul.mubr.msk.bf16.vlgmr.msra.gmra.mrb[0].mxu0 %vm709_vm3, %v7951_v16  ;;  %v8194_v16 = vsel %vm7313_vm7, %v8119_v28, %v8997_v31  ;;  %v3914_v28 = vrot.slane %v3912_v52, 4  ;;  %v3896_v26 = vrot.slane %v3894_v9, 5  ;;  %v3815_v52 = vsel %vm7087_vm4, %v3810_v40, %v8146_v61 }
  0xf6   : > { %6227 = vmatmul.mubr.msk.bf16.gmra.mrb[16].mxu1 %vm709_vm3, %v8996_v44  ;;  %6413 = vmatpush3.bf16.msra.mxu0 %v7892_v14  ;;  %v3820_v14 = vrot.slane %v3819_v4, 4  ;;  %v5714_v44 = vld [vmem:[%s7061_s27 + $0xa8] sm:$0xf]  ;;  %v3918_v22 = vshll.u32 %v8208_v57, 16  ;;  %v3839_v33 = vsel %vm7087_vm4, %v3834_v7, %v8158_v20  ;;  %v3849_v23 = vsel %vm7087_vm4, %v3844_v6, %v3848_v8 }
  0xf7   : > { %6230 = vmatprep.mubr.msk.bf16.mxu1 %vm709_vm3, %v8998_v11  ;;  %6384 = vmatprep.mubr.msk.bf16.mxu0 %vm709_vm3, %v7962_v29  ;;  %v3892_v29 = vrot.slane %v3891_v60, 4  ;;  %v3923_v4 = vshrl.u32 %v5714_v44, 16  ;;  %v3926_v50 = vshll.u32 %v5714_v44, 16  ;;  %v3915_v53 = vor.u32 %v3914_v28, %v8204_v54  ;;  %v5763_v11 = vld [vmem:[%s7061_s27 + $0x48] sm:$0xe] }
  0xf8   : > { %v3825_v27 = vsel %vm7087_vm4, %v3820_v14, %v3824_v51  ;;  %v3932_v59 = vshll.u32 %v8211_v34, 16  ;;  %v3936_v61 = vshrl.u32 %v8211_v34, 16  ;;  %v3863_v63 = vsel %vm7087_vm4, %v3858_v39, %v8160_v10  ;;  %v8286_v39 = vld [vmem:[%s7061_s27 + $0xb8] sm:$0xf] }
  0xf9   : > { %v3873_v18 = vsel %vm7087_vm4, %v3868_v55, %v3872_v17  ;;  %v3887_v20 = vsel %vm7087_vm4, %v3882_v62, %v8170_v46  ;;  %v3906_v31 = vrot.slane %v3905_v49, 4  ;;  %v8999_v51 = vcombine.low %v7924_v12, %v7939_v35 }
  0xfa   : > { %v3925_v10 = vrot.slane %v3923_v4, 4  ;;  %v3928_v60 = vrot.slane %v3926_v50, 5  ;;  %v3942_v9 = vshll.u32 %v8221_v48, 16  ;;  %v9000_v46 = vcombine.low %v8009_v21, %v8034_v56  ;;  %v5717_v21 = vld [vmem:[%s7061_s27 + $0xb4] sm:$0xf] }
  0xfb   : > { %v5384_v12 = vcombine.low %v8085_v42, %v8092_v47  ;;  %v9001_v35 = vsel %vm7087_vm4, %v8105_v5, %v8094_v41  ;;  %v3916_v14 = vrot.slane %v3915_v53, 4  ;;  %v3920_v28 = vrot.slane %v3918_v22, 5  ;;  %v5765_v4 = vld [vmem:[%s7061_s27 + $0x60] sm:$0xe]  ;;  %v5766_v53 = vld [vmem:[%s7061_s27 + $0x6c] sm:$0xe] }
  0xfc   : > { %v5385_v56 = vcombine.low %v8109_v43, %v8194_v16  ;;  %v8269_v44 = vcombine.low %v3815_v52, %v3825_v27  ;;  %v8271_v42 = vrot.slane %v3932_v59, 5  ;;  %v3938_v47 = vrot.slane %v3936_v61, 4  ;;  %v9010_v16 = vld [vmem:[#allocation4_spill] sm:$0xff] }
  0xfd   : > { %6385 = vmatmul.mubr.msk.bf16.gmra.mrb[4].mxu0 %vm709_vm3, %v8065_v37  ;;  %v3897_v37 = vsel %vm7087_vm4, %v3892_v29, %v3896_v26  ;;  %v8273_v41 = vcombine.low %v3839_v33, %v3849_v23  ;;  %v8275_v5 = vcombine.low %v3863_v63, %v3873_v18  ;;  %v3911_v6 = vsel %vm7087_vm4, %v3906_v31, %v8204_v54  ;;  %v9003_v23 = vld [vmem:[#allocation11_spill] sm:$0xff]  ;;  %v5720_v63 = vld [vmem:[%s7061_s27 + $0xc0] sm:$0xf]  ;;  %v9005_v18 = vld [vmem:[#allocation9_spill] sm:$0xff] }
  0xfe   : > { %6231 = vmatmul.mubr.msk.bf16.gmra.mrb[20].mxu1 %vm709_vm3, %v8999_v51  ;;  %6388 = vmatprep.mubr.msk.bf16.mxu0 %vm709_vm3, %v8079_v58  ;;  %v9002_v58 = vsel %vm7087_vm4, %v8067_v19, %v8022_v1  ;;  %v8277_v7 = vcombine.low %v3887_v20, %v3897_v37  ;;  %v5779_v1 = vrot.slane %v5763_v11, 9  ;;  %v5764_v19 = vld [vmem:[%s7061_s27 + $0x54] sm:$0xe]  ;;  %v3929_v8 = vor.u32 %v3928_v60, %v3925_v10  ;;  %v9006_v31 = vld [vmem:[#allocation10_spill] sm:$0xff] }
  0xff   : > { %6234 = vmatprep.mubr.msk.bf16.mxu1 %vm709_vm3, %v9000_v46  ;;  %v5733_v40 = vcombine.low %v9002_v58, %v9001_v35  ;;  %v8283_v17 = vrot.slane %v3942_v9, 5  ;;  %v3947_v55 = vshrl.u32 %v5717_v21, 16  ;;  %v3921_v62 = vsel %vm7087_vm4, %v3916_v14, %v3920_v28  ;;  %v9007_v9 = vld [vmem:[#allocation12_spill] sm:$0xff]  ;;  %v8335_v35 = vld [vmem:[%s7061_s27 + $0xbc] sm:$0x1] }
 0x100   : > { %v3950_v49 = vshll.u32 %v5717_v21, 16  ;;  %v4406_v29 = vrot.slane %v7917_v0, 5  ;;  %v4409_v26 = vrot.slane %v7971_v38, 5  ;;  %v3939_v50 = vor.u32 %v3938_v47, %v8271_v42  ;;  %v8338_v58 = vld [vmem:[%s7061_s27 + $0xc4] sm:$0xf] }
 0x101   : > { %v5780_v52 = vrot.slane %v5764_v19, 9  ;;  %v4413_v54 = vrot.slane %v7928_v24, 5  ;;  %v4416_v27 = vrot.slane %v7980_v15, 5  ;;  %v3956_v22 = vshll.u32 %v8286_v39, 16  ;;  %v5767_v19 = vld [vmem:[%s7061_s27 + $0x78] sm:$0xe] }
 0x102   : > { %v3960_v33 = vshrl.u32 %v8286_v39, 16  ;;  %v8303_v0 = vsel %vm7313_vm7, %v5779_v1, %v4406_v29  ;;  %v4408_v38 = vrot.slane %v4406_v29, 4  ;;  %v9004_v59 = vcombine.low %v8042_v36, %v9003_v23  ;;  %v9008_v23 = vld [vmem:[#allocation13_spill] sm:$0xff] }
 0x103   : > { %v8310_v24 = vcombine.low %v3911_v6, %v3921_v62  ;;  %v8314_v15 = vsel %vm7313_vm7, %v5780_v52, %v4413_v54  ;;  %v5781_v61 = vrot.slane %v5765_v4, 9  ;;  %v4420_v20 = vrot.slane %v9005_v18, 5  ;;  %v6771_v6 = vld [vmem:[%s7061_s27 + $0xc] sm:$0xff]  }
 0x104   : > { %v8320_v36 = vsel %vm7313_vm7, %v4408_v38, %v4409_v26  ;;  %v4423_v51 = vrot.slane %v9006_v31, 5  ;;  %v5782_v37 = vrot.slane %v5766_v53, 9  ;;  %v4427_v11 = vrot.slane %v9007_v9, 5 }
 0x105   : > { %6389 = vmatmul.mubr.msk.bf16.gmra.mrb[8].mxu0 %vm709_vm3, %v8088_v30  ;;  %v4415_v30 = vrot.slane %v4413_v54, 4  ;;  %v5796_v10 = vcombine.low %v8303_v0, %v8320_v36  ;;  %v4430_v46 = vrot.slane %v8138_v45, 5  ;;  %v8344_v14 = vsel %vm7313_vm7, %v5781_v61, %v4420_v20 }
 0x106   : > { %6235 = vmatmul.mubr.msk.bf16.gmra.mrb[24].mxu1 %vm709_vm3, %v9004_v59  ;;  %6392 = vmatprep.mubr.msk.bf16.mxu0 %vm709_vm3, %v5733_v40  ;;  %v4422_v28 = vrot.slane %v4420_v20, 4  ;;  %v8346_v21 = vrot.slane %v3947_v55, 4  ;;  %v3971_v47 = vshrl.u32 %v5720_v63, 16  ;;  %v8350_v45 = vsel %vm7313_vm7, %v5782_v37, %v4427_v11  ;;  %v5494_v55 = vld [vmem:[%s7061_s27 + $0x78] sm:$0xf]  ;;  %v9009_v59 = vld [vmem:[#allocation16_spill] sm:$0xff] }
 0x107   : > { %6238 = vmatprep.mubr.msk.bf16.mxu1 %vm709_vm3, %v5384_v12  ;;  %v8328_v60 = vsel %vm7313_vm7, %v4415_v30, %v4416_v27  ;;  %v8332_v12 = vrot.slane %v3929_v8, 4  ;;  %v4429_v1 = vrot.slane %v4427_v11, 4  ;;  %v8354_v8 = vrot.slane %v3939_v50, 4 }
 0x108   : > { %v5797_v40 = vcombine.low %v8314_v15, %v8328_v60  ;;  %v8356_v62 = vrot.slane %v3950_v49, 5  ;;  %v3974_v29 = vshll.u32 %v5720_v63, 16  ;;  %v8360_v26 = vsel %vm7313_vm7, %v4422_v28, %v4423_v51  ;;  %v9012_v28 = vld [vmem:[#allocation14_spill] sm:$0xff] }
 0x109   : > { %v8363_v4 = vrot.slane %v3956_v22, 5  ;;  %v8365_v52 = vrot.slane %v3960_v33, 4  ;;  %v5798_v54 = vcombine.low %v8344_v14, %v8360_v26  ;;  %v8371_v27 = vsel %vm7313_vm7, %v4429_v1, %v4430_v46  ;;  %v5768_v33 = vld [vmem:[%s7061_s27 + $0x84] sm:$0xe]  ;;  %v6772_v1 = vld [vmem:[%s7061_s27 + $0x18] sm:$0xff]  }
 0x10a   : > { %v3966_v49 = vshll.u32 %v8335_v35, 16  ;;  %v3980_v50 = vshll.u32 %v8338_v58, 16  ;;  %v5799_v53 = vcombine.low %v8350_v45, %v8371_v27  ;;  %v5783_v22 = vrot.slane %v5767_v19, 9  ;;  %v6962_v60 = vld [vmem:[%s7061_s27 + $0xa0] sm:$0xf] }
 0x10b   : > { %v3973_v38 = vrot.slane %v3971_v47, 4  ;;  %v4437_v30 = vrot.slane %v9009_v59, 5  ;;  %v2296_v61 = vshrl.u32 %v5494_v55, 16  ;;  %v3976_v63 = vrot.slane %v3974_v29, 5  ;;  %v5723_v29 = vld [vmem:[%s7061_s27 + $0xcc] sm:$0xf] }
 0x10c   : > { %v3984_v18 = vshrl.u32 %v8338_v58, 16  ;;  %v2299_v43 = vshll.u32 %v5494_v55, 16  ;;  %v5784_v37 = vrot.slane %v5768_v33, 9  ;;  %v3935_v9 = vsel %vm7087_vm4, %v8332_v12, %v8271_v42  ;;  %v8414_v55 = vld [vmem:[%s7061_s27 + $0xd0] sm:$0xf] }
 0x10d   : > { %6393 = vmatmul.mubr.msk.bf16.gmra.mrb[12].mxu0 %vm709_vm3, %v8269_v44  ;;  %v4434_v44 = vrot.slane %v9008_v23, 5  ;;  %v2298_v51 = vrot.slane %v2296_v61, 4  ;;  %v3953_v11 = vor.u32 %v8356_v62, %v8346_v21  ;;  %v4441_v47 = vrot.slane %v9012_v28, 5  ;;  %v6773_v21 = vld [vmem:[%s7061_s27 + $0x24] sm:$0xff]   ;;  %v6966_v27 = vld [vmem:[%s7061_s27 + $0xac] sm:$0xf] }
 0x10e   : > { %6239 = vmatmul.mubr.msk.bf16.gmra.mrb[28].mxu1 %vm709_vm3, %v5385_v56  ;;  %6396 = vmatprep.mubr.msk.bf16.mxu0 %vm709_vm3, %v8273_v41  ;;  %v9011_v56 = vld [vmem:[#allocation5_spill] sm:$0xff]  ;;  %v2301_v46 = vrot.slane %v2299_v43, 5  ;;  %v3945_v19 = vsel %vm7087_vm4, %v8354_v8, %v8283_v17  ;;  %v4444_v12 = vrot.slane %v8166_v2, 5  ;;  %v8422_v62 = vrot.slane %v3980_v50, 5  ;;  %v5769_v8 = vld [vmem:[%s7061_s27 + $0x90] sm:$0xe] }
 0x10f   : > { %6244 = vmatprep.mubr.msk.bf16.mxu1 %vm709_vm3, %v6771_v6  ;;  %v2318_v41 = vsel %vm7087_vm4, %v9011_v56, %v9010_v16  ;;  %v8396_v20 = vsel %vm7313_vm7, %v5783_v22, %v4434_v44  ;;  %v4436_v31 = vrot.slane %v4434_v44, 4  ;;  %v3963_v6 = vor.u32 %v8365_v52, %v8363_v4  ;;  %v8428_v52 = vld [vmem:[%s7061_s27 + $0xc8] sm:$0x1]  ;;  %v9014_v16 = vld [vmem:[#allocation2_spill] sm:$0xff] }
 0x110   : > { %v3986_v22 = vrot.slane %v3984_v18, 4  ;;  %v2302_v17 = vor.u32 %v2301_v46, %v2298_v51  ;;  %v3968_v23 = vrot.slane %v3966_v49, 5  ;;  %v3977_v44 = vor.u32 %v3976_v63, %v3973_v38  ;;  %v9015_v51 = vld [vmem:[#allocation3_spill] sm:$0xff] }
 0x111   : > { %v8418_v42 = vsel %vm7313_vm7, %v4436_v31, %v4437_v30  ;;  %v8432_v59 = vsel %vm7313_vm7, %v5784_v37, %v4441_v47  ;;  %v4443_v30 = vrot.slane %v4441_v47, 4  ;;  %v3995_v2 = vshrl.u32 %v5723_v29, 16 }
 0x112   : > { %v5800_v33 = vcombine.low %v8396_v20, %v8418_v42  ;;  %v3998_v50 = vshll.u32 %v5723_v29, 16  ;;  %v4004_v61 = vshll.u32 %v8414_v55, 16  ;;  %v2303_v18 = vrot.slane %v2302_v17, 4  ;;  %v6774_v29 = vld [vmem:[%s7061_s27 + $0x30] sm:$0xff]  }
 0x113   : > { %v4008_v49 = vshrl.u32 %v8414_v55, 16  ;;  %v8443_v38 = vsel %vm7313_vm7, %v4443_v30, %v4444_v12  ;;  %v5785_v63 = vrot.slane %v5769_v8, 9  ;;  %v3987_v56 = vor.u32 %v3986_v22, %v8422_v62 }
 0x114   : > { %v3990_v31 = vshll.u32 %v8428_v52, 16  ;;  %v5801_v37 = vcombine.low %v8432_v59, %v8443_v38  ;;  %v5739_v46 = vcombine.low %v3935_v9, %v3945_v19  ;;  %v3954_v28 = vrot.slane %v3953_v11, 4  ;;  %v5770_v11 = vld [vmem:[%s7061_s27 + $0x9c] sm:$0xe] }
 0x115   : > { %6397 = vmatmul.mubr.msk.bf16.gmra.mrb[16].mxu0 %vm709_vm3, %v8275_v5  ;;  %v9013_v5 = vld [vmem:[#allocation15_spill] sm:$0xff]  ;;  %v3964_v47 = vrot.slane %v3963_v6, 4  ;;  %v3978_v12 = vrot.slane %v3977_v44, 4  ;;  %v4451_v8 = vrot.slane %v8175_v3, 5  ;;  %v3997_v30 = vrot.slane %v3995_v2, 4  ;;  %v6775_v19 = vld [vmem:[%s7061_s27 + $0x3c] sm:$0xff]  }
 0x116   : > { %6245 = vmatmul.mubr.msk.bf16.vlgmr.msra.gmra.mrb[0].mxu1 %vm709_vm3, %v6772_v1  ;;  %6400 = vmatprep.mubr.msk.bf16.mxu0 %vm709_vm3, %v8277_v7  ;;  %v4448_v43 = vrot.slane %v9013_v5, 5  ;;  %v2308_v7 = vsel %vm7087_vm4, %v2303_v18, %v9015_v51  ;;  %v4000_v18 = vrot.slane %v3998_v50, 5  ;;  %v8466_v5 = vrot.slane %v4004_v61, 5 }
 0x117   : > { %6447 = vmatpush3.bf16.msra.mxu1 %v9014_v16  ;;  %6248 = vmatprep.mubr.msk.bf16.mxu1 %vm709_vm3, %v6773_v21  ;;  %v8455_v1 = vcombine.low %v2308_v7, %v2318_v41  ;;  %v8459_v21 = vld [vmem:[%s7061_s27 + $0xd4] sm:$0x1]  ;;  %v4010_v9 = vrot.slane %v4008_v49, 4  ;;  %v3988_v41 = vrot.slane %v3987_v56, 4  ;;  %v3992_v6 = vrot.slane %v3990_v31, 5 }
 0x118   : > { %v8463_v22 = vsel %vm7313_vm7, %v5785_v63, %v4448_v43  ;;  %v4450_v17 = vrot.slane %v4448_v43, 4  ;;  %v3959_v63 = vsel %vm7087_vm4, %v3954_v28, %v8363_v4  ;;  %v3969_v2 = vsel %vm7087_vm4, %v3964_v47, %v3968_v23  ;;  %v6953_v16 = vld [vmem:[%s7061_s27 + $0x1c] sm:$0xf]  ;;  %v5771_v28 = vld [vmem:[%s7061_s27 + $0xa8] sm:$0xe] }
 0x119   : > { %v4014_v50 = vshll.u32 %v8459_v21, 16  ;;  %v5786_v61 = vrot.slane %v5770_v11, 9  ;;  %v4455_v49 = vrot.slane %v8163_v25, 5  ;;  %v3983_v4 = vsel %vm7087_vm4, %v3978_v12, %v8422_v62  ;;  %v5759_v62 = vld [vmem:[%s7061_s27 + $0x18] sm:$0xe]  ;;  %v6776_v47 = vld [vmem:[%s7061_s27 + $0x48] sm:$0xff]  }
 0x11a   : > { %v8472_v44 = vsel %vm7313_vm7, %v4450_v17, %v4451_v8  ;;  %v4011_v43 = vor.u32 %v4010_v9, %v8466_v5  ;;  %v4458_v23 = vrot.slane %v8208_v57, 5  ;;  %v3993_v25 = vsel %vm7087_vm4, %v3988_v41, %v3992_v6  ;;  %v6954_v11 = vld [vmem:[%s7061_s27 + $0x20] sm:$0x1] }
 0x11b   : > { %v5802_v3 = vcombine.low %v8463_v22, %v8472_v44  ;;  %v4378_v56 = vrot.slane %v6953_v16, 5  ;;  %v8498_v31 = vsel %vm7313_vm7, %v5786_v61, %v4455_v49  ;;  %v4457_v51 = vrot.slane %v4455_v49, 4  ;;  %v5772_v49 = vld [vmem:[%s7061_s27 + $0xb4] sm:$0xe] }
 0x11c   : > { %v5740_v7 = vcombine.low %v3959_v63, %v3969_v2  ;;  %v4012_v17 = vrot.slane %v4011_v43, 4  ;;  %v5787_v41 = vrot.slane %v5771_v28, 9  ;;  %v4462_v6 = vrot.slane %v8211_v34, 5  ;;  %v5760_v2 = vld [vmem:[%s7061_s27 + $0x24] sm:$0xe] }
 0x11d   : > { %6401 = vmatmul.mubr.msk.bf16.gmra.mrb[20].mxu0 %vm709_vm3, %v8310_v24  ;;  %v4001_v24 = vor.u32 %v4000_v18, %v3997_v30  ;;  %v8503_v57 = vsel %vm7313_vm7, %v4457_v51, %v4458_v23  ;;  %v6777_v30 = vld [vmem:[%s7061_s27 + $0x54] sm:$0xff]   ;;  %v5775_v18 = vrot.slane %v5759_v62, 9  ;;  %v4380_v9 = vrot.slane %v4378_v56, 4  ;;  %v6957_v28 = vld [vmem:[%s7061_s27 + $0x2c] sm:$0x1] }
 0x11e   : > { %6249 = vmatmul.mubr.msk.bf16.gmra.mrb[4].mxu1 %vm709_vm3, %v6774_v29  ;;  %6404 = vmatprep.mubr.msk.bf16.mxu0 %vm709_vm3, %v5739_v46  ;;  %v4016_v46 = vrot.slane %v4014_v50, 5  ;;  %v5741_v29 = vcombine.low %v3983_v4, %v3993_v25  ;;  %v5803_v8 = vcombine.low %v8498_v31, %v8503_v57  ;;  %v4465_v63 = vrot.slane %v8221_v48, 5  ;;  %v6955_v50 = vld [vmem:[%s7061_s27 + $0x28] sm:$0xf]  ;;  %v5761_v25 = vld [vmem:[%s7061_s27 + $0x30] sm:$0xe] }
 0x11f   : > { %6252 = vmatprep.mubr.msk.bf16.mxu1 %vm709_vm3, %v6775_v19  ;;  %v4002_v12 = vrot.slane %v4001_v24, 4  ;;  %v4381_v19 = vrot.slane %v6954_v11, 5  ;;  %v4385_v61 = vrot.slane %v6955_v50, 5  ;;  %v8526_v48 = vsel %vm7313_vm7, %v5787_v41, %v4462_v6  ;;  %v6779_v11 = vld [vmem:[%s7061_s27 + $0x6c] sm:$0xff]   ;;  %v9016_v41 = vld [vmem:[#allocation6_spill] sm:$0xff] }
 0x120   : > { %v4017_v34 = vsel %vm7087_vm4, %v4012_v17, %v4016_v46  ;;  %v4464_v24 = vrot.slane %v4462_v6, 4  ;;  %v4379_v43 = vsel %vm7313_vm7, %v5775_v18, %v4378_v56  ;;  %v5776_v51 = vrot.slane %v5760_v2, 9  ;;  %v5773_v50 = vld [vmem:[%s7061_s27 + $0xc0] sm:$0xe]  ;;  %v6971_v31 = vld [vmem:[%s7061_s27 + $0xc8] sm:$0x1] }
 0x121   : > { %v4007_v4 = vsel %vm7087_vm4, %v4002_v12, %v8466_v5  ;;  %v4382_v23 = vsel %vm7313_vm7, %v4380_v9, %v4381_v19  ;;  %v6956_v5 = vld [vmem:[%s7061_s27 + $0x34] sm:$0xf]  ;;  %v6778_v12 = vld [vmem:[%s7061_s27 + $0x60] sm:$0xff]   ;;  %v5777_v18 = vrot.slane %v5761_v25, 9  ;;  %v4472_v9 = vrot.slane %v8335_v35, 5 }
 0x122   : > { %v4392_v16 = vrot.slane %v6956_v5, 5  ;;  %v8537_v62 = vsel %vm7313_vm7, %v4464_v24, %v4465_v63  ;;  %v5742_v46 = vcombine.low %v4007_v4, %v4017_v34  ;;  %v5792_v17 = vcombine.low %v4379_v43, %v4382_v23  ;;  %v5762_v24 = vld [vmem:[%s7061_s27 + $0x3c] sm:$0xe] }
 0x123   : > { %v5804_v56 = vcombine.low %v8526_v48, %v8537_v62  ;;  %v4395_v6 = vrot.slane %v9016_v41, 5  ;;  %v4386_v35 = vsel %vm7313_vm7, %v5776_v51, %v4385_v61  ;;  %v5789_v5 = vrot.slane %v5773_v50, 9 }
 0x124   : > { %v4394_v19 = vrot.slane %v4392_v16, 4  ;;  %v4393_v23 = vsel %vm7313_vm7, %v5777_v18, %v4392_v16  ;;  %v4479_v51 = vrot.slane %v8428_v52, 5  ;;  %v2459_v57 = vshll.u32 %v6971_v31, 16 }
 0x125   : > { %6405 = vmatmul.mubr.msk.bf16.gmra.mrb[24].mxu0 %vm709_vm3, %v5740_v7  ;;  %v5788_v7 = vrot.slane %v5772_v49, 9 }
 0x126   : > { %6253 = vmatmul.mubr.msk.bf16.gmra.mrb[8].mxu1 %vm709_vm3, %v6776_v47  ;;  %6408 = vmatprep.mubr.msk.bf16.mxu0 %vm709_vm3, %v5741_v29  ;;  %v4388_v47 = vrot.slane %v6957_v28, 5  ;;  %v4469_v29 = vrot.slane %v8286_v39, 5  ;;  %v9017_v39 = vld [vmem:[#allocation7_spill] sm:$0xff]  ;;  %v4396_v25 = vsel %vm7313_vm7, %v4394_v19, %v4395_v6  ;;  %v5778_v28 = vrot.slane %v5762_v24, 9 }
 0x127   : > { %6256 = vmatprep.mubr.msk.bf16.mxu1 %vm709_vm3, %v6777_v30  ;;  %v4387_v30 = vrot.slane %v4385_v61, 4  ;;  %v4399_v49 = vrot.slane %v9017_v39, 5  ;;  %v4476_v61 = vrot.slane %v8338_v58, 5  ;;  %v6958_v39 = vld [vmem:[%s7061_s27 + $0x70] sm:$0xf]  ;;  %v4483_v24 = vrot.slane %v8414_v55, 5 }
 0x128   : > { %v8549_v63 = vsel %vm7313_vm7, %v5788_v7, %v4469_v29  ;;  %v4471_v2 = vrot.slane %v4469_v29, 4  ;;  %v5491_v7 = vld [vmem:[%s7061_s27 + $0x6c] sm:$0xf]  ;;  %v9018_v29 = vld [vmem:[#allocation8_spill] sm:$0xff] }
 0x129   : > { %v4389_v34 = vsel %vm7313_vm7, %v4387_v30, %v4388_v47  ;;  %v4401_v47 = vrot.slane %v4399_v49, 4  ;;  %v6780_v30 = vld [vmem:[%s7061_s27 + $0x78] sm:$0xff]   ;;  %v8580_v16 = vsel %vm7313_vm7, %v5789_v5, %v4476_v61  ;;  %v4478_v18 = vrot.slane %v4476_v61, 4 }
 0x12a   : > { %v8556_v4 = vsel %vm7313_vm7, %v4471_v2, %v4472_v9  ;;  %v5794_v9 = vcombine.low %v4393_v23, %v4396_v25  ;;  %v2272_v19 = vshrl.u32 %v5491_v7, 16  ;;  %v2275_v41 = vshll.u32 %v5491_v7, 16 }
 0x12b   : > { %v5805_v43 = vcombine.low %v8549_v63, %v8556_v4  ;;  %v8585_v58 = vsel %vm7313_vm7, %v4478_v18, %v4479_v51  ;;  %v4400_v6 = vsel %vm7313_vm7, %v5778_v28, %v4399_v49  ;;  %v4486_v49 = vrot.slane %v8459_v21, 5  ;;  %v6782_v51 = vld [vmem:[%s7061_s27 + $0x90] sm:$0xff]   ;;  %v6783_v21 = vld [vmem:[%s7061_s27 + $0x9c] sm:$0xff]  }
 0x12c   : > { %v5806_v50 = vcombine.low %v8580_v16, %v8585_v58  ;;  %v2274_v23 = vrot.slane %v2272_v19, 4  ;;  %v2277_v25 = vrot.slane %v2275_v41, 5  ;;  %v4485_v7 = vrot.slane %v4483_v24, 4 }
 0x12d   : > { %6409 = vmatmul.mubr.msk.bf16.gmra.mrb[28].mxu0 %vm709_vm3, %v5742_v46  ;;  %v5793_v46 = vcombine.low %v4386_v35, %v4389_v34  ;;  %v2281_v35 = vshll.u32 %v6958_v39, 16  ;;  %v2285_v34 = vshrl.u32 %v6958_v39, 16 }
 0x12e   : > { %6257 = vmatmul.mubr.msk.bf16.gmra.mrb[12].mxu1 %vm709_vm3, %v6778_v12  ;;  %6414 = vmatprep.mubr.msk.bf16.mxu0 %vm709_vm3, %v5792_v17  ;;  %v4402_v12 = vrot.slane %v9018_v29, 5  ;;  %v5774_v17 = vld [vmem:[%s7061_s27 + $0xcc] sm:$0xe]  ;;  %v8607_v55 = vsel %vm7313_vm7, %v4485_v7, %v4486_v49 }
 0x12f   : > { %6260 = vmatprep.mubr.msk.bf16.mxu1 %vm709_vm3, %v6779_v11  ;;  %v6781_v11 = vld [vmem:[%s7061_s27 + $0x84] sm:$0xff]   ;;  %v5790_v52 = vrot.slane %v5774_v17, 9  ;;  %v2287_v28 = vrot.slane %v2285_v34, 4  ;;  %v6959_v17 = vld [vmem:[%s7061_s27 + $0x74] sm:$0x1] }
 0x130   : > { %v4403_v2 = vsel %vm7313_vm7, %v4401_v47, %v4402_v12  ;;  %v5497_v47 = vld [vmem:[%s7061_s27 + $0x84] sm:$0xf]  ;;  %v2278_v12 = vor.u32 %v2277_v25, %v2274_v23  ;;  %v6785_v34 = vld [vmem:[%s7061_s27 + $0xb4] sm:$0xff]  }
 0x131   : > { %v8602_v5 = vsel %vm7313_vm7, %v5790_v52, %v4483_v24  ;;  %v5795_v61 = vcombine.low %v4400_v6, %v4403_v2  ;;  %v2323_v18 = vshll.u32 %v5497_v47, 16  ;;  %v5500_v6 = vld [vmem:[%s7061_s27 + $0x90] sm:$0xf]  ;;  %v6784_v2 = vld [vmem:[%s7061_s27 + $0xa8] sm:$0xff]  }
 0x132   : > { %v5807_v29 = vcombine.low %v8602_v5, %v8607_v55  ;;  %v2279_v52 = vrot.slane %v2278_v12, 4  ;;  %v2344_v23 = vshrl.u32 %v5500_v6, 16  ;;  %v2347_v25 = vshll.u32 %v5500_v6, 16 }
 0x133   : > { %v2377_v12 = vshll.u32 %v6962_v60, 16 }
 0x134   : > { %v2349_v14 = vrot.slane %v2347_v25, 5  ;;  %v6965_v25 = vld [vmem:[%s7061_s27 + $0xa4] sm:$0x1] }
 0x135   : > { %6415 = vmatmul.mubr.msk.bf16.vlgmr.msra.gmra.mrb[0].mxu0 %vm709_vm3, %v5793_v46  ;;  %v2283_v46 = vrot.slane %v2281_v35, 5  ;;  %v5503_v35 = vld [vmem:[%s7061_s27 + $0x9c] sm:$0xf]  ;;  %v8649_v6 = vrot.slane %v2377_v12, 5 }
 0x136   : > { %6261 = vmatmul.mubr.msk.bf16.gmra.mrb[16].mxu1 %vm709_vm3, %v6780_v30  ;;  %6418 = vmatprep.mubr.msk.bf16.mxu0 %vm709_vm3, %v5794_v9  ;;  %v2291_v30 = vshll.u32 %v6959_v17, 16  ;;  %v2320_v9 = vshrl.u32 %v5497_v47, 16  ;;  %v2371_v47 = vshll.u32 %v5503_v35, 16  ;;  %v6963_v17 = vld [vmem:[%s7061_s27 + $0x8c] sm:$0x1] }
 0x137   : > { %6264 = vmatprep.mubr.msk.bf16.mxu1 %vm709_vm3, %v6781_v11  ;;  %v2288_v13 = vor.u32 %v2287_v28, %v2283_v46  ;;  %v6960_v11 = vld [vmem:[%s7061_s27 + $0x88] sm:$0xf]  ;;  %v2284_v7 = vsel %vm7087_vm4, %v2279_v52, %v2283_v46 }
 0x138   : > { %v2329_v19 = vshll.u32 %v6960_v11, 16  ;;  %v2333_v41 = vshrl.u32 %v6960_v11, 16  ;;  %v2293_v0 = vrot.slane %v2291_v30, 5  ;;  %v2322_v36 = vrot.slane %v2320_v9, 4 }
 0x139   : > { %v2289_v39 = vrot.slane %v2288_v13, 4  ;;  %v2339_v30 = vshll.u32 %v6963_v17, 16  ;;  %v2346_v9 = vrot.slane %v2344_v23, 4  ;;  %v2373_v11 = vrot.slane %v2371_v47, 5 }
 0x13a   : > { %v8626_v24 = vrot.slane %v2329_v19, 5  ;;  %v2335_v49 = vrot.slane %v2333_v41, 4  ;;  %v6786_v19 = vld [vmem:[%s7061_s27 + $0xc0] sm:$0xff]  }
 0x13b   : > { %v2294_v46 = vsel %vm7087_vm4, %v2289_v39, %v2293_v0  ;;  %v5506_v39 = vld [vmem:[%s7061_s27 + $0xa8] sm:$0xf] }
 0x13c   : > { %v2336_v13 = vor.u32 %v2335_v49, %v8626_v24  ;;  %v5524_v41 = vcombine.low %v2284_v7, %v2294_v46  ;;  %v2387_v7 = vshll.u32 %v6965_v25, 16  ;;  %v2395_v45 = vshll.u32 %v5506_v39, 16 }
 0x13d   : > { %6419 = vmatmul.mubr.msk.bf16.gmra.mrb[4].mxu0 %vm709_vm3, %v5795_v61  ;;  %v6961_v61 = vld [vmem:[%s7061_s27 + $0x94] sm:$0xf] }
 0x13e   : > { %6265 = vmatmul.mubr.msk.bf16.gmra.mrb[20].mxu1 %vm709_vm3, %v6782_v51  ;;  %6422 = vmatprep.mubr.msk.bf16.mxu0 %vm709_vm3, %v5796_v10  ;;  %v2325_v10 = vrot.slane %v2323_v18, 5  ;;  %v2353_v51 = vshll.u32 %v6961_v61, 16  ;;  %v2357_v28 = vshrl.u32 %v6961_v61, 16  ;;  %v2337_v0 = vrot.slane %v2336_v13, 4 }
 0x13f   : > { %6268 = vmatprep.mubr.msk.bf16.mxu1 %vm709_vm3, %v6783_v21  ;;  %v2368_v21 = vshrl.u32 %v5503_v35, 16  ;;  %v6964_v35 = vld [vmem:[%s7061_s27 + $0x98] sm:$0x1]  ;;  %v2392_v61 = vshrl.u32 %v5506_v39, 16  ;;  %v5512_v39 = vld [vmem:[%s7061_s27 + $0xc0] sm:$0xf] }
 0x140   : > { %v2326_v15 = vor.u32 %v2325_v10, %v2322_v36  ;;  %v8646_v26 = vrot.slane %v2353_v51, 5  ;;  %v2341_v36 = vrot.slane %v2339_v30, 5  ;;  %v2350_v10 = vor.u32 %v2349_v14, %v2346_v9  ;;  %v5509_v51 = vld [vmem:[%s7061_s27 + $0xb4] sm:$0xf] }
 0x141   : > { %v2370_v18 = vrot.slane %v2368_v21, 4  ;;  %v2405_v21 = vshrl.u32 %v6966_v27, 16  ;;  %v2416_v20 = vshrl.u32 %v5509_v51, 16  ;;  %v2419_v42 = vshll.u32 %v5509_v51, 16 }
 0x142   : > { %v2327_v52 = vrot.slane %v2326_v15, 4  ;;  %v2342_v46 = vsel %vm7087_vm4, %v2337_v0, %v2341_v36  ;;  %v2351_v15 = vrot.slane %v2350_v10, 4  ;;  %v2389_v30 = vrot.slane %v2387_v7, 5 }
 0x143   : > { %v2374_v23 = vor.u32 %v2373_v11, %v2370_v18  ;;  %v2394_v9 = vrot.slane %v2392_v61, 4  ;;  %v2407_v11 = vrot.slane %v2405_v21, 4  ;;  %v6970_v61 = vld [vmem:[%s7061_s27 + $0xbc] sm:$0x1] }
 0x144   : > { %v2332_v47 = vsel %vm7087_vm4, %v2327_v52, %v8626_v24  ;;  %v2356_v0 = vsel %vm7087_vm4, %v2351_v15, %v8646_v26  ;;  %v2435_v22 = vshll.u32 %v6970_v61, 16 }
 0x145   : > { %6423 = vmatmul.mubr.msk.bf16.gmra.mrb[8].mxu0 %vm709_vm3, %v5797_v40  ;;  %v2381_v40 = vshrl.u32 %v6962_v60, 16  ;;  %v2375_v17 = vrot.slane %v2374_v23, 4  ;;  %v5526_v24 = vcombine.low %v2332_v47, %v2342_v46 }
 0x146   : > { %6269 = vmatmul.mubr.msk.bf16.gmra.mrb[24].mxu1 %vm709_vm3, %v6784_v2  ;;  %6426 = vmatprep.mubr.msk.bf16.mxu0 %vm709_vm3, %v5798_v54  ;;  %v2359_v54 = vrot.slane %v2357_v28, 4 }
 0x147   : > { %6272 = vmatprep.mubr.msk.bf16.mxu1 %vm709_vm3, %v6785_v34  ;;  %v2383_v2 = vrot.slane %v2381_v40, 4  ;;  %v2363_v34 = vshll.u32 %v6964_v35, 16  ;;  %v2380_v10 = vsel %vm7087_vm4, %v2375_v17, %v8649_v6  ;;  %v2461_v17 = vrot.slane %v2459_v57, 5 }
 0x148   : > { %v2360_v49 = vor.u32 %v2359_v54, %v8646_v26  ;;  %v2397_v54 = vrot.slane %v2395_v45, 5  ;;  %v6968_v26 = vld [vmem:[%s7061_s27 + $0xb0] sm:$0x1] }
 0x149   : > { %v2384_v28 = vor.u32 %v2383_v2, %v8649_v6  ;;  %v2365_v60 = vrot.slane %v2363_v34, 5  ;;  %v2411_v35 = vshll.u32 %v6968_v26, 16  ;;  %v2440_v34 = vshrl.u32 %v5512_v39, 16 }
 0x14a   : > { %v2361_v13 = vrot.slane %v2360_v49, 4  ;;  %v2398_v38 = vor.u32 %v2397_v54, %v2394_v9  ;;  %v2443_v6 = vshll.u32 %v5512_v39, 16  ;;  %v6969_v49 = vld [vmem:[%s7061_s27 + $0xc4] sm:$0xf] }
 0x14b   : > { %v2385_v14 = vrot.slane %v2384_v28, 4  ;;  %v2449_v23 = vshll.u32 %v6969_v49, 16  ;;  %v2453_v25 = vshrl.u32 %v6969_v49, 16  ;;  %v2413_v45 = vrot.slane %v2411_v35, 5 }
 0x14c   : > { %v2366_v36 = vsel %vm7087_vm4, %v2361_v13, %v2365_v60  ;;  %v2399_v51 = vrot.slane %v2398_v38, 4  ;;  %v2437_v60 = vrot.slane %v2435_v22, 5 }
 0x14d   : > { %6427 = vmatmul.mubr.msk.bf16.gmra.mrb[12].mxu0 %vm709_vm3, %v5799_v53  ;;  %v2401_v53 = vshll.u32 %v6966_v27, 16  ;;  %v2390_v59 = vsel %vm7087_vm4, %v2385_v14, %v2389_v30  ;;  %v5527_v44 = vcombine.low %v2356_v0, %v2366_v36  ;;  %v2442_v27 = vrot.slane %v2440_v34, 4 }
 0x14e   : > { %6273 = vmatmul.mubr.msk.bf16.gmra.mrb[28].mxu1 %vm709_vm3, %v6786_v19  ;;  %6430 = vmatprep.mubr.msk.bf16.mxu0 %vm709_vm3, %v5800_v33  ;;  %v6967_v33 = vld [vmem:[%s7061_s27 + $0xb8] sm:$0xf]  ;;  %v2418_v19 = vrot.slane %v2416_v20, 4  ;;  %v2451_v21 = vrot.slane %v2449_v23, 5  ;;  %v2455_v47 = vrot.slane %v2453_v25, 4 }
 0x14f   : > { %6294 = vmatprep.mubr.msk.bf16.mxu1 %vm709_vm3, %v5524_v41  ;;  %v2425_v12 = vshll.u32 %v6967_v33, 16  ;;  %v2429_v40 = vshrl.u32 %v6967_v33, 16  ;;  %v2403_v18 = vrot.slane %v2401_v53, 5  ;;  %v2421_v41 = vrot.slane %v2419_v42, 5 }
 0x150   : > { %v2445_v53 = vrot.slane %v2443_v6, 5 }
 0x151   : > { %v2427_v52 = vrot.slane %v2425_v12, 5  ;;  %v2431_v2 = vrot.slane %v2429_v40, 4  ;;  %v2404_v20 = vsel %vm7087_vm4, %v2399_v51, %v2403_v18  ;;  %v2456_v12 = vor.u32 %v2455_v47, %v2451_v21 }
 0x152   : > { %v2446_v33 = vor.u32 %v2445_v53, %v2442_v27 }
 0x153   : > { %v2432_v7 = vor.u32 %v2431_v2, %v2427_v52  ;;  %v2457_v13 = vrot.slane %v2456_v12, 4  ;;  %v8750_v2 = vld [vmem:[%s8950_s2] ss:$0 sm:$0xff] }
 0x154   : > { %v2447_v40 = vrot.slane %v2446_v33, 4 }
 0x155   : > { %6431 = vmatmul.mubr.msk.bf16.gmra.mrb[16].mxu0 %vm709_vm3, %v5801_v37  ;;  %v2408_v37 = vor.u32 %v2407_v11, %v2403_v18  ;;  %v2433_v15 = vrot.slane %v2432_v7, 4  ;;  %v2462_v9 = vsel %vm7087_vm4, %v2457_v13, %v2461_v17 }
 0x156   : > { %6295 = vmatmul.mubr.msk.bf16.vlgmr.msra.gmra.mrb[16].mxu1 %vm709_vm3, %v8455_v1  ;;  %6434 = vmatprep.mubr.msk.bf16.mxu0 %vm709_vm3, %v5802_v3  ;;  %v2422_v1 = vor.u32 %v2421_v41, %v2418_v19  ;;  %v5528_v3 = vcombine.low %v2380_v10, %v2390_v59  ;;  %v2452_v30 = vsel %vm7087_vm4, %v2447_v40, %v2451_v21 }
 0x157   : > { %6298 = vmatprep.mubr.msk.bf16.mxu1 %vm709_vm3, %v5526_v24  ;;  %v2409_v28 = vrot.slane %v2408_v37, 4  ;;  %v2438_v48 = vsel %vm7087_vm4, %v2433_v15, %v2437_v60  ;;  %v5531_v14 = vcombine.low %v2452_v30, %v2462_v9 }
 0x158   : > { %v2423_v46 = vrot.slane %v2422_v1, 4 }
 0x159   : > { %v2414_v42 = vsel %vm7087_vm4, %v2409_v28, %v2413_v45 }
 0x15a   : > { %v5529_v62 = vcombine.low %v2404_v20, %v2414_v42 }
 0x15d   : > { %6435 = vmatmul.mubr.msk.bf16.gmra.mrb[20].mxu0 %vm709_vm3, %v5803_v8  ;;  %v2428_v8 = vsel %vm7087_vm4, %v2423_v46, %v2427_v52 }
 0x15e   : > { %6299 = vmatmul.mubr.msk.bf16.gmra.mrb[20].mxu1 %vm709_vm3, %v5527_v44  ;;  %6438 = vmatprep.mubr.msk.bf16.mxu0 %vm709_vm3, %v5804_v56  ;;  %v5530_v56 = vcombine.low %v2428_v8, %v2438_v48 }
 0x15f   : > { %6302 = vmatprep.mubr.msk.bf16.mxu1 %vm709_vm3, %v5528_v3 }
 0x165   : > { %6439 = vmatmul.mubr.msk.bf16.gmra.mrb[24].mxu0 %vm709_vm3, %v5805_v43 }
 0x166   : > { %6303 = vmatmul.mubr.msk.bf16.gmra.mrb[24].mxu1 %vm709_vm3, %v5529_v62  ;;  %6442 = vmatprep.mubr.msk.bf16.mxu0 %vm709_vm3, %v5806_v50 }
 0x167   : > { %6306 = vmatprep.mubr.msk.bf16.mxu1 %vm709_vm3, %v5530_v56 }
 0x16d   : > { %6443 = vmatmul.mubr.msk.bf16.gmra.mrb[28].mxu0 %vm709_vm3, %v5807_v29 }
 0x16e   : > { %6307 = vmatmul.mubr.msk.bf16.gmra.mrb[28].mxu1 %vm709_vm3, %v5531_v14 }
 0x1e9   : > { %v6246_v63 = vpop.f32.mrb[0].mxu1 }
 0x1ea   : > { %v1872_v4 = vpop.f32.mrb[1].mxu1 }
 0x1eb   : > { %v6247_v43 = vpop.f32.mrb[2].mxu1 }
 0x1ec   : > { %v1875_v16 = vpop.f32.mrb[3].mxu1 }
 0x1f1   : > { %v6250_v58 = vpop.f32.mrb[4].mxu1 }
 0x1f2   : > { %v1888_v50 = vpop.f32.mrb[5].mxu1 }
 0x1f3   : > { %v6251_v54 = vpop.f32.mrb[6].mxu1 }
 0x1f4   : > { %v1891_v18 = vpop.f32.mrb[7].mxu1 }
 0x1f9   : > { %v6254_v11 = vpop.f32.mrb[8].mxu1 }
 0x1fa   : > { %v1904_v24 = vpop.f32.mrb[9].mxu1 }
 0x1fb   : > { %v6255_v32 = vpop.f32.mrb[10].mxu1 }
 0x1fc   : > { %v8737_v19 = vpop.f32.mrb[11].mxu1 }
 0x201   : > { %v8739_v41 = vpop.f32.mrb[12].mxu1 }
 0x202   : > { %v8741_v5 = vpop.f32.mrb[13].mxu1 }
 0x203   : > { %v8743_v55 = vpop.f32.mrb[14].mxu1 }
 0x204   : > { %v8745_v29 = vpop.f32.mrb[15].mxu1 }
 0x208   : > { %v6416_v52 = vpop.f32.mrb[0].mxu0 }
 0x209   : > { %v6448_v39 = vadd.f32 %v6416_v52, %v6246_v63  ;;  %v4623_v0 = vpop.f32.mrb[1].mxu0 }
 0x20a   : > { %v6449_v36 = vadd.f32 %v4623_v0, %v1872_v4  ;;  %v6417_v10 = vpop.f32.mrb[2].mxu0 }
 0x20b   : > { %v8753_v59 = vadd.f32 %v6448_v39, %v8750_v2  ;;  %v6450_v38 = vadd.f32 %v6417_v10, %v6247_v43  ;;  %v4626_v37 = vpop.f32.mrb[3].mxu0 }
 0x20c   : > { %v8756_v26 = vadd.f32 %v6449_v36, %v8750_v2  ;;  %v6451_v35 = vadd.f32 %v4626_v37, %v1875_v16 }
 0x20d   : > { %v4823_v34 = vsub.f32 0.0, %v8753_v59  ;;  %v8760_v6 = vadd.f32 %v6450_v38, %v8750_v2 }
 0x20e   : > { %v4821_v49 = vsub.f32 0.0, %v8756_v26  ;;  %v8764_v23 = vadd.f32 %v6451_v35, %v8750_v2 }
 0x20f   : > { %v4857_v25 = vmul.f32 1.442695, %v4823_v34  ;;  %v4824_v1 = vsub.f32 0.0, %v8760_v6 }
 0x210   : > { %v4853_v7 = vmul.f32 1.442695, %v4821_v49  ;;  %v4822_v61 = vsub.f32 0.0, %v8764_v23  ;;  %v6420_v22 = vpop.f32.mrb[4].mxu0 }
 0x211   : > { %6787 = vpow2.f32 %v4857_v25  ;;  %v4859_v44 = vmul.f32 1.442695, %v4824_v1  ;;  %v6452_v3 = vadd.f32 %v6420_v22, %v6250_v58  ;;  %v4639_v51 = vpop.f32.mrb[5].mxu0 }
 0x212   : > { %6789 = vpow2.f32 %v4853_v7  ;;  %v4855_v28 = vmul.f32 1.442695, %v4822_v61  ;;  %v6453_v45 = vadd.f32 %v4639_v51, %v1888_v50  ;;  %v6421_v27 = vpop.f32.mrb[6].mxu0 }
 0x213   : > { %6791 = vpow2.f32 %v4859_v44  ;;  %v8769_v53 = vadd.f32 %v6452_v3, %v8750_v2  ;;  %v6454_v21 = vadd.f32 %v6421_v27, %v6251_v54  ;;  %v4642_v47 = vpop.f32.mrb[7].mxu0 }
 0x214   : > { %6793 = vpow2.f32 %v4855_v28  ;;  %v8772_v46 = vadd.f32 %v6453_v45, %v8750_v2  ;;  %v6455_v15 = vadd.f32 %v4642_v47, %v1891_v18 }
 0x215   : > { %v4827_v60 = vsub.f32 0.0, %v8769_v53  ;;  %v8776_v20 = vadd.f32 %v6454_v21, %v8750_v2 }
 0x216   : > { %v4825_v42 = vsub.f32 0.0, %v8772_v46  ;;  %v8780_v33 = vadd.f32 %v6455_v15, %v8750_v2 }
 0x217   : > { %v4865_v12 = vmul.f32 1.442695, %v4827_v60  ;;  %v4828_v31 = vsub.f32 0.0, %v8776_v20 }
 0x218   : > { %v4861_v57 = vmul.f32 1.442695, %v4825_v42  ;;  %v4826_v8 = vsub.f32 0.0, %v8780_v33  ;;  %v6424_v48 = vpop.f32.mrb[8].mxu0 }
 0x219   : > { %6795 = vpow2.f32 %v4865_v12  ;;  %v4867_v62 = vmul.f32 1.442695, %v4828_v31  ;;  %v6456_v56 = vadd.f32 %v6424_v48, %v6254_v11  ;;  %v4655_v40 = vpop.f32.mrb[9].mxu0 }
 0x21a   : > { %6797 = vpow2.f32 %v4861_v57  ;;  %v4863_v13 = vmul.f32 1.442695, %v4826_v8  ;;  %v6457_v17 = vadd.f32 %v4655_v40, %v1904_v24  ;;  %v6425_v30 = vpop.f32.mrb[10].mxu0 }
 0x21b   : > { %v6788_v9 = vpop.eup %6787  ;;  %6799 = vpow2.f32 %v4867_v62  ;;  %v8785_v14 = vadd.f32 %v6456_v56, %v8750_v2  ;;  %v6458_v63 = vadd.f32 %v6425_v30, %v6255_v32  ;;  %v4658_v4 = vpop.f32.mrb[11].mxu0 }
 0x21c   : > { %v6790_v43 = vpop.eup %6789  ;;  %v4919_v16 = vadd.f32 1.0, %v6788_v9  ;;  %6801 = vpow2.f32 %v4863_v13  ;;  %v8788_v58 = vadd.f32 %v6457_v17, %v8750_v2  ;;  %v6459_v50 = vadd.f32 %v4658_v4, %v8737_v19 }
 0x21d   : > { %v6792_v54 = vpop.eup %6791  ;;  %v4917_v18 = vadd.f32 1.0, %v6790_v43  ;;  %v4831_v11 = vsub.f32 0.0, %v8785_v14  ;;  %v8793_v24 = vadd.f32 %v6458_v63, %v8750_v2 }
 0x21e   : > { %v6794_v52 = vpop.eup %6793  ;;  %6803 = vrcp.f32 %v4919_v16  ;;  %v4920_v39 = vadd.f32 1.0, %v6792_v54  ;;  %v4829_v32 = vsub.f32 0.0, %v8788_v58  ;;  %v8797_v0 = vadd.f32 %v6459_v50, %v8750_v2 }
 0x21f   : > { %6805 = vrcp.f32 %v4917_v18  ;;  %v4918_v36 = vadd.f32 1.0, %v6794_v52  ;;  %v4873_v10 = vmul.f32 1.442695, %v4831_v11  ;;  %v4832_v19 = vsub.f32 0.0, %v8793_v24 }
 0x220   : > { %6807 = vrcp.f32 %v4920_v39  ;;  %v4869_v38 = vmul.f32 1.442695, %v4829_v32  ;;  %v4830_v37 = vsub.f32 0.0, %v8797_v0  ;;  %v6428_v35 = vpop.f32.mrb[12].mxu0 }
 0x221   : > { %6809 = vrcp.f32 %v4918_v36  ;;  %v4875_v34 = vmul.f32 1.442695, %v4832_v19  ;;  %v6460_v49 = vadd.f32 %v6428_v35, %v8739_v41  ;;  %v4671_v25 = vpop.f32.mrb[13].mxu0 }
 0x222   : > { %6811 = vpow2.f32 %v4873_v10  ;;  %v4871_v1 = vmul.f32 1.442695, %v4830_v37  ;;  %v6461_v7 = vadd.f32 %v4671_v25, %v8741_v5  ;;  %v6429_v61 = vpop.f32.mrb[14].mxu0 }
 0x223   : > { %v6796_v22 = vpop.eup %6795  ;;  %6813 = vpow2.f32 %v4869_v38  ;;  %v8804_v44 = vadd.f32 %v6460_v49, %v8750_v2  ;;  %v6462_v3 = vadd.f32 %v6429_v61, %v8743_v55  ;;  %v4674_v51 = vpop.f32.mrb[15].mxu0 }
 0x224   : > { %v6798_v28 = vpop.eup %6797  ;;  %v4923_v45 = vadd.f32 1.0, %v6796_v22  ;;  %6815 = vpow2.f32 %v4875_v34  ;;  %v8808_v27 = vadd.f32 %v6461_v7, %v8750_v2  ;;  %v6463_v41 = vadd.f32 %v4674_v51, %v8745_v29 }
 0x225   : > { %v6800_v21 = vpop.eup %6799  ;;  %v4921_v47 = vadd.f32 1.0, %v6798_v28  ;;  %6817 = vpow2.f32 %v4871_v1  ;;  %v4835_v5 = vsub.f32 0.0, %v8804_v44  ;;  %v8813_v15 = vadd.f32 %v6462_v3, %v8750_v2 }
 0x226   : > { %v6802_v60 = vpop.eup %6801  ;;  %6819 = vrcp.f32 %v4923_v45  ;;  %v4924_v55 = vadd.f32 1.0, %v6800_v21  ;;  %v4833_v42 = vsub.f32 0.0, %v8808_v27  ;;  %v8817_v12 = vadd.f32 %v6463_v41, %v8750_v2 }
 0x227   : > { %6821 = vrcp.f32 %v4921_v47  ;;  %v4922_v31 = vadd.f32 1.0, %v6802_v60  ;;  %v4881_v29 = vmul.f32 1.442695, %v4835_v5  ;;  %v4836_v57 = vsub.f32 0.0, %v8813_v15 }
 0x228   : > { %v6804_v8 = vpop.eup %6803  ;;  %6823 = vrcp.f32 %v4924_v55  ;;  %v4877_v48 = vmul.f32 1.442695, %v4833_v42  ;;  %v4834_v62 = vsub.f32 0.0, %v8817_v12  ;;  %v6432_v56 = vpop.f32.mrb[16].mxu0 }
 0x229   : > { %v6806_v40 = vpop.eup %6805  ;;  %6825 = vrcp.f32 %v4922_v31  ;;  %v4883_v13 = vmul.f32 1.442695, %v4836_v57  ;;  %v6296_v17 = vpop.f32.mrb[16].mxu1  ;;  %v4983_v63 = vmul.f32 %v6804_v8, %v8753_v59 }
 0x22a   : > { %v4687_v30 = vpop.f32.mrb[17].mxu0  ;;  %v6808_v9 = vpop.eup %6807  ;;  %6827 = vpow2.f32 %v4881_v29  ;;  %v4879_v4 = vmul.f32 1.442695, %v4834_v62  ;;  %v6464_v43 = vadd.f32 %v6432_v56, %v6296_v17  ;;  %v4981_v18 = vmul.f32 %v6806_v40, %v8756_v26 }
 0x22b   : > { %v2662_v16 = vpop.f32.mrb[17].mxu1  ;;  %v6433_v50 = vpop.f32.mrb[18].mxu0  ;;  %v4984_v11 = vmul.f32 %v6808_v9, %v8760_v6  ;;  %6829 = vpow2.f32 %v4877_v48 }
 0x22c   : > { %v6810_v54 = vpop.eup %6809  ;;  %v6465_v52 = vadd.f32 %v4687_v30, %v2662_v16  ;;  %v6297_v39 = vpop.f32.mrb[18].mxu1  ;;  %6831 = vpow2.f32 %v4883_v13  ;;  %v8832_v10 = vadd.f32 %v6464_v43, %v8750_v2 }
 0x22d   : > { %v4690_v32 = vpop.f32.mrb[19].mxu0  ;;  %v6812_v36 = vpop.eup %6811  ;;  %v4982_v59 = vmul.f32 %v6810_v54, %v8764_v23  ;;  %v6466_v26 = vadd.f32 %v6433_v50, %v6297_v39  ;;  %v5900_v38 = vpack.c.bf16 %v4984_v11, %v4983_v63  ;;  %6833 = vpow2.f32 %v4879_v4 }
 0x22e   : > { %v2665_v19 = vpop.f32.mrb[19].mxu1  ;;  %v6814_v6 = vpop.eup %6813  ;;  %v4927_v37 = vadd.f32 1.0, %v6812_v36  ;;  %v8835_v35 = vadd.f32 %v6465_v52, %v8750_v2  ;;  %v4839_v23 = vsub.f32 0.0, %v8832_v10 }
 0x22f   : > { %v6816_v34 = vpop.eup %6815  ;;  %v5895_v49 = vpack.c.bf16 %v4982_v59, %v4981_v18  ;;  %v4925_v25 = vadd.f32 1.0, %v6814_v6  ;;  %v8839_v1 = vadd.f32 %v6466_v26, %v8750_v2  ;;  %5972 = vst [vmem:[%s8828_s23 + $0x8] sm:$0xff] %v5900_v38   ;;  %v6467_v3 = vadd.f32 %v4690_v32, %v2665_v19 }
 0x230   : > { %v6818_v7 = vpop.eup %6817  ;;  %6835 = vrcp.f32 %v4927_v37  ;;  %v4928_v61 = vadd.f32 1.0, %v6816_v34  ;;  %v4837_v22 = vsub.f32 0.0, %v8835_v35  ;;  %v4889_v45 = vmul.f32 1.442695, %v4839_v23  ;;  %v6436_v21 = vpop.f32.mrb[20].mxu0 }
 0x231   : > { %v6820_v51 = vpop.eup %6819  ;;  %5896 = vst [vmem:[%s8828_s23] sm:$0xff] %v5895_v49   ;;  %6837 = vrcp.f32 %v4925_v25  ;;  %v4926_v28 = vadd.f32 1.0, %v6818_v7  ;;  %v4840_v41 = vsub.f32 0.0, %v8839_v1  ;;  %v8847_v55 = vadd.f32 %v6467_v3, %v8750_v2  ;;  %v6300_v42 = vpop.f32.mrb[20].mxu1 }
 0x232   : > { %v6822_v47 = vpop.eup %6821  ;;  %v4987_v5 = vmul.f32 %v6820_v51, %v8769_v53  ;;  %6839 = vrcp.f32 %v4928_v61  ;;  %v4885_v60 = vmul.f32 1.442695, %v4837_v22  ;;  %v4703_v31 = vpop.f32.mrb[21].mxu0  ;;  %v6468_v48 = vadd.f32 %v6436_v21, %v6300_v42 }
 0x233   : > { %v6824_v29 = vpop.eup %6823  ;;  %v4985_v57 = vmul.f32 %v6822_v47, %v8772_v46  ;;  %6841 = vrcp.f32 %v4926_v28  ;;  %v4891_v8 = vmul.f32 1.442695, %v4840_v41  ;;  %v2678_v62 = vpop.f32.mrb[21].mxu1  ;;  %v4838_v53 = vsub.f32 0.0, %v8847_v55 }
 0x234   : > { %v6437_v56 = vpop.f32.mrb[22].mxu0  ;;  %v6826_v40 = vpop.eup %6825  ;;  %v4988_v13 = vmul.f32 %v6824_v29, %v8776_v20  ;;  %6843 = vpow2.f32 %v4889_v45  ;;  %v6469_v17 = vadd.f32 %v4703_v31, %v2678_v62  ;;  %v8854_v46 = vadd.f32 %v6468_v48, %v8750_v2 }
 0x235   : > { %v6301_v30 = vpop.f32.mrb[22].mxu1  ;;  %v4706_v9 = vpop.f32.mrb[23].mxu0  ;;  %v4986_v4 = vmul.f32 %v6826_v40, %v8780_v33  ;;  %6845 = vpow2.f32 %v4885_v60  ;;  %v4887_v18 = vmul.f32 1.442695, %v4838_v53 }
 0x236   : > { %v6828_v63 = vpop.eup %6827  ;;  %v6470_v43 = vadd.f32 %v6437_v56, %v6301_v30  ;;  %v2681_v16 = vpop.f32.mrb[23].mxu1  ;;  %v5910_v54 = vpack.c.bf16 %v4988_v13, %v4987_v5  ;;  %6847 = vpow2.f32 %v4891_v8  ;;  %v4843_v32 = vsub.f32 0.0, %v8854_v46 }
 0x237   : > { %v6830_v50 = vpop.eup %6829  ;;  %v4931_v20 = vadd.f32 1.0, %v6828_v63  ;;  %v5905_v52 = vpack.c.bf16 %v4986_v4, %v4985_v57  ;;  %v8858_v33 = vadd.f32 %v6469_v17, %v8750_v2  ;;  %v6471_v19 = vadd.f32 %v4706_v9, %v2681_v16 }
 0x238   : > { %v6832_v11 = vpop.eup %6831  ;;  %v4929_v39 = vadd.f32 1.0, %v6830_v50  ;;  %5974 = vst [vmem:[%s8828_s23 + $0x18] sm:$0xff] %v5910_v54   ;;  %v8862_v26 = vadd.f32 %v6470_v43, %v8750_v2  ;;  %v4897_v38 = vmul.f32 1.442695, %v4843_v32  ;;  %v6440_v34 = vpop.f32.mrb[24].mxu0 }
 0x239   : > { %v6834_v36 = vpop.eup %6833  ;;  %6849 = vrcp.f32 %v4931_v20  ;;  %v4932_v59 = vadd.f32 1.0, %v6832_v11  ;;  %5973 = vst [vmem:[%s8828_s23 + $0x10] sm:$0xff] %v5905_v52   ;;  %v4841_v37 = vsub.f32 0.0, %v8858_v33  ;;  %v8868_v23 = vadd.f32 %v6471_v19, %v8750_v2  ;;  %v6304_v7 = vpop.f32.mrb[24].mxu1 }
 0x23a   : > { %6851 = vrcp.f32 %v4929_v39  ;;  %v4930_v6 = vadd.f32 1.0, %v6834_v36  ;;  %v6836_v49 = vpop.eup %6835  ;;  %v4844_v25 = vsub.f32 0.0, %v8862_v26  ;;  %v4719_v61 = vpop.f32.mrb[25].mxu0  ;;  %v6472_v28 = vadd.f32 %v6440_v34, %v6304_v7 }
 0x23b   : > { %6853 = vrcp.f32 %v4932_v59  ;;  %v6838_v22 = vpop.eup %6837  ;;  %v4991_v3 = vmul.f32 %v6836_v49, %v8785_v14  ;;  %v4893_v51 = vmul.f32 1.442695, %v4841_v37  ;;  %v2694_v45 = vpop.f32.mrb[25].mxu1  ;;  %v4842_v60 = vsub.f32 0.0, %v8868_v23 }
 0x23c   : > { %6855 = vrcp.f32 %v4930_v6  ;;  %v6441_v41 = vpop.f32.mrb[26].mxu0  ;;  %v6840_v21 = vpop.eup %6839  ;;  %v4989_v47 = vmul.f32 %v6838_v22, %v8788_v58  ;;  %v4899_v5 = vmul.f32 1.442695, %v4844_v25  ;;  %v8875_v14 = vadd.f32 %v6472_v28, %v8750_v2 }
 0x23d   : > { %6857 = vpow2.f32 %v4887_v18  ;;  %v6305_v42 = vpop.f32.mrb[26].mxu1  ;;  %v4722_v31 = vpop.f32.mrb[27].mxu0  ;;  %v4992_v57 = vmul.f32 %v6840_v21, %v8793_v24  ;;  %v6473_v8 = vadd.f32 %v4719_v61, %v2694_v45  ;;  %v4895_v58 = vmul.f32 1.442695, %v4842_v60 }
 0x23e   : > { %v6842_v29 = vpop.eup %6841  ;;  %6859 = vpow2.f32 %v4897_v38  ;;  %v2697_v48 = vpop.f32.mrb[27].mxu1  ;;  %v6474_v40 = vadd.f32 %v6441_v41, %v6305_v42  ;;  %v4847_v24 = vsub.f32 0.0, %v8875_v14 }
 0x23f   : > { %v6844_v62 = vpop.eup %6843  ;;  %v4990_v56 = vmul.f32 %v6842_v29, %v8797_v0  ;;  %6861 = vpow2.f32 %v4893_v51  ;;  %v5920_v53 = vpack.c.bf16 %v4992_v57, %v4991_v3  ;;  %v8880_v4 = vadd.f32 %v6473_v8, %v8750_v2 }
 0x240   : > { %v6846_v13 = vpop.eup %6845  ;;  %v4935_v17 = vadd.f32 1.0, %v6844_v62  ;;  %6863 = vpow2.f32 %v4899_v5  ;;  %v4905_v43 = vmul.f32 1.442695, %v4847_v24  ;;  %v8884_v16 = vadd.f32 %v6474_v40, %v8750_v2  ;;  %v6444_v50 = vpop.f32.mrb[28].mxu0 }
 0x241   : > { %v6848_v30 = vpop.eup %6847  ;;  %v5915_v9 = vpack.c.bf16 %v4990_v56, %v4989_v47  ;;  %v4933_v63 = vadd.f32 1.0, %v6846_v13  ;;  %6865 = vpow2.f32 %v4895_v58  ;;  %5976 = vst [vmem:[%s8828_s23 + $0x28] sm:$0xff] %v5920_v53   ;;  %v4845_v20 = vsub.f32 0.0, %v8880_v4  ;;  %v6308_v11 = vpop.f32.mrb[28].mxu1 }
 0x242   : > { %6867 = vrcp.f32 %v4935_v17  ;;  %v4936_v0 = vadd.f32 1.0, %v6848_v30  ;;  %v6475_v18 = vadd.f32 %v4722_v31, %v2697_v48  ;;  %v4735_v52 = vpop.f32.mrb[29].mxu0  ;;  %v4848_v32 = vsub.f32 0.0, %v8884_v16  ;;  %v2710_v59 = vpop.f32.mrb[29].mxu1 }
 0x243   : > { %v6850_v54 = vpop.eup %6849  ;;  %5975 = vst [vmem:[%s8828_s23 + $0x20] sm:$0xff] %v5915_v9   ;;  %6869 = vrcp.f32 %v4933_v63  ;;  %v6476_v36 = vadd.f32 %v6444_v50, %v6308_v11  ;;  %v6445_v19 = vpop.f32.mrb[30].mxu0  ;;  %v4901_v37 = vmul.f32 1.442695, %v4845_v20  ;;  %v6477_v51 = vadd.f32 %v4735_v52, %v2710_v59 }
 0x244   : > { %v6852_v39 = vpop.eup %6851  ;;  %6871 = vrcp.f32 %v4936_v0  ;;  %v4995_v38 = vmul.f32 %v6850_v54, %v8804_v44  ;;  %v8891_v34 = vadd.f32 %v6475_v18, %v8750_v2  ;;  %v6309_v49 = vpop.f32.mrb[30].mxu1  ;;  %v4907_v22 = vmul.f32 1.442695, %v4848_v32 }
 0x245   : > { %v6854_v6 = vpop.eup %6853  ;;  %6873 = vpow2.f32 %v4905_v43  ;;  %v4738_v25 = vpop.f32.mrb[31].mxu0  ;;  %v8895_v3 = vadd.f32 %v6476_v36, %v8750_v2  ;;  %v4993_v44 = vmul.f32 %v6852_v39, %v8808_v27  ;;  %v6478_v47 = vadd.f32 %v6445_v19, %v6309_v49 }
 0x246   : > { %v6856_v7 = vpop.eup %6855  ;;  %v4996_v61 = vmul.f32 %v6854_v6, %v8813_v15  ;;  %v2713_v28 = vpop.f32.mrb[31].mxu1  ;;  %v4846_v21 = vsub.f32 0.0, %v8891_v34  ;;  %6875 = vpow2.f32 %v4907_v22  ;;  %v8902_v8 = vadd.f32 %v6477_v51, %v8750_v2 }
 0x247   : > { %v6858_v45 = vpop.eup %6857  ;;  %v4994_v41 = vmul.f32 %v6856_v7, %v8817_v12  ;;  %v4851_v15 = vsub.f32 0.0, %v8895_v3  ;;  %6877 = vpow2.f32 %v4901_v37  ;;  %v8906_v62 = vadd.f32 %v6478_v47, %v8750_v2 }
 0x248   : > { %v6860_v5 = vpop.eup %6859  ;;  %v5930_v60 = vpack.c.bf16 %v4996_v61, %v4995_v38  ;;  %v4934_v42 = vadd.f32 1.0, %v6858_v45  ;;  %v4903_v48 = vmul.f32 1.442695, %v4846_v21  ;;  %v4849_v40 = vsub.f32 0.0, %v8902_v8 }
 0x249   : > { %v6862_v31 = vpop.eup %6861  ;;  %v5925_v29 = vpack.c.bf16 %v4994_v41, %v4993_v44  ;;  %v4939_v57 = vadd.f32 1.0, %v6860_v5  ;;  %v6479_v13 = vadd.f32 %v4738_v25, %v2713_v28  ;;  %v4913_v24 = vmul.f32 1.442695, %v4851_v15 }
 0x24a   : > { %v6864_v27 = vpop.eup %6863  ;;  %5978 = vst [vmem:[%s8828_s23 + $0x38] sm:$0xff] %v5930_v60   ;;  %6879 = vrcp.f32 %v4934_v42  ;;  %v4937_v12 = vadd.f32 1.0, %v6862_v31  ;;  %v4852_v30 = vsub.f32 0.0, %v8906_v62  ;;  %v4909_v63 = vmul.f32 1.442695, %v4849_v40 }
 0x24b   : > { %v6866_v56 = vpop.eup %6865  ;;  %5977 = vst [vmem:[%s8828_s23 + $0x30] sm:$0xff] %v5925_v29   ;;  %6881 = vrcp.f32 %v4939_v57  ;;  %v4940_v58 = vadd.f32 1.0, %v6864_v27  ;;  %v8912_v0 = vadd.f32 %v6479_v13, %v8750_v2 }
 0x24c   : > { %v6868_v53 = vpop.eup %6867  ;;  %6883 = vrcp.f32 %v4937_v12  ;;  %v4938_v17 = vadd.f32 1.0, %v6866_v56  ;;  %v4915_v18 = vmul.f32 1.442695, %v4852_v30 }
 0x24d   : > { %v6870_v9 = vpop.eup %6869  ;;  %6885 = vrcp.f32 %v4940_v58  ;;  %v4999_v50 = vmul.f32 %v6868_v53, %v8832_v10  ;;  %v4850_v11 = vsub.f32 0.0, %v8912_v0 }
 0x24e   : > { %v6872_v43 = vpop.eup %6871  ;;  %6887 = vrcp.f32 %v4938_v17 }
 0x24f   : > { %v6874_v54 = vpop.eup %6873  ;;  %v5000_v20 = vmul.f32 %v6872_v43, %v8839_v1  ;;  %6889 = vpow2.f32 %v4903_v48  ;;  %v4911_v2 = vmul.f32 1.442695, %v4850_v11  ;;  %v4997_v1 = vmul.f32 %v6870_v9, %v8835_v35 }
 0x250   : > { %v4943_v52 = vadd.f32 1.0, %v6874_v54  ;;  %6891 = vpow2.f32 %v4913_v24  ;;  %v6876_v32 = vpop.eup %6875 }
 0x251   : > { %v5940_v39 = vpack.c.bf16 %v5000_v20, %v4999_v50  ;;  %6893 = vpow2.f32 %v4909_v63  ;;  %v6878_v36 = vpop.eup %6877  ;;  %v4944_v59 = vadd.f32 1.0, %v6876_v32 }
 0x252   : > { %6895 = vrcp.f32 %v4943_v52  ;;  %v4941_v37 = vadd.f32 1.0, %v6878_v36 }
 0x253   : > { %5980 = vst [vmem:[%s8828_s23 + $0x48] sm:$0xff] %v5940_v39   ;;  %6897 = vpow2.f32 %v4915_v18 }
 0x254   : > { %v6880_v10 = vpop.eup %6879  ;;  %6899 = vrcp.f32 %v4944_v59 }
 0x255   : > { %v6882_v19 = vpop.eup %6881  ;;  %v4998_v6 = vmul.f32 %v6880_v10, %v8847_v55  ;;  %6901 = vpow2.f32 %v4911_v2 }
 0x256   : > { %v6884_v38 = vpop.eup %6883  ;;  %v5003_v61 = vmul.f32 %v6882_v19, %v8854_v46  ;;  %6903 = vrcp.f32 %v4941_v37 }
 0x257   : > { %v6886_v49 = vpop.eup %6885  ;;  %v5935_v25 = vpack.c.bf16 %v4998_v6, %v4997_v1  ;;  %v5001_v28 = vmul.f32 %v6884_v38, %v8858_v33 }
 0x258   : > { %v6888_v7 = vpop.eup %6887  ;;  %v5004_v22 = vmul.f32 %v6886_v49, %v8862_v26 }
 0x259   : > { %v6890_v51 = vpop.eup %6889  ;;  %5979 = vst [vmem:[%s8828_s23 + $0x40] sm:$0xff] %v5935_v25   ;;  %v5002_v35 = vmul.f32 %v6888_v7, %v8868_v23 }
 0x25a   : > { %v6892_v55 = vpop.eup %6891  ;;  %v5950_v45 = vpack.c.bf16 %v5004_v22, %v5003_v61  ;;  %v4942_v44 = vadd.f32 1.0, %v6890_v51 }
 0x25b   : > { %v6894_v41 = vpop.eup %6893  ;;  %v5945_v21 = vpack.c.bf16 %v5002_v35, %v5001_v28  ;;  %v4947_v47 = vadd.f32 1.0, %v6892_v55 }
 0x25c   : > { %v6896_v5 = vpop.eup %6895  ;;  %5982 = vst [vmem:[%s8828_s23 + $0x58] sm:$0xff] %v5950_v45   ;;  %6905 = vrcp.f32 %v4942_v44  ;;  %v4945_v26 = vadd.f32 1.0, %v6894_v41 }
 0x25d   : > { %v6898_v46 = vpop.eup %6897  ;;  %5981 = vst [vmem:[%s8828_s23 + $0x50] sm:$0xff] %v5945_v21   ;;  %6907 = vrcp.f32 %v4947_v47  ;;  %v5007_v23 = vmul.f32 %v6896_v5, %v8875_v14 }
 0x25e   : > { %v4948_v60 = vadd.f32 1.0, %v6898_v46  ;;  %v6900_v42 = vpop.eup %6899 }
 0x25f   : > { %v6902_v33 = vpop.eup %6901  ;;  %v5008_v15 = vmul.f32 %v6900_v42, %v8884_v16 }
 0x260   : > { %6909 = vrcp.f32 %v4948_v60  ;;  %v4946_v31 = vadd.f32 1.0, %v6902_v33  ;;  %v6904_v57 = vpop.eup %6903 }
 0x261   : > { %6911 = vrcp.f32 %v4945_v26  ;;  %v5960_v29 = vpack.c.bf16 %v5008_v15, %v5007_v23  ;;  %v5005_v12 = vmul.f32 %v6904_v57, %v8880_v4 }
 0x262   : > { %6913 = vrcp.f32 %v4946_v31 }
 0x263   : > { %5984 = vst [vmem:[%s8828_s23 + $0x68] sm:$0xff] %v5960_v29  }
 0x266   : > { %v6906_v27 = vpop.eup %6905 }
 0x267   : > { %v5006_v48 = vmul.f32 %v6906_v27, %v8891_v34  ;;  %v6908_v56 = vpop.eup %6907 }
 0x268   : > { %v5011_v16 = vmul.f32 %v6908_v56, %v8895_v3 }
 0x269   : > { %v5955_v58 = vpack.c.bf16 %v5006_v48, %v5005_v12 }
 0x26a   : > { %v6910_v14 = vpop.eup %6909 }
 0x26b   : > { %v6912_v40 = vpop.eup %6911  ;;  %5983 = vst [vmem:[%s8828_s23 + $0x60] sm:$0xff] %v5955_v58   ;;  %v5012_v13 = vmul.f32 %v6910_v14, %v8906_v62 }
 0x26c   : > { %v6914_v53 = vpop.eup %6913  ;;  %v5009_v24 = vmul.f32 %v6912_v40, %v8902_v8 }
 0x26d   : > { %v5970_v17 = vpack.c.bf16 %v5012_v13, %v5011_v16  ;;  %v5010_v30 = vmul.f32 %v6914_v53, %v8912_v0 }
 0x26f   : > { %5986 = vst [vmem:[%s8828_s23 + $0x78] sm:$0xff] %v5970_v17   ;;  %v5965_v9 = vpack.c.bf16 %v5010_v30, %v5009_v24 }
 0x271   : > { %5985 = vst [vmem:[%s8828_s23 + $0x70] sm:$0xff] %v5965_v9  }
 0x272 PF: > { %s13_s14 = sadd.s32 1, %s6994_s14   ;;  %s9019_s12 = smov %s6990_s13 }
 0x273   : > { %p10_p5 = scmp.ge.s32.totalorder %s13_s14, 4   ;;  %s9020_s13 = smov %s9022_s15 }
 0x275   :  { %12 = sbr.rel (!%p10_p5) target bundleno = 2 (0x2), region = 78 }

</bundles_post_ra>
